<compile_context>
chip_gen: v6e
topology: v6e:2x2x1
jax: 0.10.0
libtpu: 0.0.40
codegen_flags: <defaults>
</compile_context>

<pallas_src>
import functools

import jax
import jax.numpy as jnp
from jax.experimental import pallas as pl
from jax.experimental.pallas import tpu as pltpu

DIM = 64
LANE = 128


# ----------------------------- Pallas kernel -------------------------------
def _matmul_bias_kernel(x_ref, w_ref, b_ref, o_ref, *, relu):
    # x: (TM, K) bf16, w: (K, N) bf16, b: (1, N) f32, o: (TM, N)
    acc = jnp.dot(x_ref[...], w_ref[...], preferred_element_type=jnp.float32)
    acc = acc + b_ref[...]
    if relu:
        acc = jnp.maximum(acc, 0.0)
    o_ref[...] = acc.astype(o_ref.dtype)


def _choose_tm(m, tm_max=256):
    """Row tile: <= tm_max, multiple of 8, and >= 2 grid steps when possible."""
    if m <= 8:
        return m
    half = -(-m // 2)                       # ceil(m / 2)
    return min(tm_max, ((half + 7) // 8) * 8)


def pallas_matmul_bias(x, w, b, *, relu, out_dtype=jnp.bfloat16, tm_max=256):
    """Fused (x @ w + b) [+ ReLU]; bf16 MXU matmul, f32 accumulate/epilogue."""
    M, K = x.shape
    K2, N = w.shape
    assert K == K2 and b.shape == (1, N)
    tm = _choose_tm(M, tm_max)
    grid = (pl.cdiv(M, tm),)
    cost = pl.CostEstimate(
        flops=2 * M * K * N,
        transcendentals=0,
        bytes_accessed=M * K * 2 + K * N * 2 + N * 4
                       + M * N * jnp.dtype(out_dtype).itemsize,
    )
    return pl.pallas_call(
        functools.partial(_matmul_bias_kernel, relu=relu),
        out_shape=jax.ShapeDtypeStruct((M, N), out_dtype),
        grid=grid,
        in_specs=[
            pl.BlockSpec((tm, K), lambda i: (i, 0)),   # row tile of activations
            pl.BlockSpec((K, N), lambda i: (0, 0)),    # weights: VMEM-resident
            pl.BlockSpec((1, N), lambda i: (0, 0)),    # bias:    VMEM-resident
        ],
        out_specs=pl.BlockSpec((tm, N), lambda i: (i, 0)),
        compiler_params=pltpu.CompilerParams(dimension_semantics=("parallel",)),
        cost_estimate=cost,
    )(x.astype(jnp.bfloat16), w.astype(jnp.bfloat16), b.astype(jnp.float32))


# ------------------------------ JAX glue ------------------------------------
def _im2col_nhwc(x, kh, kw, stride, pad):
    """x: (B,H,W,C) -> patches (B*Ho*Wo, kh*kw*C) with K ordered (kh, kw, C)."""
    B, H, W, C = x.shape
    xp = jnp.pad(x, ((0, 0), (pad, pad), (pad, pad), (0, 0)))
    Ho = (H + 2 * pad - kh) // stride + 1
    Wo = (W + 2 * pad - kw) // stride + 1
    cols = []
    for i in range(kh):
        for j in range(kw):
            cols.append(xp[:, i:i + stride * (Ho - 1) + 1:stride,
                              j:j + stride * (Wo - 1) + 1:stride, :])
    patches = jnp.concatenate(cols, axis=-1)            # (B, Ho, Wo, kh*kw*C)
    return patches.reshape(B * Ho * Wo, kh * kw * C), Ho, Wo


def conv2d_relu_nhwc(x, w_packed, b_packed, *, kh=5, kw=5, stride=2, pad=2,
                     k_pad=0):
    """x: (B,H,W,C) bf16; w_packed: (kh*kw*C + k_pad, N) bf16 -> (B,Ho,Wo,N) bf16."""
    # TODO(synk): patch extraction is still an XLA-side im2col; an in-kernel
    # (VMEM) im2col would cut HBM traffic further at large batch.
    B = x.shape[0]
    patches, Ho, Wo = _im2col_nhwc(x, kh, kw, stride, pad)
    if k_pad:
        patches = jnp.pad(patches, ((0, 0), (0, k_pad)))
    out = pallas_matmul_bias(patches, w_packed, b_packed, relu=True)
    return out.reshape(B, Ho, Wo, w_packed.shape[1])


def init_params(key):
    """PyTorch-layout parameters (Conv2d: (O,I,KH,KW); Linear: (1, 4096))."""
    ks = jax.random.split(key, 8)

    def u(k, shape, fan_in):
        bound = 1.0 / jnp.sqrt(fan_in)
        return jax.random.uniform(k, shape, jnp.float32, -bound, bound)

    p = {}
    p["w1"] = u(ks[0], (DIM, 1, 5, 5), 1 * 25)
    p["b1"] = u(ks[1], (DIM,), 1 * 25)
    p["w2"] = u(ks[2], (2 * DIM, DIM, 5, 5), DIM * 25)
    p["b2"] = u(ks[3], (2 * DIM,), DIM * 25)
    p["w3"] = u(ks[4], (4 * DIM, 2 * DIM, 5, 5), 2 * DIM * 25)
    p["b3"] = u(ks[5], (4 * DIM,), 2 * DIM * 25)
    p["wo"] = u(ks[6], (1, 4 * 4 * 4 * DIM), 4 * 4 * 4 * DIM)
    p["bo"] = u(ks[7], (1,), 4 * 4 * 4 * DIM)
    return p


def _pack_conv(w, b, *, k_pad=0, n_pad=0):
    O, I, KH, KW = w.shape
    w2d = jnp.transpose(w, (2, 3, 1, 0)).reshape(KH * KW * I, O)  # (kh,kw,Cin) x O
    if k_pad:
        w2d = jnp.pad(w2d, ((0, k_pad), (0, 0)))
    if n_pad:
        w2d = jnp.pad(w2d, ((0, 0), (0, n_pad)))
        b = jnp.pad(b, ((0, n_pad),))
    return w2d.astype(jnp.bfloat16), b.reshape(1, -1).astype(jnp.float32)


def prepack_params(p):
    """One-time repack: bf16, (kh,kw,Cin) K-order, lane-dense N. Hoisted out of forward."""
    pk = {}
    pk["w1"], pk["b1"] = _pack_conv(p["w1"], p["b1"], k_pad=32 - 25, n_pad=LANE - DIM)
    pk["w2"], pk["b2"] = _pack_conv(p["w2"], p["b2"])
    pk["w3"], pk["b3"] = _pack_conv(p["w3"], p["b3"])
    # Final Linear: PyTorch flattens NCHW (c,h,w); permute to the NHWC (h,w,c)
    # flatten order used here, then pad the single output column to 128 lanes.
    wo = p["wo"].reshape(1, 4 * DIM, 4, 4)               # (1, C, H, W)
    wo = jnp.transpose(wo, (0, 2, 3, 1)).reshape(1, -1)  # (1, H*W*C)
    wo = jnp.pad(wo.T, ((0, 0), (0, LANE - 1)))          # (4096, 128)
    bo = jnp.pad(p["bo"], ((0, LANE - 1),)).reshape(1, LANE)
    pk["wo"] = wo.astype(jnp.bfloat16)
    pk["bo"] = bo.astype(jnp.float32)
    return pk


def forward(packed, x):
    # C=1, so the NCHW view(-1,1,28,28) is bitwise the same data as NHWC.
    x = x.reshape(-1, 28, 28, 1).astype(jnp.bfloat16)
    out = conv2d_relu_nhwc(x, packed["w1"], packed["b1"], k_pad=32 - 25)
    out = out[..., :DIM]                                     # drop zero-pad channels
    out = conv2d_relu_nhwc(out, packed["w2"], packed["b2"])  # (B, 7, 7, 128)
    out = conv2d_relu_nhwc(out, packed["w3"], packed["b3"])  # (B, 4, 4, 256)
    out = out.reshape(out.shape[0], 4 * 4 * 4 * DIM)         # NHWC flatten (wo permuted to match)
    out = pallas_matmul_bias(out, packed["wo"], packed["bo"],
                             relu=False, out_dtype=jnp.float32)  # (B, 128) lane-dense
    return out[:, 0]                                          # (B,)


if __name__ == "__main__":
    key = jax.random.PRNGKey(0)
    pkey, xkey = jax.random.split(key)
    params = init_params(pkey)
    packed = prepack_params(params)          # one-time weight repack (hoisted)
    x = jax.random.normal(xkey, (2, 784), jnp.float32)  # batch=2 flattened 28x28
    fwd = jax.jit(forward)
    y = fwd(packed, x)
    jax.block_until_ready(y)
    assert y.shape == (2,)
    assert bool(jnp.all(jnp.isfinite(y)))
    print("KERNEL_OK")
</pallas_src>

<mosaic_0001>
module attributes {stable_mosaic.version = 11 : i64} {
  func.func @_matmul_bias_kernel(%arg0: i32, %arg1: memref<200x32xbf16, #tpu.memory_space<vmem>>, %arg2: memref<32x128xbf16, #tpu.memory_space<vmem>>, %arg3: memref<1x128xf32, #tpu.memory_space<vmem>>, %arg4: memref<200x128xbf16, #tpu.memory_space<vmem>>) attributes {dimension_semantics = [#tpu.dimension_semantics<parallel>], iteration_bounds = array<i64: 2>, scalar_prefetch = 0 : i64, scratch_operands = 0 : i64, tpu.core_type = #tpu.core_type<tc>, window_params = [{transform_indices = @transform_0, window_bounds = array<i64: 200, 32>}, {pipeline_mode = #tpu.pipeline_mode<synchronous>, transform_indices = @transform_1, window_bounds = array<i64: 32, 128>}, {pipeline_mode = #tpu.pipeline_mode<synchronous>, transform_indices = @transform_2, window_bounds = array<i64: 1, 128>}, {transform_indices = @transform_3, window_bounds = array<i64: 200, 128>}]} {
    %c0 = arith.constant 0 : index
    %c0_0 = arith.constant 0 : index
    %0 = vector.load %arg1[%c0, %c0_0] : memref<200x32xbf16, #tpu.memory_space<vmem>>, vector<200x32xbf16>
    %c0_1 = arith.constant 0 : index
    %c0_2 = arith.constant 0 : index
    %1 = vector.load %arg2[%c0_1, %c0_2] : memref<32x128xbf16, #tpu.memory_space<vmem>>, vector<32x128xbf16>
    %cst = arith.constant dense<0.000000e+00> : vector<200x128xf32>
    %2 = tpu.matmul %0, %1, %cst {dimension_numbers = #tpu.dot_dimension_numbers<[1], [0], [0], [1], [0, 0, 1, 1], [], []>} : vector<200x32xbf16>, vector<32x128xbf16>, vector<200x128xf32> -> vector<200x128xf32>
    %c0_3 = arith.constant 0 : index
    %c0_4 = arith.constant 0 : index
    %3 = vector.load %arg3[%c0_3, %c0_4] : memref<1x128xf32, #tpu.memory_space<vmem>>, vector<1x128xf32>
    %4 = vector.broadcast %3 : vector<1x128xf32> to vector<200x128xf32>
    %5 = arith.addf %2, %4 : vector<200x128xf32>
    %cst_5 = arith.constant 0.000000e+00 : f32
    %6 = vector.broadcast %cst_5 : f32 to vector<200x128xf32>
    %7 = arith.maximumf %5, %6 : vector<200x128xf32>
    %8 = arith.truncf %7 : vector<200x128xf32> to vector<200x128xbf16>
    %c0_6 = arith.constant 0 : index
    %c0_7 = arith.constant 0 : index
    %9 = vector.load %arg4[%c0_6, %c0_7] : memref<200x128xbf16, #tpu.memory_space<vmem>>, vector<200x128xbf16>
    tpu.vector_store %arg4[%c0_6, %c0_7], %8 {strides = array<i32>} : memref<200x128xbf16, #tpu.memory_space<vmem>>, vector<200x128xbf16>,
    return
  }
  func.func @transform_0(%arg0: i32) -> (i32, i32) {
    %c0_i32 = arith.constant 0 : i32
    %c0_i32_0 = arith.constant 0 : i32
    return %arg0, %c0_i32 : i32, i32
  }
  func.func @transform_1(%arg0: i32) -> (i32, i32) {
    %c0_i32 = arith.constant 0 : i32
    %c0_i32_0 = arith.constant 0 : i32
    %c0_i32_1 = arith.constant 0 : i32
    return %c0_i32, %c0_i32_0 : i32, i32
  }
  func.func @transform_2(%arg0: i32) -> (i32, i32) {
    %c0_i32 = arith.constant 0 : i32
    %c0_i32_0 = arith.constant 0 : i32
    %c0_i32_1 = arith.constant 0 : i32
    return %c0_i32, %c0_i32_0 : i32, i32
  }
  func.func @transform_3(%arg0: i32) -> (i32, i32) {
    %c0_i32 = arith.constant 0 : i32
    %c0_i32_0 = arith.constant 0 : i32
    return %arg0, %c0_i32 : i32, i32
  }
}

module attributes {stable_mosaic.version = 11 : i64} {
  func.func @_matmul_bias_kernel(%arg0: i32, %arg1: memref<56x1600xbf16, #tpu.memory_space<vmem>>, %arg2: memref<1600x128xbf16, #tpu.memory_space<vmem>>, %arg3: memref<1x128xf32, #tpu.memory_space<vmem>>, %arg4: memref<56x128xbf16, #tpu.memory_space<vmem>>) attributes {dimension_semantics = [#tpu.dimension_semantics<parallel>], iteration_bounds = array<i64: 2>, scalar_prefetch = 0 : i64, scratch_operands = 0 : i64, tpu.core_type = #tpu.core_type<tc>, window_params = [{transform_indices = @transform_0, window_bounds = array<i64: 56, 1600>}, {pipeline_mode = #tpu.pipeline_mode<synchronous>, transform_indices = @transform_1, window_bounds = array<i64: 1600, 128>}, {pipeline_mode = #tpu.pipeline_mode<synchronous>, transform_indices = @transform_2, window_bounds = array<i64: 1, 128>}, {transform_indices = @transform_3, window_bounds = array<i64: 56, 128>}]} {
    %c0 = arith.constant 0 : index
    %c0_0 = arith.constant 0 : index
    %0 = vector.load %arg1[%c0, %c0_0] : memref<56x1600xbf16, #tpu.memory_space<vmem>>, vector<56x1600xbf16>
    %c0_1 = arith.constant 0 : index
    %c0_2 = arith.constant 0 : index
    %1 = vector.load %arg2[%c0_1, %c0_2] : memref<1600x128xbf16, #tpu.memory_space<vmem>>, vector<1600x128xbf16>
    %cst = arith.constant dense<0.000000e+00> : vector<56x128xf32>
    %2 = tpu.matmul %0, %1, %cst {dimension_numbers = #tpu.dot_dimension_numbers<[1], [0], [0], [1], [0, 0, 1, 1], [], []>} : vector<56x1600xbf16>, vector<1600x128xbf16>, vector<56x128xf32> -> vector<56x128xf32>
    %c0_3 = arith.constant 0 : index
    %c0_4 = arith.constant 0 : index
    %3 = vector.load %arg3[%c0_3, %c0_4] : memref<1x128xf32, #tpu.memory_space<vmem>>, vector<1x128xf32>
    %4 = vector.broadcast %3 : vector<1x128xf32> to vector<56x128xf32>
    %5 = arith.addf %2, %4 : vector<56x128xf32>
    %cst_5 = arith.constant 0.000000e+00 : f32
    %6 = vector.broadcast %cst_5 : f32 to vector<56x128xf32>
    %7 = arith.maximumf %5, %6 : vector<56x128xf32>
    %8 = arith.truncf %7 : vector<56x128xf32> to vector<56x128xbf16>
    %c0_6 = arith.constant 0 : index
    %c0_7 = arith.constant 0 : index
    %9 = vector.load %arg4[%c0_6, %c0_7] : memref<56x128xbf16, #tpu.memory_space<vmem>>, vector<56x128xbf16>
    tpu.vector_store %arg4[%c0_6, %c0_7], %8 {strides = array<i32>} : memref<56x128xbf16, #tpu.memory_space<vmem>>, vector<56x128xbf16>,
    return
  }
  func.func @transform_0(%arg0: i32) -> (i32, i32) {
    %c0_i32 = arith.constant 0 : i32
    %c0_i32_0 = arith.constant 0 : i32
    return %arg0, %c0_i32 : i32, i32
  }
  func.func @transform_1(%arg0: i32) -> (i32, i32) {
    %c0_i32 = arith.constant 0 : i32
    %c0_i32_0 = arith.constant 0 : i32
    %c0_i32_1 = arith.constant 0 : i32
    return %c0_i32, %c0_i32_0 : i32, i32
  }
  func.func @transform_2(%arg0: i32) -> (i32, i32) {
    %c0_i32 = arith.constant 0 : i32
    %c0_i32_0 = arith.constant 0 : i32
    %c0_i32_1 = arith.constant 0 : i32
    return %c0_i32, %c0_i32_0 : i32, i32
  }
  func.func @transform_3(%arg0: i32) -> (i32, i32) {
    %c0_i32 = arith.constant 0 : i32
    %c0_i32_0 = arith.constant 0 : i32
    return %arg0, %c0_i32 : i32, i32
  }
}

module attributes {stable_mosaic.version = 11 : i64} {
  func.func @_matmul_bias_kernel(%arg0: i32, %arg1: memref<16x3200xbf16, #tpu.memory_space<vmem>>, %arg2: memref<3200x256xbf16, #tpu.memory_space<vmem>>, %arg3: memref<1x256xf32, #tpu.memory_space<vmem>>, %arg4: memref<16x256xbf16, #tpu.memory_space<vmem>>) attributes {dimension_semantics = [#tpu.dimension_semantics<parallel>], iteration_bounds = array<i64: 2>, scalar_prefetch = 0 : i64, scratch_operands = 0 : i64, tpu.core_type = #tpu.core_type<tc>, window_params = [{transform_indices = @transform_0, window_bounds = array<i64: 16, 3200>}, {pipeline_mode = #tpu.pipeline_mode<synchronous>, transform_indices = @transform_1, window_bounds = array<i64: 3200, 256>}, {pipeline_mode = #tpu.pipeline_mode<synchronous>, transform_indices = @transform_2, window_bounds = array<i64: 1, 256>}, {transform_indices = @transform_3, window_bounds = array<i64: 16, 256>}]} {
    %c0 = arith.constant 0 : index
    %c0_0 = arith.constant 0 : index
    %0 = vector.load %arg1[%c0, %c0_0] : memref<16x3200xbf16, #tpu.memory_space<vmem>>, vector<16x3200xbf16>
    %c0_1 = arith.constant 0 : index
    %c0_2 = arith.constant 0 : index
    %1 = vector.load %arg2[%c0_1, %c0_2] : memref<3200x256xbf16, #tpu.memory_space<vmem>>, vector<3200x256xbf16>
    %cst = arith.constant dense<0.000000e+00> : vector<16x256xf32>
    %2 = tpu.matmul %0, %1, %cst {dimension_numbers = #tpu.dot_dimension_numbers<[1], [0], [0], [1], [0, 0, 1, 1], [], []>} : vector<16x3200xbf16>, vector<3200x256xbf16>, vector<16x256xf32> -> vector<16x256xf32>
    %c0_3 = arith.constant 0 : index
    %c0_4 = arith.constant 0 : index
    %3 = vector.load %arg3[%c0_3, %c0_4] : memref<1x256xf32, #tpu.memory_space<vmem>>, vector<1x256xf32>
    %4 = vector.broadcast %3 : vector<1x256xf32> to vector<16x256xf32>
    %5 = arith.addf %2, %4 : vector<16x256xf32>
    %cst_5 = arith.constant 0.000000e+00 : f32
    %6 = vector.broadcast %cst_5 : f32 to vector<16x256xf32>
    %7 = arith.maximumf %5, %6 : vector<16x256xf32>
    %8 = arith.truncf %7 : vector<16x256xf32> to vector<16x256xbf16>
    %c0_6 = arith.constant 0 : index
    %c0_7 = arith.constant 0 : index
    %9 = vector.load %arg4[%c0_6, %c0_7] : memref<16x256xbf16, #tpu.memory_space<vmem>>, vector<16x256xbf16>
    tpu.vector_store %arg4[%c0_6, %c0_7], %8 {strides = array<i32>} : memref<16x256xbf16, #tpu.memory_space<vmem>>, vector<16x256xbf16>,
    return
  }
  func.func @transform_0(%arg0: i32) -> (i32, i32) {
    %c0_i32 = arith.constant 0 : i32
    %c0_i32_0 = arith.constant 0 : i32
    return %arg0, %c0_i32 : i32, i32
  }
  func.func @transform_1(%arg0: i32) -> (i32, i32) {
    %c0_i32 = arith.constant 0 : i32
    %c0_i32_0 = arith.constant 0 : i32
    %c0_i32_1 = arith.constant 0 : i32
    return %c0_i32, %c0_i32_0 : i32, i32
  }
  func.func @transform_2(%arg0: i32) -> (i32, i32) {
    %c0_i32 = arith.constant 0 : i32
    %c0_i32_0 = arith.constant 0 : i32
    %c0_i32_1 = arith.constant 0 : i32
    return %c0_i32, %c0_i32_0 : i32, i32
  }
  func.func @transform_3(%arg0: i32) -> (i32, i32) {
    %c0_i32 = arith.constant 0 : i32
    %c0_i32_0 = arith.constant 0 : i32
    return %arg0, %c0_i32 : i32, i32
  }
}

module attributes {stable_mosaic.version = 11 : i64} {
  func.func @_matmul_bias_kernel(%arg0: i32, %arg1: memref<2x4096xbf16, #tpu.memory_space<vmem>>, %arg2: memref<4096x128xbf16, #tpu.memory_space<vmem>>, %arg3: memref<1x128xf32, #tpu.memory_space<vmem>>, %arg4: memref<2x128xf32, #tpu.memory_space<vmem>>) attributes {dimension_semantics = [#tpu.dimension_semantics<parallel>], iteration_bounds = array<i64: 1>, scalar_prefetch = 0 : i64, scratch_operands = 0 : i64, tpu.core_type = #tpu.core_type<tc>, window_params = [{transform_indices = @transform_0, window_bounds = array<i64: 2, 4096>}, {pipeline_mode = #tpu.pipeline_mode<synchronous>, transform_indices = @transform_1, window_bounds = array<i64: 4096, 128>}, {pipeline_mode = #tpu.pipeline_mode<synchronous>, transform_indices = @transform_2, window_bounds = array<i64: 1, 128>}, {transform_indices = @transform_3, window_bounds = array<i64: 2, 128>}]} {
    %c0 = arith.constant 0 : index
    %c0_0 = arith.constant 0 : index
    %0 = vector.load %arg1[%c0, %c0_0] : memref<2x4096xbf16, #tpu.memory_space<vmem>>, vector<2x4096xbf16>
    %c0_1 = arith.constant 0 : index
    %c0_2 = arith.constant 0 : index
    %1 = vector.load %arg2[%c0_1, %c0_2] : memref<4096x128xbf16, #tpu.memory_space<vmem>>, vector<4096x128xbf16>
    %cst = arith.constant dense<0.000000e+00> : vector<2x128xf32>
    %2 = tpu.matmul %0, %1, %cst {dimension_numbers = #tpu.dot_dimension_numbers<[1], [0], [0], [1], [0, 0, 1, 1], [], []>} : vector<2x4096xbf16>, vector<4096x128xbf16>, vector<2x128xf32> -> vector<2x128xf32>
    %c0_3 = arith.constant 0 : index
    %c0_4 = arith.constant 0 : index
    %3 = vector.load %arg3[%c0_3, %c0_4] : memref<1x128xf32, #tpu.memory_space<vmem>>, vector<1x128xf32>
    %4 = vector.broadcast %3 : vector<1x128xf32> to vector<2x128xf32>
    %5 = arith.addf %2, %4 : vector<2x128xf32>
    %c0_5 = arith.constant 0 : index
    %c0_6 = arith.constant 0 : index
    %6 = vector.load %arg4[%c0_5, %c0_6] : memref<2x128xf32, #tpu.memory_space<vmem>>, vector<2x128xf32>
    tpu.vector_store %arg4[%c0_5, %c0_6], %5 {strides = array<i32>} : memref<2x128xf32, #tpu.memory_space<vmem>>, vector<2x128xf32>,
    return
  }
  func.func @transform_0(%arg0: i32) -> (i32, i32) {
    %c0_i32 = arith.constant 0 : i32
    %c0_i32_0 = arith.constant 0 : i32
    return %arg0, %c0_i32 : i32, i32
  }
  func.func @transform_1(%arg0: i32) -> (i32, i32) {
    %c0_i32 = arith.constant 0 : i32
    %c0_i32_0 = arith.constant 0 : i32
    %c0_i32_1 = arith.constant 0 : i32
    return %c0_i32, %c0_i32_0 : i32, i32
  }
  func.func @transform_2(%arg0: i32) -> (i32, i32) {
    %c0_i32 = arith.constant 0 : i32
    %c0_i32_0 = arith.constant 0 : i32
    %c0_i32_1 = arith.constant 0 : i32
    return %c0_i32, %c0_i32_0 : i32, i32
  }
  func.func @transform_3(%arg0: i32) -> (i32, i32) {
    %c0_i32 = arith.constant 0 : i32
    %c0_i32_0 = arith.constant 0 : i32
    return %arg0, %c0_i32 : i32, i32
  }
}

</mosaic_0001>

<bundles_post_ra>
// kernel: forward.4
= control target key start
LH: loop header
LB: loop body
LE: loop exit
PB: predicated region body
PF: predicated region fallthrough
CT: control target
= control target key end

     0   :  { %8 = vsyncpa [#allocation3], 0  ;;  %s1828_s0 = inlined_call_operand.vmem [shape: bf16[392,32], index: 0, kind: input, shape index: {}]   ;;  %s1829_s1 = inlined_call_operand.hbm [shape: bf16[32,128], index: 1, kind: input, shape index: {}]   ;;  %s1830_s2 = inlined_call_operand.hbm [shape: f32[1,128], index: 2, kind: input, shape index: {}]   ;;  %s1831_s3 = inlined_call_operand.vmem [shape: bf16[392,128], index: 3, kind: output, shape index: {}]  }
   0x1   :  { %9 = vsyncpa [#allocation5], 0  ;;  %s1550_s12 = smov 0   ;;  %s1552_s13 = smov 0  }
   0x2   :  { %s1554_s14 = smov 0  }
   0x3 LB: > { %s1563_s15 = sadd.s32 4294967295, %s1490_s14   ;;  %s1565_s16 = sadd.s32 1, %s1490_s14   ;;  %s1490_s14 = sphi %s1554_s14, %s1840_s14   ;;  %s1486_s13 = sphi %s1552_s13, %s1839_s13   ;;  %s1482_s12 = sphi %s1550_s12, %s1838_s12  }
   0x4   : > { %s87_s17 = ssub.s32 %s1490_s14, %s1565_s16  ;;  %s90_s18 = sadd.s32 1, %s1486_s13 }
   0x5   : > { %p88_p0 = scmp.eq.s32.totalorder %s87_s17, 0  ;;  %p100_p1 = scmp.ne.s32.totalorder %s1486_s13, %s1482_s12 }
   0x6   : > { %p101_p2 = scmp.eq.s32.totalorder %s1563_s15, 1  ;;  %p996_p3 = scmp.ge.s32.totalorder %s1490_s14, 1 }
   0x7   : > { %s1573_s19 = scalar_select %p88_p0, %s1486_s13, %s90_s18  }
   0x8   : > { %p1575_p4 = por %p101_p2, %p100_p1  ;;  %p114_p5 = scmp.lt.s32.totalorder %s1490_s14, 3 }
   0x9   : > { %p1258_p6 = scmp.eq.s32.totalorder %s1563_s15, 0  ;;  %s1524_s22 = smov [#allocation2]  }
   0xa   : > { %p1580_p7 = pnand %p996_p3, %p114_p5  ;;  %s126_s23 = sshll.u32 %s1524_s22, 4  ;;  %s127_s23 = int_to_ptr.vmem [resolvable:$true] %s126_s23 }
   0xb   : > { %s1525_s25 = smov [#allocation4]   ;;  %s1387_s27 = scalar_lea.vmem %s127_s23, 256 }
   0xc   : > { %p1251_p8 = pneg %p1580_p7  ;;  %s140_s26 = sshll.u32 %s1525_s25, 4  ;;  %s141_s26 = int_to_ptr.vmem [resolvable:$true] %s140_s26 }
   0xd   : > { %p1388_p11 = scmp.ne.s32.totalorder %s127_s23, %s1387_s27  ;;  %p1395_p0 = scmp.lt.s32.totalorder %s127_s23, %s127_s23 }
   0xe   : > { %p1588_p9 = pnand %p1258_p6, %p1251_p8  ;;  %p1396_p1 = scmp.lt.s32.totalorder %s1387_s27, %s1387_s27 }
  0x10   : > { %p1378_p10 = pneg %p1588_p9  ;;  %p1397_p2 = por %p1396_p1, %p1395_p0 }
  0x12   : > { %p1390_p12 = pnand %p1388_p11, %p1378_p10 }
  0x14   : > { %p1391_p13 = pneg %p1390_p12 }
  0x16   : > { %p1398_p3 = pnand %p1397_p2, %p1391_p13 }
  0x18   : > { %1401 = shalt.err (!%p1398_p3)
}
  0x19   : > { %s1526_s28 = smov 64   ;;  %s1527_s29 = smov 4  }
  0x1a   : > { %1254 = dma.hbm_to_vmem [thread:$0]  (!%p1588_p9), %s1829_s1, 256, %s127_s23, [#allocation3], %s1526_s28, %s1526_s28, %s1527_s29  }
  0x1b   : > { %s1413_s5 = scalar_lea.vmem %s141_s26, 16  ;;  %s1420_s6 = scalar_lea.vmem %s141_s26, 32 }
  0x1c   : > { %p1414_p5 = scmp.ne.s32.totalorder %s141_s26, %s1413_s5  ;;  %p1421_p12 = scmp.lt.s32.totalorder %s141_s26, %s141_s26 }
  0x1d   : > { %p1422_p0 = scmp.lt.s32.totalorder %s1420_s6, %s1413_s5 }
  0x1e   : > { %p1416_p8 = pnand %p1414_p5, %p1378_p10 }
  0x1f   : > { %p1423_p13 = por %p1422_p0, %p1421_p12 }
  0x20   : > { %p1417_p11 = pneg %p1416_p8 }
  0x22   : > { %p1424_p1 = pnand %p1423_p13, %p1417_p11 }
  0x24   : > { %1427 = shalt.err (!%p1424_p1)
}
  0x25   : > { %1257 = dma.hbm_to_vmem [thread:$0]  (!%p1588_p9), %s1830_s2, 16, %s141_s26, [#allocation5]  }
  0x26   : > { %170 = sbr.rel (%p1580_p7) target bundleno = 378 (0x17a), region = 32 }
  0x2b   : > { %1473 = dma.done.wait (%p1258_p6), [#allocation3], 256  }
  0x2c   : > { %1475 = vsyncadd (%p1258_p6), [#allocation3], 4294967040 }
  0x2d   : > { %1477 = dma.done.wait (%p1258_p6), [#allocation5], 16  }
  0x2e   : > { %1479 = vsyncadd (%p1258_p6), [#allocation5], 4294967280  ;;  %s1621_s9 = smul.u32 25, %s1563_s15  ;;  %v1528_v0 = vmov 0.0   ;;  %vm1529_vm0 = vmmov 0   ;;  %v1357_v1 = vld [vmem:[#allocation2 + $0x8] sm:$0xff]  }
  0x2f   : > { %1182 = vmatprep.subr.bf16.mxu0 %v1528_v0  ;;  %1238 = vmatprep.subr.bf16.mxu1 %v1528_v0  ;;  %v1358_v2 = vld [vmem:[#allocation2] sm:$0xff]   ;;  %vm332_vm1 = vcmask 261120   ;;  %v1669_v16 = vld [vmem:[#allocation4] ss:$0 sm:$0xff]  ;;  %s198_s21 = sand.u32 1, %s1482_s12   ;;  %s1095_s24 = smul.u32 (%p1575_p4), 100, %s1563_s15 }
  0x30   : > { %1186 = vmatprep.mubr.msk.bf16.mxu0 %vm1529_vm0, %v1528_v0  ;;  %p206_p7 = scmp.lt.s32.totalorder %s1621_s9, 48  ;;  %1214 = vmatprep.mubr.msk.bf16.mxu1 %vm1529_vm0, %v1528_v0  ;;  %s1242_s22 = smul.u32 100, %s198_s21 }
  0x31   : > { %1183 = vmatpush3.bf16.msra.mxu0 %v1357_v1  ;;  %1240 = vmatpush3.bf16.msra.mxu1 %v1357_v1  ;;  %s667_s23 = ssub.s32 (%p1575_p4), 49, %s1621_s9  ;;  %s1719_s27 = scalar_lea.vmem (%p1575_p4), %s1831_s3, %s1095_s24  }
  0x32   : > { %s207_s10 = scalar_select %p206_p7, %s1621_s9, 48  ;;  %1184 = vmatprep.subr.bf16.mxu0 %v1528_v0  ;;  %1239 = vmatprep.subr.bf16.mxu1 %v1528_v0 }
  0x33   : > { %s1677_s12 = scalar_lea.vmem [#allocation6], %s1242_s22   ;;  %p668_p6 = scmp.lt.s32.totalorder (%p1575_p4), %s667_s23, 25 }
  0x34   : > { %s1003_s11 = sshll.u32 %s207_s10, 2 }
  0x35   : > { %s1630_s18 = scalar_lea.vmem %s1828_s0, %s1003_s11  ;;  %1185 = vmatpush3.bf16.msra.mxu0 %v1358_v2  ;;  %1241 = vmatpush3.bf16.msra.mxu1 %v1358_v2 }
  0x36   : > { %v1359_v3 = vld [vmem:[%s1630_s18] sm:$0xff]   ;;  %v1360_v4 = vld [vmem:[%s1630_s18 + $0x38] sm:$0xff]   ;;  %v1361_v5 = vld [vmem:[%s1630_s18 + $0x8] sm:$0xff]  }
  0x37   : > { %v1362_v6 = vld [vmem:[%s1630_s18 + $0x40] sm:$0xff]   ;;  %v1363_v7 = vld [vmem:[%s1630_s18 + $0x10] sm:$0xff]   ;;  %v1364_v8 = vld [vmem:[%s1630_s18 + $0x48] sm:$0xff]  }
  0x38   : > { %1187 = vmatmul.mubr.msk.bf16.vlgmr.msra.gmra.mxu0 %vm332_vm1, %v1359_v3  ;;  %1215 = vmatmul.mubr.msk.bf16.vlgmr.msra.gmra.mxu1 %vm332_vm1, %v1360_v4  ;;  %v1365_v9 = vld [vmem:[%s1630_s18 + $0x18] sm:$0xff]   ;;  %v1366_v10 = vld [vmem:[%s1630_s18 + $0x50] sm:$0xff]   ;;  %v1367_v11 = vld [vmem:[%s1630_s18 + $0x20] sm:$0xff]  }
  0x39   : > { %1190 = vmatprep.mubr.msk.bf16.mxu0 %vm1529_vm0, %v1528_v0  ;;  %1218 = vmatprep.mubr.msk.bf16.mxu1 %vm1529_vm0, %v1528_v0  ;;  %v1368_v12 = vld [vmem:[%s1630_s18 + $0x58] sm:$0xff]   ;;  %v1369_v13 = vld [vmem:[%s1630_s18 + $0x28] sm:$0xff]   ;;  %v1370_v14 = vld [vmem:[%s1630_s18 + $0x60] ss:$0 sps:$4 sm:$0xff]  }
  0x3a   : > { %v1371_v15 = vld [vmem:[%s1630_s18 + $0x30] sm:$0xff]  }
  0x40   : > { %1191 = vmatmul.mubr.msk.bf16.gmra.mxu0 %vm332_vm1, %v1361_v5  ;;  %1219 = vmatmul.mubr.msk.bf16.gmra.mxu1 %vm332_vm1, %v1362_v6 }
  0x41   : > { %1194 = vmatprep.mubr.msk.bf16.mxu0 %vm1529_vm0, %v1528_v0  ;;  %1222 = vmatprep.mubr.msk.bf16.mxu1 %vm1529_vm0, %v1528_v0 }
  0x48   : > { %1195 = vmatmul.mubr.msk.bf16.gmra.mxu0 %vm332_vm1, %v1363_v7  ;;  %1223 = vmatmul.mubr.msk.bf16.gmra.mxu1 %vm332_vm1, %v1364_v8 }
  0x49   : > { %1198 = vmatprep.mubr.msk.bf16.mxu0 %vm1529_vm0, %v1528_v0  ;;  %1226 = vmatprep.mubr.msk.bf16.mxu1 %vm1529_vm0, %v1528_v0 }
  0x50   : > { %1199 = vmatmul.mubr.msk.bf16.gmra.mxu0 %vm332_vm1, %v1365_v9  ;;  %1227 = vmatmul.mubr.msk.bf16.gmra.mxu1 %vm332_vm1, %v1366_v10 }
  0x51   : > { %1202 = vmatprep.mubr.msk.bf16.mxu0 %vm1529_vm0, %v1528_v0  ;;  %1230 = vmatprep.mubr.msk.bf16.mxu1 %vm1529_vm0, %v1528_v0 }
  0x58   : > { %1203 = vmatmul.mubr.msk.bf16.gmra.mxu0 %vm332_vm1, %v1367_v11  ;;  %1231 = vmatmul.mubr.msk.bf16.gmra.mxu1 %vm332_vm1, %v1368_v12 }
  0x59   : > { %1206 = vmatprep.mubr.msk.bf16.mxu0 %vm1529_vm0, %v1528_v0  ;;  %1234 = vmatprep.mubr.msk.bf16.mxu1 %vm1529_vm0, %v1528_v0 }
  0x60   : > { %1207 = vmatmul.mubr.msk.bf16.gmra.mxu0 %vm332_vm1, %v1369_v13  ;;  %1235 = vmatmul.mubr.msk.bf16.gmra.mxu1 %vm332_vm1, %v1370_v14 }
  0x61   : > { %1210 = vmatprep.mubr.msk.bf16.mxu0 %vm1529_vm0, %v1528_v0 }
  0x68   : > { %1211 = vmatmul.mubr.msk.bf16.gmra.mxu0 %vm332_vm1, %v1371_v15 }
  0xf8   : > { %v406_v17 = vpop.f32.mrf.mxu0  ;;  %v462_v18 = vpop.f32.mrf.mxu1 }
  0xf9   : > { %v463_v19 = vadd.f32 %v1669_v16, %v462_v18  ;;  %v407_v22 = vadd.f32 %v1669_v16, %v406_v17 }
  0xfa   : > { %v1188_v20 = vpop.f32.mrf.mxu0  ;;  %v1216_v21 = vpop.f32.mrf.mxu1 }
  0xfb   : > { %v522_v26 = vmax.f32 %v463_v19, 0.0  ;;  %v508_v30 = vmax.f32 %v407_v22, 0.0 }
  0xfc   : > { %v409_v23 = vpop.f32.mrf.mxu0  ;;  %v465_v24 = vpop.f32.mrf.mxu1 }
  0xfd   : > { %v410_v25 = vadd.f32 %v1669_v16, %v409_v23  ;;  %v466_v27 = vadd.f32 %v1669_v16, %v465_v24 }
  0xfe   : > { %v1189_v28 = vpop.f32.mrf.mxu0  ;;  %v1217_v29 = vpop.f32.mrf.mxu1 }
  0xff   : > { %v509_v31 = vmax.f32 %v410_v25, 0.0  ;;  %v523_v32 = vmax.f32 %v466_v27, 0.0 }
 0x100   : > { %v414_v33 = vpop.f32.mrf.mxu0  ;;  %v470_v34 = vpop.f32.mrf.mxu1 }
 0x101   : > { %v1099_v35 = vpack.c.bf16 %v509_v31, %v508_v30  ;;  %v1134_v36 = vpack.c.bf16 %v523_v32, %v522_v26  ;;  %v471_v37 = vadd.f32 %v1669_v16, %v470_v34  ;;  %v415_v40 = vadd.f32 %v1669_v16, %v414_v33 }
 0x102   : > { %v1192_v38 = vpop.f32.mrf.mxu0  ;;  %v1220_v39 = vpop.f32.mrf.mxu1 }
 0x103   : > { %1100 = vst [vmem:[%s1677_s12] sm:$0xff] %v1099_v35   ;;  %1162 = vst [vmem:[%s1677_s12 + $0x38] sm:$0xff] %v1134_v36   ;;  %v524_v44 = vmax.f32 %v471_v37, 0.0  ;;  %v510_v48 = vmax.f32 %v415_v40, 0.0 }
 0x104   : > { %v417_v41 = vpop.f32.mrf.mxu0  ;;  %v473_v42 = vpop.f32.mrf.mxu1 }
 0x105   : > { %v418_v43 = vadd.f32 %v1669_v16, %v417_v41  ;;  %v474_v45 = vadd.f32 %v1669_v16, %v473_v42 }
 0x106   : > { %v1193_v46 = vpop.f32.mrf.mxu0  ;;  %v1221_v47 = vpop.f32.mrf.mxu1 }
 0x107   : > { %v511_v49 = vmax.f32 %v418_v43, 0.0  ;;  %v525_v50 = vmax.f32 %v474_v45, 0.0 }
 0x108   : > { %v422_v51 = vpop.f32.mrf.mxu0  ;;  %v478_v52 = vpop.f32.mrf.mxu1 }
 0x109   : > { %v1104_v53 = vpack.c.bf16 %v511_v49, %v510_v48  ;;  %v1139_v54 = vpack.c.bf16 %v525_v50, %v524_v44  ;;  %v479_v55 = vadd.f32 %v1669_v16, %v478_v52  ;;  %v423_v58 = vadd.f32 %v1669_v16, %v422_v51 }
 0x10a   : > { %v1196_v56 = vpop.f32.mrf.mxu0  ;;  %v1224_v57 = vpop.f32.mrf.mxu1 }
 0x10b   : > { %1156 = vst [vmem:[%s1677_s12 + $0x8] sm:$0xff] %v1104_v53   ;;  %1163 = vst [vmem:[%s1677_s12 + $0x40] sm:$0xff] %v1139_v54   ;;  %v526_v62 = vmax.f32 %v479_v55, 0.0  ;;  %v512_v2 = vmax.f32 %v423_v58, 0.0 }
 0x10c   : > { %v425_v59 = vpop.f32.mrf.mxu0  ;;  %v481_v60 = vpop.f32.mrf.mxu1 }
 0x10d   : > { %v426_v61 = vadd.f32 %v1669_v16, %v425_v59  ;;  %v482_v63 = vadd.f32 %v1669_v16, %v481_v60 }
 0x10e   : > { %v1197_v0 = vpop.f32.mrf.mxu0  ;;  %v1225_v1 = vpop.f32.mrf.mxu1 }
 0x10f   : > { %v513_v3 = vmax.f32 %v426_v61, 0.0  ;;  %v527_v4 = vmax.f32 %v482_v63, 0.0 }
 0x110   : > { %v430_v5 = vpop.f32.mrf.mxu0  ;;  %v486_v6 = vpop.f32.mrf.mxu1 }
 0x111   : > { %v1109_v7 = vpack.c.bf16 %v513_v3, %v512_v2  ;;  %v1144_v8 = vpack.c.bf16 %v527_v4, %v526_v62  ;;  %v487_v9 = vadd.f32 %v1669_v16, %v486_v6  ;;  %v431_v12 = vadd.f32 %v1669_v16, %v430_v5 }
 0x112   : > { %v1200_v10 = vpop.f32.mrf.mxu0  ;;  %v1228_v11 = vpop.f32.mrf.mxu1 }
 0x113   : > { %1157 = vst [vmem:[%s1677_s12 + $0x10] sm:$0xff] %v1109_v7   ;;  %1164 = vst [vmem:[%s1677_s12 + $0x48] sm:$0xff] %v1144_v8   ;;  %v528_v17 = vmax.f32 %v487_v9, 0.0  ;;  %v514_v21 = vmax.f32 %v431_v12, 0.0 }
 0x114   : > { %v433_v13 = vpop.f32.mrf.mxu0  ;;  %v489_v14 = vpop.f32.mrf.mxu1 }
 0x115   : > { %v434_v15 = vadd.f32 %v1669_v16, %v433_v13  ;;  %v490_v18 = vadd.f32 %v1669_v16, %v489_v14 }
 0x116   : > { %v1201_v19 = vpop.f32.mrf.mxu0  ;;  %v1229_v20 = vpop.f32.mrf.mxu1 }
 0x117   : > { %v515_v22 = vmax.f32 %v434_v15, 0.0  ;;  %v529_v23 = vmax.f32 %v490_v18, 0.0 }
 0x118   : > { %v438_v24 = vpop.f32.mrf.mxu0  ;;  %v494_v25 = vpop.f32.mrf.mxu1 }
 0x119   : > { %v1114_v26 = vpack.c.bf16 %v515_v22, %v514_v21  ;;  %v1149_v27 = vpack.c.bf16 %v529_v23, %v528_v17  ;;  %v495_v28 = vadd.f32 %v1669_v16, %v494_v25  ;;  %v439_v31 = vadd.f32 %v1669_v16, %v438_v24 }
 0x11a   : > { %v1204_v29 = vpop.f32.mrf.mxu0  ;;  %v1232_v30 = vpop.f32.mrf.mxu1 }
 0x11b   : > { %1158 = vst [vmem:[%s1677_s12 + $0x18] sm:$0xff] %v1114_v26   ;;  %1165 = vst [vmem:[%s1677_s12 + $0x50] sm:$0xff] %v1149_v27   ;;  %v530_v35 = vmax.f32 %v495_v28, 0.0  ;;  %v516_v39 = vmax.f32 %v439_v31, 0.0 }
 0x11c   : > { %v441_v32 = vpop.f32.mrf.mxu0  ;;  %v497_v33 = vpop.f32.mrf.mxu1 }
 0x11d   : > { %v442_v34 = vadd.f32 %v1669_v16, %v441_v32  ;;  %v498_v36 = vadd.f32 %v1669_v16, %v497_v33 }
 0x11e   : > { %v1205_v37 = vpop.f32.mrf.mxu0  ;;  %v1233_v38 = vpop.f32.mrf.mxu1 }
 0x11f   : > { %v517_v40 = vmax.f32 %v442_v34, 0.0  ;;  %v531_v41 = vmax.f32 %v498_v36, 0.0 }
 0x120   : > { %v446_v42 = vpop.f32.mrf.mxu0  ;;  %v502_v43 = vpop.f32.mrf.mxu1 }
 0x121   : > { %v1119_v44 = vpack.c.bf16 %v517_v40, %v516_v39  ;;  %v1154_v45 = vpack.c.bf16 %v531_v41, %v530_v35  ;;  %v503_v46 = vadd.f32 %v1669_v16, %v502_v43  ;;  %v447_v49 = vadd.f32 %v1669_v16, %v446_v42 }
 0x122   : > { %v1208_v47 = vpop.f32.mrf.mxu0  ;;  %v1236_v48 = vpop.f32.mrf.mxu1 }
 0x123   : > { %1159 = vst [vmem:[%s1677_s12 + $0x20] sm:$0xff] %v1119_v44   ;;  %1166 = vst [vmem:[%s1677_s12 + $0x58] sm:$0xff] %v1154_v45   ;;  %v532_v50 = vmax.f32 %v503_v46, 0.0  ;;  %v518_v57 = vmax.f32 %v447_v49, 0.0 }
 0x124   : > { %v449_v51 = vpop.f32.mrf.mxu0  ;;  %v505_v52 = vpop.f32.mrf.mxu1 }
 0x125   : > { %v450_v53 = vadd.f32 %v1669_v16, %v449_v51  ;;  %v1094_v54 = vpack.c.bf16 %v532_v50, %v532_v50 }
 0x126   : > { %v1209_v55 = vpop.f32.mrf.mxu0  ;;  %v1237_v56 = vpop.f32.mrf.mxu1 }
 0x127   : > { %v519_v58 = vmax.f32 %v450_v53, 0.0  ;;  %658 = vst [vmem:[%s1677_s12 + $0x60] sm:$0xf] %v1094_v54 }
 0x128   : > { %v454_v59 = vpop.f32.mrf.mxu0 }
 0x129   : > { %v1124_v60 = vpack.c.bf16 %v519_v58, %v518_v57  ;;  %v455_v62 = vadd.f32 %v1669_v16, %v454_v59 }
 0x12a   : > { %v1212_v61 = vpop.f32.mrf.mxu0 }
 0x12b   : > { %1160 = vst [vmem:[%s1677_s12 + $0x28] sm:$0xff] %v1124_v60   ;;  %v520_v2 = vmax.f32 %v455_v62, 0.0 }
 0x12c   : > { %v457_v63 = vpop.f32.mrf.mxu0 }
 0x12d   : > { %v458_v0 = vadd.f32 %v1669_v16, %v457_v63 }
 0x12e   : > { %v1213_v1 = vpop.f32.mrf.mxu0 }
 0x12f   : > { %v521_v3 = vmax.f32 %v458_v0, 0.0  ;;  %665 = sbr.rel (!%p1575_p4) target bundleno = 378 (0x17a), region = 44 }
 0x131   : > { %v1129_v4 = vpack.c.bf16 %v521_v3, %v520_v2 }
 0x133   : > { %1161 = vst [vmem:[%s1677_s12 + $0x30] sm:$0xff] %v1129_v4  }
 0x134   : > { %s1842_s23 = smov (!%p668_p6, %s667_s23), 25 }
 0x135   : > { %s1058_s28 = sshll.u32 %s1842_s23, 6 }
 0x136   : > { %p1061_p9 = scmp.eq.s32.totalorder %s1058_s28, 0 }
 0x137   : > { %1372 = sdivrem.u32 (!%p1061_p9), %s1842_s23, 25 }
 0x138   : > { %676 = sbr.rel (%p1061_p9) target bundleno = 378 (0x17a), region = 48 }
 0x140   : > { %s1725_s20 = spop.drf %1372 }
 0x141   : > { %p1062_p4 = scmp.le.s32.totalorder %s1725_s20, 0 }
 0x142   : > { %s1835_s15 = smov (!%p1062_p4), %s1719_s27  ;;  %s1836_s29 = smov (!%p1062_p4), %s1677_s12 }
 0x143   : > { %933 = sbr.rel (%p1062_p4) target bundleno = 353 (0x161), region = 121  ;;  %s1734_s30 = smov (!%p1062_p4), 0  }
 0x144   : > { %s1736_s4 = smov (!%p1062_p4), 0  }
 0x148 LB: >> { %v694_v16 = vld [vmem:[%s1498_s29] sm:$0xf]  ;;  %v696_v5 = vld [vmem:[%s1498_s29 + $0x4] sm:$0xf]  ;;  %v698_v6 = vld [vmem:[%s1498_s29 + $0x8] sm:$0xf]  ;;  %s1506_s4 = sphi %s1736_s4, %s688_s4   ;;  %s1502_s30 = sphi %s1734_s30, %s1837_s30   ;;  %s1498_s29 = sphi %s1836_s29, %s749_s29   ;;  %s1494_s15 = sphi %s1835_s15, %s750_s15  }
 0x149   : >> { %695 = vst [vmem:[%s1494_s15] sm:$0xf] %v694_v16  ;;  %697 = vst [vmem:[%s1494_s15 + $0x4] sm:$0xf] %v696_v5  ;;  %v700_v7 = vld [vmem:[%s1498_s29 + $0xc] sm:$0xf]  ;;  %s744_s5 = sadd.s32 1, %s1502_s30 }
 0x14a   : >> { %699 = vst [vmem:[%s1494_s15 + $0x8] sm:$0xf] %v698_v6  ;;  %v702_v8 = vld [vmem:[%s1498_s29 + $0x10] sm:$0xf]  ;;  %v704_v9 = vld [vmem:[%s1498_s29 + $0x14] sm:$0xf]  ;;  %p745_p10 = scmp.ge.s32.totalorder %s744_s5, %s1725_s20 }
 0x14b   : >> { %701 = vst [vmem:[%s1494_s15 + $0xc] sm:$0xf] %v700_v7  ;;  %703 = vst [vmem:[%s1494_s15 + $0x10] sm:$0xf] %v702_v8  ;;  %v706_v10 = vld [vmem:[%s1498_s29 + $0x18] sm:$0xf] }
 0x14c   : >> { %705 = vst [vmem:[%s1494_s15 + $0x14] sm:$0xf] %v704_v9  ;;  %v708_v11 = vld [vmem:[%s1498_s29 + $0x1c] sm:$0xf]  ;;  %v710_v12 = vld [vmem:[%s1498_s29 + $0x20] sm:$0xf] }
 0x14d   : >> { %707 = vst [vmem:[%s1494_s15 + $0x18] sm:$0xf] %v706_v10  ;;  %709 = vst [vmem:[%s1494_s15 + $0x1c] sm:$0xf] %v708_v11  ;;  %v712_v13 = vld [vmem:[%s1498_s29 + $0x24] sm:$0xf] }
 0x14e   : >> { %711 = vst [vmem:[%s1494_s15 + $0x20] sm:$0xf] %v710_v12  ;;  %v714_v14 = vld [vmem:[%s1498_s29 + $0x28] sm:$0xf]  ;;  %v716_v15 = vld [vmem:[%s1498_s29 + $0x2c] sm:$0xf] }
 0x14f   : >> { %713 = vst [vmem:[%s1494_s15 + $0x24] sm:$0xf] %v712_v13  ;;  %715 = vst [vmem:[%s1494_s15 + $0x28] sm:$0xf] %v714_v14  ;;  %v718_v17 = vld [vmem:[%s1498_s29 + $0x30] sm:$0xf] }
 0x150   : >> { %717 = vst [vmem:[%s1494_s15 + $0x2c] sm:$0xf] %v716_v15  ;;  %v720_v18 = vld [vmem:[%s1498_s29 + $0x34] sm:$0xf]  ;;  %v722_v19 = vld [vmem:[%s1498_s29 + $0x38] sm:$0xf] }
 0x151   : >> { %719 = vst [vmem:[%s1494_s15 + $0x30] sm:$0xf] %v718_v17  ;;  %721 = vst [vmem:[%s1494_s15 + $0x34] sm:$0xf] %v720_v18  ;;  %v724_v20 = vld [vmem:[%s1498_s29 + $0x3c] sm:$0xf] }
 0x152   : >> { %723 = vst [vmem:[%s1494_s15 + $0x38] sm:$0xf] %v722_v19  ;;  %v726_v21 = vld [vmem:[%s1498_s29 + $0x40] sm:$0xf]  ;;  %v728_v22 = vld [vmem:[%s1498_s29 + $0x44] sm:$0xf] }
 0x153   : >> { %725 = vst [vmem:[%s1494_s15 + $0x3c] sm:$0xf] %v724_v20  ;;  %727 = vst [vmem:[%s1494_s15 + $0x40] sm:$0xf] %v726_v21  ;;  %v730_v23 = vld [vmem:[%s1498_s29 + $0x48] sm:$0xf] }
 0x154   : >> { %729 = vst [vmem:[%s1494_s15 + $0x44] sm:$0xf] %v728_v22  ;;  %v732_v24 = vld [vmem:[%s1498_s29 + $0x4c] sm:$0xf]  ;;  %v734_v25 = vld [vmem:[%s1498_s29 + $0x50] sm:$0xf] }
 0x155   : >> { %731 = vst [vmem:[%s1494_s15 + $0x48] sm:$0xf] %v730_v23  ;;  %733 = vst [vmem:[%s1494_s15 + $0x4c] sm:$0xf] %v732_v24  ;;  %v736_v26 = vld [vmem:[%s1498_s29 + $0x54] sm:$0xf] }
 0x156   : >> { %735 = vst [vmem:[%s1494_s15 + $0x50] sm:$0xf] %v734_v25  ;;  %v738_v27 = vld [vmem:[%s1498_s29 + $0x58] sm:$0xf]  ;;  %v740_v28 = vld [vmem:[%s1498_s29 + $0x5c] sm:$0xf] }
 0x157   : >> { %737 = vst [vmem:[%s1494_s15 + $0x54] sm:$0xf] %v736_v26  ;;  %739 = vst [vmem:[%s1494_s15 + $0x58] sm:$0xf] %v738_v27  ;;  %v742_v29 = vld [vmem:[%s1498_s29 + $0x60] sm:$0xf] }
 0x158   : >> { %741 = vst [vmem:[%s1494_s15 + $0x5c] sm:$0xf] %v740_v28  ;;  %743 = vst [vmem:[%s1494_s15 + $0x60] sm:$0xf] %v742_v29  ;;  %s1844_s5 = smov (%p745_p10, %s744_s5), 0  ;;  %s688_s4 = sadd.s32 1, %s1506_s4  }
 0x159   : >> { %s747_s6 = smul.u32 100, %s1844_s5  ;;  %p687_p2 = scmp.ge.s32.totalorder %s688_s4, %s1725_s20 }
 0x15a   : >> { %s1837_s30 = smov %s1844_s5 }
 0x15b   : >> { %s749_s29 = scalar_lea.vmem %s1677_s12, %s747_s6 [#allocation6]   ;;  %s750_s15 = scalar_lea.vmem %s1719_s27, %s747_s6  }
 0x15c   : > { %690 = sbr.rel (!%p687_p2) target bundleno = 328 (0x148), region = 127 }
 0x161 PF: > { %1374 = sdivrem.u32 %s1842_s23, 25 }
 0x162   : > { %s1063_s7 = smul.u32 100, %s1725_s20 }
 0x164   : > { %s755_s8 = scalar_lea.vmem %s1677_s12, %s1063_s7 [#allocation6]   ;;  %s757_s9 = scalar_lea.vmem %s1719_s27, %s1063_s7  }
 0x16a   : > { %s1375_s10 = spop.drf %1374 }
 0x16b   : > { %p1065_p3 = scmp.le.s32.totalorder %s1375_s10, 0 }
 0x16c   : > { %s1508_s11 = smov (!%p1065_p3), %s757_s9   ;;  %s1512_s14 = smov (!%p1065_p3), %s755_s8  }
 0x16d   : > { %947 = sbr.rel (%p1065_p3) target bundleno = 378 (0x17a), region = 132  ;;  %s1516_s17 = smov (!%p1065_p3), 0  }
 0x16e   : > { %s1520_s18 = smov (!%p1065_p3), 0  }
 0x172 LB: >> { %v767_v30 = vld [vmem:[%s1514_s14] sm:$0xf]  ;;  %s769_s21 = sadd.s32 1, %s1518_s17  ;;  %s761_s18 = sadd.s32 1, %s1522_s18   ;;  %s1522_s18 = sphi %s1520_s18, %s761_s18   ;;  %s1518_s17 = sphi %s1516_s17, %s1517_s17   ;;  %s1514_s14 = sphi %s1512_s14, %s774_s14   ;;  %s1510_s11 = sphi %s1508_s11, %s775_s11  }
 0x173   : >> { %768 = vst [vmem:[%s1510_s11] sm:$0xf] %v767_v30  ;;  %p770_p5 = scmp.ge.s32.totalorder %s769_s21, %s1375_s10  ;;  %p760_p8 = scmp.ge.s32.totalorder %s761_s18, %s1375_s10 }
 0x175   : >> { %s1846_s21 = smov (%p770_p5, %s769_s21), 0  ;;  %763 = sbr.rel (!%p760_p8) target bundleno = 370 (0x172), region = 138 }
 0x176   : >> { %s1066_s22 = sshll.u32 %s1846_s21, 2  ;;  %s1517_s17 = smov %s1846_s21  }
 0x177   : >> { %s774_s14 = scalar_lea.vmem %s755_s8, %s1066_s22 [#allocation6]   ;;  %s775_s11 = scalar_lea.vmem %s757_s9, %s1066_s22  }
 0x17a PF: > { %p12_p11 = scmp.ge.s32.totalorder %s1565_s16, 4   ;;  %s1838_s12 = smov %s1486_s13 }
 0x17b   : > { %s1839_s13 = smov %s1573_s19  ;;  %s1840_s14 = smov %s1565_s16 }
 0x17c   :  { %14 = sbr.rel (!%p12_p11) target bundleno = 3 (0x3), region = 149 }
 0x181   :  { %886 = vsyncpa [#allocation3], 1 }
 0x182   :  { %888 = vsyncpa [#allocation3 + $0x1], 1 }
 0x183   :  { %889 = vsyncpa [#allocation5], 1 }

// kernel: forward.5
= control target key start
LH: loop header
LB: loop body
LE: loop exit
PB: predicated region body
PF: predicated region fallthrough
CT: control target
= control target key end

     0   :  { %s2894_s12 = smov 0   ;;  %s2896_s13 = smov 0   ;;  %s3411_s0 = inlined_call_operand.vmem [shape: bf16[98,1600], index: 0, kind: input, shape index: {}]   ;;  %s3412_s1 = inlined_call_operand.vmem [shape: bf16[1600,128], index: 1, kind: input, shape index: {}]   ;;  %s3413_s2 = inlined_call_operand.vmem [shape: f32[1,128], index: 2, kind: input, shape index: {}]   ;;  %s3414_s3 = inlined_call_operand.vmem [shape: bf16[98,128], index: 3, kind: output, shape index: {}]  }
   0x1   :  { %s2898_s14 = smov 0  }
   0x2 LB: > { %s2907_s15 = sadd.s32 4294967295, %s2840_s14   ;;  %s2909_s16 = sadd.s32 1, %s2840_s14   ;;  %s2840_s14 = sphi %s2898_s14, %s3429_s14   ;;  %s2836_s13 = sphi %s2896_s13, %s3428_s13   ;;  %s2832_s12 = sphi %s2894_s12, %s3427_s12  }
   0x3   : > { %s85_s17 = ssub.s32 %s2840_s14, %s2909_s16  ;;  %s88_s18 = sadd.s32 1, %s2836_s13 }
   0x4   : > { %p86_p0 = scmp.eq.s32.totalorder %s85_s17, 0  ;;  %p98_p1 = scmp.ne.s32.totalorder %s2836_s13, %s2832_s12 }
   0x5   : > { %p99_p2 = scmp.eq.s32.totalorder %s2907_s15, 1  ;;  %p2046_p3 = scmp.ge.s32.totalorder %s2840_s14, 1 }
   0x6   : > { %s2917_s19 = scalar_select %p86_p0, %s2836_s13, %s88_s18  }
   0x7   : > { %p2919_p4 = por %p99_p2, %p98_p1  ;;  %p149_p5 = scmp.lt.s32.totalorder %s2840_s14, 3 }
   0x9   : > { %p150_p6 = pnand %p2046_p3, %p149_p5 }
   0xb   : > { %153 = sbr.rel (%p150_p6) target bundleno = 411 (0x19b), region = 32 }
  0x10   : > { %v2612_v0 = vld [vmem:[%s3412_s1 + $0x78] sm:$0xff]   ;;  %v2616_v4 = vld [vmem:[%s3412_s1 + $0x70] sm:$0xff]   ;;  %v2620_v8 = vld [vmem:[%s3412_s1 + $0x68] sm:$0xff]   ;;  %s2966_s28 = smul.u32 7, %s2907_s15  ;;  %vm1297_vm0 = vcmask 523264  }
  0x11   : > { %v2613_v1 = vld [vmem:[%s3412_s1 + $0xf8] sm:$0xff]   ;;  %2249 = vmatprep.subr.bf16.mxu0 %v2612_v0  ;;  %v2617_v5 = vld [vmem:[%s3412_s1 + $0xf0] sm:$0xff]   ;;  %v2621_v9 = vld [vmem:[%s3412_s1 + $0xe8] sm:$0xff]   ;;  %s2231_s10 = smul.u32 (%p2919_p4), 28, %s2907_s15 }
  0x12   : > { %v2614_v2 = vld [vmem:[%s3412_s1 + $0x38] sm:$0xff]   ;;  %2289 = vmatprep.subr.bf16.mxu1 %v2613_v1  ;;  %v2618_v6 = vld [vmem:[%s3412_s1 + $0x30] sm:$0xff]   ;;  %v2622_v10 = vld [vmem:[%s3412_s1 + $0x28] sm:$0xff]   ;;  %p184_p7 = scmp.lt.s32.totalorder %s2966_s28, 12  ;;  %s1809_s9 = ssub.s32 (%p2919_p4), 13, %s2966_s28 }
  0x13   : > { %v2615_v3 = vld [vmem:[%s3412_s1 + $0xb8] sm:$0xff]   ;;  %2250 = vmatpush3.bf16.msra.mxu0 %v2614_v2  ;;  %v2619_v7 = vld [vmem:[%s3412_s1 + $0xb0] sm:$0xff]   ;;  %v2623_v11 = vld [vmem:[%s3412_s1 + $0xa8] sm:$0xff]   ;;  %p1810_p8 = scmp.lt.s32.totalorder (%p2919_p4), %s1809_s9, 7  ;;  %s3362_s17 = scalar_lea.vmem (%p2919_p4), %s3414_s3, %s2231_s10  }
  0x14   : > { %2290 = vmatpush3.bf16.msra.mxu1 %v2615_v3  ;;  %2251 = vmatprep.subr.bf16.mxu0 %v2616_v4  ;;  %v2624_v12 = vld [vmem:[%s3412_s1 + $0x60] sm:$0xff]   ;;  %v2628_v16 = vld [vmem:[%s3412_s1 + $0x58] sm:$0xff]   ;;  %v2632_v20 = vld [vmem:[%s3412_s1 + $0x50] sm:$0xff]   ;;  %s185_s24 = scalar_select %p184_p7, %s2966_s28, 12 }
  0x15   : > { %2291 = vmatprep.subr.bf16.mxu1 %v2617_v5  ;;  %v2625_v13 = vld [vmem:[%s3412_s1 + $0xe0] sm:$0xff]   ;;  %v2629_v17 = vld [vmem:[%s3412_s1 + $0xd8] sm:$0xff]   ;;  %v2633_v21 = vld [vmem:[%s3412_s1 + $0xd0] sm:$0xff]  }
  0x16   : > { %v2626_v14 = vld [vmem:[%s3412_s1 + $0x20] sm:$0xff]   ;;  %v2630_v18 = vld [vmem:[%s3412_s1 + $0x18] sm:$0xff]   ;;  %v2634_v22 = vld [vmem:[%s3412_s1 + $0x10] sm:$0xff]   ;;  %s2522_s7 = smul.u32 52, %s185_s24 }
  0x17   : > { %2252 = vmatpush3.bf16.msra.mxu0 %v2618_v6  ;;  %v2627_v15 = vld [vmem:[%s3412_s1 + $0xa0] sm:$0xff]   ;;  %v2631_v19 = vld [vmem:[%s3412_s1 + $0x98] sm:$0xff]   ;;  %v2635_v23 = vld [vmem:[%s3412_s1 + $0x90] sm:$0xff]  }
  0x18   : > { %2292 = vmatpush3.bf16.msra.mxu1 %v2619_v7  ;;  %2253 = vmatprep.subr.bf16.mxu0 %v2620_v8  ;;  %v2636_v24 = vld [vmem:[%s3412_s1 + $0x48] sm:$0xff]   ;;  %v2640_v28 = vld [vmem:[%s3412_s1 + $0x40] sm:$0xff]   ;;  %s3021_s24 = scalar_lea.vmem %s3411_s0, %s2522_s7  ;;  %v2650_v36 = vld [vmem:[%s3412_s1 + $0x178] sm:$0xff]  }
  0x19   : > { %2293 = vmatprep.subr.bf16.mxu1 %v2621_v9  ;;  %v2637_v25 = vld [vmem:[%s3412_s1 + $0xc8] sm:$0xff]   ;;  %v2641_v29 = vld [vmem:[%s3412_s1 + $0xc0] sm:$0xff]   ;;  %v2651_v37 = vld [vmem:[%s3412_s1 + $0x1f8] sm:$0xff]  }
  0x1a   : > { %v2638_v26 = vld [vmem:[%s3412_s1 + $0x8] sm:$0xff]   ;;  %v2642_v30 = vld [vmem:[%s3412_s1] sm:$0xff]   ;;  %v2652_v38 = vld [vmem:[%s3412_s1 + $0x138] sm:$0xff]  }
  0x1b   : > { %2254 = vmatpush3.bf16.msra.mxu0 %v2622_v10  ;;  %v2639_v27 = vld [vmem:[%s3412_s1 + $0x88] sm:$0xff]   ;;  %v2643_v31 = vld [vmem:[%s3412_s1 + $0x80] sm:$0xff]   ;;  %v2653_v39 = vld [vmem:[%s3412_s1 + $0x1b8] sm:$0xff]  }
  0x1c   : > { %2294 = vmatpush3.bf16.msra.mxu1 %v2623_v11  ;;  %2255 = vmatprep.subr.bf16.mxu0 %v2624_v12  ;;  %v2644_v32 = vld [vmem:[%s3021_s24] ss:$52 sps:$4 sm:$0xff]   ;;  %v2646_v33 = vld [vmem:[%s3021_s24 + $0x4] ss:$52 sps:$4 sm:$0xff]   ;;  %v2647_v34 = vld [vmem:[%s3021_s24 + $0x8] ss:$52 sps:$4 sm:$0xff]  }
  0x1d   : > { %2295 = vmatprep.subr.bf16.mxu1 %v2625_v13  ;;  %v2649_v35 = vld [vmem:[%s3021_s24 + $0xc] ss:$52 sps:$4 sm:$0xff]   ;;  %1342 = vmatprep.mubr.bf16.mxu0 %v2646_v33  ;;  %v2654_v40 = vld [vmem:[%s3412_s1 + $0x170] sm:$0xff]   ;;  %v2662_v46 = vld [vmem:[%s3021_s24 + $0x68] ss:$52 sps:$4 sm:$0xff]  }
  0x1e   : > { %1406 = vmatprep.mubr.bf16.mxu1 %v2649_v35  ;;  %v2655_v41 = vld [vmem:[%s3412_s1 + $0x1f0] sm:$0xff]   ;;  %v2658_v44 = vld [vmem:[%s3021_s24 + $0x6c] ss:$52 sps:$4 sm:$0xff]   ;;  %v2678_v60 = vld [vmem:[%s3412_s1 + $0x158] sm:$0xff]  }
  0x1f   : > { %2256 = vmatpush3.bf16.msra.mxu0 %v2626_v14  ;;  %v2656_v42 = vld [vmem:[%s3412_s1 + $0x130] sm:$0xff]   ;;  %v2664_v48 = vld [vmem:[%s3412_s1 + $0x168] sm:$0xff]   ;;  %v2668_v52 = vld [vmem:[%s3412_s1 + $0x160] sm:$0xff]  }
  0x20   : > { %2296 = vmatpush3.bf16.msra.mxu1 %v2627_v15  ;;  %2257 = vmatprep.subr.bf16.mxu0 %v2628_v16  ;;  %v2657_v43 = vld [vmem:[%s3412_s1 + $0x1b0] sm:$0xff]   ;;  %v2665_v49 = vld [vmem:[%s3412_s1 + $0x1e8] sm:$0xff]   ;;  %v2669_v53 = vld [vmem:[%s3412_s1 + $0x1e0] sm:$0xff]  }
  0x21   : > { %2297 = vmatprep.subr.bf16.mxu1 %v2629_v17  ;;  %v2660_v45 = vld [vmem:[%s3021_s24 + $0x74] ss:$52 sps:$4 sm:$0xff]   ;;  %v2663_v47 = vld [vmem:[%s3021_s24 + $0x70] ss:$52 sps:$4 sm:$0xff]   ;;  %v2677_v59 = vld [vmem:[%s3021_s24 + $0xd8] ss:$52 sps:$4 sm:$0xff]  }
  0x22   : > { %v2666_v50 = vld [vmem:[%s3412_s1 + $0x128] sm:$0xff]   ;;  %v2670_v54 = vld [vmem:[%s3412_s1 + $0x120] sm:$0xff]   ;;  %v2674_v57 = vld [vmem:[%s3021_s24 + $0xdc] ss:$52 sps:$4 sm:$0xff]  }
  0x23   : > { %2258 = vmatpush3.bf16.msra.mxu0 %v2630_v18  ;;  %v2667_v51 = vld [vmem:[%s3412_s1 + $0x1a8] sm:$0xff]   ;;  %v2671_v55 = vld [vmem:[%s3412_s1 + $0x1a0] sm:$0xff]   ;;  %v2679_v61 = vld [vmem:[%s3412_s1 + $0x1d8] sm:$0xff]  }
  0x24   : > { %2298 = vmatpush3.bf16.msra.mxu1 %v2631_v19  ;;  %2259 = vmatprep.subr.bf16.mxu0 %v2632_v20  ;;  %v2672_v56 = vld [vmem:[%s3021_s24 + $0xd4] ss:$52 sps:$4 sm:$0xff]   ;;  %v2676_v58 = vld [vmem:[%s3021_s24 + $0xd0] ss:$52 sps:$4 sm:$0xff]   ;;  %v2680_v62 = vld [vmem:[%s3412_s1 + $0x118] sm:$0xff]  }
  0x25   : > { %2299 = vmatprep.subr.bf16.mxu1 %v2633_v21  ;;  %v2681_v63 = vld [vmem:[%s3412_s1 + $0x198] sm:$0xff]   ;;  %v2682_v0 = vld [vmem:[%s3412_s1 + $0x150] sm:$0xff]   ;;  %v244_v5 = vld [vmem:[%s3021_s24 + $0x140] sm:$0xff] }
  0x26   : > { %v2683_v1 = vld [vmem:[%s3412_s1 + $0x1d0] sm:$0xff]   ;;  %v243_v4 = vld [vmem:[%s3021_s24 + $0x138] sm:$0xff]  ;;  %v2091_v7 = vcombine.high %v244_v5, %v244_v5  ;;  %v2090_v9 = vcombine.low %v244_v5, %v244_v5  ;;  %v2690_v10 = vld [vmem:[%s3412_s1 + $0x148] sm:$0xff]  }
  0x27   : > { %2260 = vmatpush3.bf16.msra.mxu0 %v2634_v22  ;;  %v2684_v2 = vld [vmem:[%s3412_s1 + $0x110] sm:$0xff]   ;;  %v2089_v6 = vcombine.high %v243_v4, %v243_v4  ;;  %v2088_v8 = vcombine.low %v243_v4, %v243_v4  ;;  %v2691_v11 = vld [vmem:[%s3412_s1 + $0x1c8] sm:$0xff]   ;;  %v2694_v14 = vld [vmem:[%s3412_s1 + $0x140] sm:$0xff]  }
  0x28   : > { %2300 = vmatpush3.bf16.msra.mxu1 %v2635_v23  ;;  %2261 = vmatprep.subr.bf16.mxu0 %v2636_v24  ;;  %v2685_v3 = vld [vmem:[%s3412_s1 + $0x190] sm:$0xff]   ;;  %v2692_v12 = vld [vmem:[%s3412_s1 + $0x108] sm:$0xff]   ;;  %v2695_v15 = vld [vmem:[%s3412_s1 + $0x1c0] sm:$0xff]  }
  0x29   : > { %2301 = vmatprep.subr.bf16.mxu1 %v2637_v25  ;;  %v2693_v13 = vld [vmem:[%s3412_s1 + $0x188] sm:$0xff]   ;;  %v2696_v16 = vld [vmem:[%s3412_s1 + $0x100] sm:$0xff]   ;;  %v2703_v21 = vld [vmem:[%s3021_s24 + $0x1c] ss:$52 sps:$4 sm:$0xff]  }
  0x2a   : > { %v2697_v17 = vld [vmem:[%s3412_s1 + $0x180] sm:$0xff]   ;;  %v2700_v19 = vld [vmem:[%s3021_s24 + $0x14] ss:$52 sps:$4 sm:$0xff]   ;;  %v2701_v20 = vld [vmem:[%s3021_s24 + $0x18] ss:$52 sps:$4 sm:$0xff]  }
  0x2b   : > { %2262 = vmatpush3.bf16.msra.mxu0 %v2638_v26  ;;  %v2698_v18 = vld [vmem:[%s3021_s24 + $0x10] ss:$52 sps:$4 sm:$0xff]   ;;  %v2704_v22 = vld [vmem:[%s3412_s1 + $0x278] sm:$0xff]   ;;  %v2717_v33 = vld [vmem:[%s3021_s24 + $0x80] ss:$52 sps:$4 sm:$0xff]  }
  0x2c   : > { %2302 = vmatpush3.bf16.msra.mxu1 %v2639_v27  ;;  %2263 = vmatprep.subr.bf16.mxu0 %v2640_v28  ;;  %v2705_v23 = vld [vmem:[%s3412_s1 + $0x2f8] sm:$0xff]   ;;  %v2708_v26 = vld [vmem:[%s3412_s1 + $0x270] sm:$0xff]   ;;  %v2719_v35 = vld [vmem:[%s3412_s1 + $0x2e8] sm:$0xff]  }
  0x2d   : > { %2303 = vmatprep.subr.bf16.mxu1 %v2641_v29  ;;  %v2706_v24 = vld [vmem:[%s3412_s1 + $0x238] sm:$0xff]   ;;  %v2709_v27 = vld [vmem:[%s3412_s1 + $0x2f0] sm:$0xff]  }
  0x2e   : > { %v2707_v25 = vld [vmem:[%s3412_s1 + $0x2b8] sm:$0xff]   ;;  %v2710_v28 = vld [vmem:[%s3412_s1 + $0x230] sm:$0xff]  }
  0x2f   : > { %2264 = vmatpush3.bf16.msra.mxu0 %v2642_v30  ;;  %v2711_v29 = vld [vmem:[%s3412_s1 + $0x2b0] sm:$0xff]   ;;  %v2754_v5 = vld [vmem:[%s3021_s24 + $0x24] ss:$52 sps:$4 sm:$0xff]  }
  0x30   : > { %2304 = vmatpush3.bf16.msra.mxu1 %v2643_v31  ;;  %2329 = vmatprep.subr.bf16.mxu0 %v2650_v36  ;;  %v2712_v30 = vld [vmem:[%s3021_s24 + $0x7c] ss:$52 sps:$4 sm:$0xff]   ;;  %v2714_v31 = vld [vmem:[%s3021_s24 + $0x84] ss:$52 sps:$4 sm:$0xff]   ;;  %v2720_v36 = vld [vmem:[%s3412_s1 + $0x228] sm:$0xff]  }
  0x31   : > { %2369 = vmatprep.subr.bf16.mxu1 %v2651_v37  ;;  %v2721_v37 = vld [vmem:[%s3412_s1 + $0x2a8] sm:$0xff]   ;;  %v2752_v4 = vld [vmem:[%s3021_s24 + $0x20] ss:$52 sps:$4 sm:$0xff]  }
  0x32   : > { %1343 = vmatmul.mubr.bf16.vlgmr.msra.gmra.mxu0 %v2644_v32  ;;  %v2716_v32 = vld [vmem:[%s3021_s24 + $0x78] ss:$52 sps:$4 sm:$0xff]  }
  0x33   : > { %1407 = vmatmul.mubr.bf16.vlgmr.msra.gmra.mxu1 %v2647_v34  ;;  %2330 = vmatpush3.bf16.msra.mxu0 %v2652_v38  ;;  %v2718_v34 = vld [vmem:[%s3412_s1 + $0x268] sm:$0xff]   ;;  %v2722_v38 = vld [vmem:[%s3412_s1 + $0x260] sm:$0xff]  }
  0x34   : > { %2370 = vmatpush3.bf16.msra.mxu1 %v2653_v39  ;;  %2331 = vmatprep.subr.bf16.mxu0 %v2654_v40  ;;  %v2723_v39 = vld [vmem:[%s3412_s1 + $0x2e0] sm:$0xff]  }
  0x35   : > { %2371 = vmatprep.subr.bf16.mxu1 %v2655_v41  ;;  %1350 = vmatprep.mubr.bf16.mxu0 %v2658_v44  ;;  %v2724_v40 = vld [vmem:[%s3412_s1 + $0x220] sm:$0xff]  }
  0x36   : > { %1414 = vmatprep.mubr.bf16.mxu1 %v2660_v45  ;;  %v2725_v41 = vld [vmem:[%s3412_s1 + $0x2a0] sm:$0xff]   ;;  %v2731_v45 = vld [vmem:[%s3021_s24 + $0xe8] ss:$52 sps:$4 sm:$0xff]  }
  0x37   : > { %2332 = vmatpush3.bf16.msra.mxu0 %v2656_v42  ;;  %v2726_v42 = vld [vmem:[%s3021_s24 + $0xe4] ss:$52 sps:$4 sm:$0xff]   ;;  %v2730_v44 = vld [vmem:[%s3021_s24 + $0xe0] ss:$52 sps:$4 sm:$0xff]  }
  0x38   : > { %2372 = vmatpush3.bf16.msra.mxu1 %v2657_v43  ;;  %2333 = vmatprep.subr.bf16.mxu0 %v2664_v48  ;;  %v2728_v43 = vld [vmem:[%s3021_s24 + $0xec] ss:$52 sps:$4 sm:$0xff]   ;;  %v2734_v48 = vld [vmem:[%s3412_s1 + $0x218] sm:$0xff]  }
  0x39   : > { %2373 = vmatprep.subr.bf16.mxu1 %v2665_v49  ;;  %v2735_v49 = vld [vmem:[%s3412_s1 + $0x298] sm:$0xff]  }
  0x3a   : > { %1351 = vmatmul.mubr.bf16.gmra.mxu0 %v2662_v46  ;;  %v2732_v46 = vld [vmem:[%s3412_s1 + $0x258] sm:$0xff]  }
  0x3b   : > { %1415 = vmatmul.mubr.bf16.gmra.mxu1 %v2663_v47  ;;  %2334 = vmatpush3.bf16.msra.mxu0 %v2666_v50  ;;  %v2733_v47 = vld [vmem:[%s3412_s1 + $0x2d8] sm:$0xff]   ;;  %v2736_v50 = vld [vmem:[%s3412_s1 + $0x250] sm:$0xff]  }
  0x3c   : > { %2374 = vmatpush3.bf16.msra.mxu1 %v2667_v51  ;;  %2335 = vmatprep.subr.bf16.mxu0 %v2668_v52  ;;  %v2737_v51 = vld [vmem:[%s3412_s1 + $0x2d0] sm:$0xff]  }
  0x3d   : > { %2375 = vmatprep.subr.bf16.mxu1 %v2669_v53  ;;  %1358 = vmatprep.mubr.bf16.mxu0 %v2672_v56  ;;  %v2738_v52 = vld [vmem:[%s3412_s1 + $0x210] sm:$0xff]  }
  0x3e   : > { %1422 = vmatprep.mubr.bf16.mxu1 %v2674_v57  ;;  %v2739_v53 = vld [vmem:[%s3412_s1 + $0x290] sm:$0xff]  }
  0x3f   : > { %2336 = vmatpush3.bf16.msra.mxu0 %v2670_v54  ;;  %v245_v54 = vld [vmem:[%s3021_s24 + $0x148] sm:$0xff]  ;;  %v246_v56 = vld [vmem:[%s3021_s24 + $0x150] sm:$0xff] }
  0x40   : > { %2376 = vmatpush3.bf16.msra.mxu1 %v2671_v55  ;;  %2337 = vmatprep.subr.bf16.mxu0 %v2678_v60  ;;  %v2093_v55 = vcombine.high %v245_v54, %v245_v54  ;;  %v2092_v57 = vcombine.low %v245_v54, %v245_v54  ;;  %v2744_v60 = vld [vmem:[%s3412_s1 + $0x248] sm:$0xff]  }
  0x41   : > { %2377 = vmatprep.subr.bf16.mxu1 %v2679_v61  ;;  %v2745_v61 = vld [vmem:[%s3412_s1 + $0x2c8] sm:$0xff]  }
  0x42   : > { %1359 = vmatmul.mubr.bf16.gmra.mxu0 %v2676_v58  ;;  %v2095_v58 = vcombine.high %v246_v56, %v246_v56 }
  0x43   : > { %1423 = vmatmul.mubr.bf16.gmra.mxu1 %v2677_v59  ;;  %2338 = vmatpush3.bf16.msra.mxu0 %v2680_v62  ;;  %v2094_v59 = vcombine.low %v246_v56, %v246_v56  ;;  %v2746_v62 = vld [vmem:[%s3412_s1 + $0x208] sm:$0xff]  }
  0x44   : > { %2378 = vmatpush3.bf16.msra.mxu1 %v2681_v63  ;;  %2339 = vmatprep.subr.bf16.mxu0 %v2682_v0  ;;  %v2747_v63 = vld [vmem:[%s3412_s1 + $0x288] sm:$0xff]   ;;  %v2748_v0 = vld [vmem:[%s3412_s1 + $0x240] sm:$0xff]  }
  0x45   : > { %2379 = vmatprep.subr.bf16.mxu1 %v2683_v1  ;;  %1366 = vmatprep.mubr.bf16.mxu0 %v2089_v6  ;;  %v2749_v1 = vld [vmem:[%s3412_s1 + $0x2c0] sm:$0xff]   ;;  %v2755_v6 = vld [vmem:[%s3021_s24 + $0x28] ss:$52 sps:$4 sm:$0xff]  }
  0x46   : > { %1430 = vmatprep.mubr.bf16.mxu1 %v2091_v7  ;;  %v2757_v7 = vld [vmem:[%s3021_s24 + $0x2c] ss:$52 sps:$4 sm:$0xff]  }
  0x47   : > { %2340 = vmatpush3.bf16.msra.mxu0 %v2684_v2  ;;  %v2750_v2 = vld [vmem:[%s3412_s1 + $0x200] sm:$0xff]  }
  0x48   : > { %2380 = vmatpush3.bf16.msra.mxu1 %v2685_v3  ;;  %2341 = vmatprep.subr.bf16.mxu0 %v2690_v10  ;;  %v2751_v3 = vld [vmem:[%s3412_s1 + $0x280] sm:$0xff]   ;;  %v2761_v10 = vld [vmem:[%s3021_s24 + $0x94] ss:$52 sps:$4 sm:$0xff]  }
  0x49   : > { %2381 = vmatprep.subr.bf16.mxu1 %v2691_v11  ;;  %v2765_v11 = vld [vmem:[%s3412_s1 + $0x310] sm:$0xff]  }
  0x4a   : > { %1367 = vmatmul.mubr.bf16.gmra.mxu0 %v2088_v8  ;;  %v2758_v8 = vld [vmem:[%s3412_s1 + $0x318] sm:$0xff]  }
  0x4b   : > { %1431 = vmatmul.mubr.bf16.gmra.mxu1 %v2090_v9  ;;  %2342 = vmatpush3.bf16.msra.mxu0 %v2692_v12  ;;  %v2759_v9 = vld [vmem:[%s3021_s24 + $0x8c] ss:$52 sps:$4 sm:$0xff]   ;;  %v2763_v12 = vld [vmem:[%s3021_s24 + $0x88] ss:$52 sps:$4 sm:$0xff]  }
  0x4c   : > { %2382 = vmatpush3.bf16.msra.mxu1 %v2693_v13  ;;  %2343 = vmatprep.subr.bf16.mxu0 %v2694_v14  ;;  %v2764_v13 = vld [vmem:[%s3021_s24 + $0x90] ss:$52 sps:$4 sm:$0xff]   ;;  %v2766_v14 = vld [vmem:[%s3021_s24 + $0xf4] ss:$52 sps:$4 sm:$0xff]  }
  0x4d   : > { %2383 = vmatprep.subr.bf16.mxu1 %v2695_v15  ;;  %1470 = vmatprep.mubr.bf16.mxu0 %v2700_v19  ;;  %v2768_v15 = vld [vmem:[%s3021_s24 + $0xfc] ss:$52 sps:$4 sm:$0xff]   ;;  %v248_v19 = vld [vmem:[%s3021_s24 + $0x160] sm:$0xff] }
  0x4e   : > { %1534 = vmatprep.mubr.bf16.mxu1 %v2703_v21  ;;  %v2771_v21 = vld [vmem:[%s3021_s24 + $0xf8] ss:$52 sps:$4 sm:$0xff]  }
  0x4f   : > { %2344 = vmatpush3.bf16.msra.mxu0 %v2696_v16  ;;  %v2772_v16 = vld [vmem:[%s3412_s1 + $0x308] sm:$0xff]  }
  0x50   : > { %2384 = vmatpush3.bf16.msra.mxu1 %v2697_v17  ;;  %2409 = vmatprep.subr.bf16.mxu0 %v2704_v22  ;;  %v2777_v17 = vld [vmem:[%s3412_s1 + $0x300] sm:$0xff]  }
  0x51   : > { %2449 = vmatprep.subr.bf16.mxu1 %v2705_v23  ;;  %v2099_v23 = vcombine.high %v248_v19, %v248_v19 }
  0x52   : > { %1471 = vmatmul.mubr.bf16.vlgmr.msra.gmra.mxu0 %v2698_v18  ;;  %v247_v18 = vld [vmem:[%s3021_s24 + $0x158] sm:$0xff] }
  0x53   : > { %1535 = vmatmul.mubr.bf16.vlgmr.msra.gmra.mxu1 %v2701_v20  ;;  %2410 = vmatpush3.bf16.msra.mxu0 %v2706_v24  ;;  %v2770_v20 = vld [vmem:[%s3021_s24 + $0xf0] ss:$52 sps:$4 sm:$0xff]   ;;  %v2097_v22 = vcombine.high %v247_v18, %v247_v18  ;;  %v2096_v24 = vcombine.low %v247_v18, %v247_v18 }
  0x54   : > { %2450 = vmatpush3.bf16.msra.mxu1 %v2707_v25  ;;  %2411 = vmatprep.subr.bf16.mxu0 %v2708_v26  ;;  %v2098_v25 = vcombine.low %v248_v19, %v248_v19  ;;  %v2778_v26 = vld [vmem:[%s3021_s24 + $0x30] ss:$52 sps:$4 sm:$0xff]  }
  0x55   : > { %2451 = vmatprep.subr.bf16.mxu1 %v2709_v27  ;;  %1478 = vmatprep.mubr.bf16.mxu0 %v2712_v30  ;;  %v2779_v27 = vld [vmem:[%s3021_s24 + $0x100] ss:$52 sps:$4 sm:$0xff]  }
  0x56   : > { %1542 = vmatprep.mubr.bf16.mxu1 %v2714_v31 }
  0x57   : > { %2412 = vmatpush3.bf16.msra.mxu0 %v2710_v28  ;;  %v2780_v28 = vld [vmem:[%s3021_s24 + $0x98] ss:$52 sps:$4 sm:$0xff]  }
  0x58   : > { %2452 = vmatpush3.bf16.msra.mxu1 %v2711_v29  ;;  %2413 = vmatprep.subr.bf16.mxu0 %v2718_v34  ;;  %v2781_v29 = vld [vmem:[%s3021_s24 + $0x168] ss:$0 sps:$4 sm:$0xff]   ;;  %s175_s24 = sand.u32 1, %s2832_s12  }
  0x59   : > { %2453 = vmatprep.subr.bf16.mxu1 %v2719_v35  ;;  %s2521_s8 = smul.u32 28, %s175_s24 }
  0x5a   : > { %1479 = vmatmul.mubr.bf16.gmra.mxu0 %v2716_v32  ;;  %v2048_v32 = vld [vmem:[%s3413_s2] ss:$0 sm:$0xff] }
  0x5b   : > { %1543 = vmatmul.mubr.bf16.gmra.mxu1 %v2717_v33  ;;  %2414 = vmatpush3.bf16.msra.mxu0 %v2720_v36  ;;  %s3349_s12 = scalar_lea.vmem [#allocation2], %s2521_s8  }
  0x5c   : > { %2454 = vmatpush3.bf16.msra.mxu1 %v2721_v37  ;;  %2415 = vmatprep.subr.bf16.mxu0 %v2722_v38 }
  0x5d   : > { %2455 = vmatprep.subr.bf16.mxu1 %v2723_v39  ;;  %1486 = vmatprep.mubr.bf16.mxu0 %v2726_v42 }
  0x5e   : > { %1550 = vmatprep.mubr.bf16.mxu1 %v2728_v43 }
  0x5f   : > { %2416 = vmatpush3.bf16.msra.mxu0 %v2724_v40 }
  0x60   : > { %2456 = vmatpush3.bf16.msra.mxu1 %v2725_v41  ;;  %2417 = vmatprep.subr.bf16.mxu0 %v2732_v46 }
  0x61   : > { %2457 = vmatprep.subr.bf16.mxu1 %v2733_v47 }
  0x62   : > { %1487 = vmatmul.mubr.bf16.gmra.mxu0 %v2730_v44 }
  0x63   : > { %1551 = vmatmul.mubr.bf16.gmra.mxu1 %v2731_v45  ;;  %2418 = vmatpush3.bf16.msra.mxu0 %v2734_v48 }
  0x64   : > { %2458 = vmatpush3.bf16.msra.mxu1 %v2735_v49  ;;  %2419 = vmatprep.subr.bf16.mxu0 %v2736_v50 }
  0x65   : > { %2459 = vmatprep.subr.bf16.mxu1 %v2737_v51  ;;  %1494 = vmatprep.mubr.bf16.mxu0 %v2093_v55 }
  0x66   : > { %1558 = vmatprep.mubr.bf16.mxu1 %v2095_v58 }
  0x67   : > { %2420 = vmatpush3.bf16.msra.mxu0 %v2738_v52 }
  0x68   : > { %2460 = vmatpush3.bf16.msra.mxu1 %v2739_v53  ;;  %2421 = vmatprep.subr.bf16.mxu0 %v2744_v60 }
  0x69   : > { %2461 = vmatprep.subr.bf16.mxu1 %v2745_v61 }
  0x6a   : > { %1495 = vmatmul.mubr.bf16.gmra.mxu0 %v2092_v57 }
  0x6b   : > { %1559 = vmatmul.mubr.bf16.gmra.mxu1 %v2094_v59  ;;  %2422 = vmatpush3.bf16.msra.mxu0 %v2746_v62 }
  0x6c   : > { %2462 = vmatpush3.bf16.msra.mxu1 %v2747_v63  ;;  %2423 = vmatprep.subr.bf16.mxu0 %v2748_v0 }
  0x6d   : > { %2463 = vmatprep.subr.bf16.mxu1 %v2749_v1  ;;  %1598 = vmatprep.mubr.bf16.mxu0 %v2754_v5 }
  0x6e   : > { %1662 = vmatprep.mubr.bf16.mxu1 %v2757_v7 }
  0x6f   : > { %2424 = vmatpush3.bf16.msra.mxu0 %v2750_v2 }
  0x70   : > { %2464 = vmatpush3.bf16.msra.mxu1 %v2751_v3  ;;  %2497 = vmatprep.subr.bf16.mxu0 %v2758_v8 }
  0x71   : > { %2513 = vmatprep.subr.bf16.mxu1 %v2758_v8 }
  0x72   : > { %1599 = vmatmul.mubr.bf16.vlgmr.msra.gmra.mxu0 %v2752_v4 }
  0x73   : > { %1663 = vmatmul.mubr.bf16.vlgmr.msra.gmra.mxu1 %v2755_v6  ;;  %2498 = vmatpush3.bf16.msra.mxu0 %v2758_v8 }
  0x74   : > { %2517 = vmatpush3.bf16.msra.mxu1 %v2758_v8  ;;  %1606 = vmatprep.mubr.bf16.mxu0 %v2759_v9 }
  0x75   : > { %1670 = vmatprep.mubr.bf16.mxu1 %v2761_v10  ;;  %2499 = vmatprep.subr.bf16.mxu0 %v2765_v11 }
  0x76   : > { %2514 = vmatprep.subr.bf16.mxu1 %v2765_v11 }
  0x77   : > { %2500 = vmatpush3.bf16.msra.mxu0 %v2765_v11 }
  0x78   : > { %2518 = vmatpush3.bf16.msra.mxu1 %v2765_v11  ;;  %2501 = vmatprep.subr.bf16.mxu0 %v2772_v16 }
  0x79   : > { %2515 = vmatprep.subr.bf16.mxu1 %v2772_v16 }
  0x7a   : > { %1607 = vmatmul.mubr.bf16.gmra.mxu0 %v2763_v12 }
  0x7b   : > { %1671 = vmatmul.mubr.bf16.gmra.mxu1 %v2764_v13  ;;  %1614 = vmatprep.mubr.bf16.mxu0 %v2766_v14 }
  0x7c   : > { %1678 = vmatprep.mubr.bf16.mxu1 %v2768_v15  ;;  %2502 = vmatpush3.bf16.msra.mxu0 %v2772_v16 }
  0x7d   : > { %2519 = vmatpush3.bf16.msra.mxu1 %v2772_v16  ;;  %2503 = vmatprep.subr.bf16.mxu0 %v2777_v17 }
  0x7e   : > { %2516 = vmatprep.subr.bf16.mxu1 %v2777_v17 }
  0x80   : > { %2504 = vmatpush3.bf16.msra.mxu0 %v2777_v17 }
  0x81   : > { %2520 = vmatpush3.bf16.msra.mxu1 %v2777_v17 }
  0x82   : > { %1615 = vmatmul.mubr.bf16.gmra.mxu0 %v2770_v20 }
  0x83   : > { %1679 = vmatmul.mubr.bf16.gmra.mxu1 %v2771_v21  ;;  %1622 = vmatprep.mubr.bf16.mxu0 %v2097_v22 }
  0x84   : > { %1686 = vmatprep.mubr.bf16.mxu1 %v2099_v23 }
  0x8a   : > { %1623 = vmatmul.mubr.bf16.gmra.mxu0 %v2096_v24 }
  0x8b   : > { %1687 = vmatmul.mubr.bf16.gmra.mxu1 %v2098_v25  ;;  %2505 = vmatprep.mubr.msk.bf16.mxu0 %vm1297_vm0, %v2778_v26 }
  0x8c   : > { %2509 = vmatprep.mubr.msk.bf16.mxu1 %vm1297_vm0, %v2779_v27 }
  0x92   : > { %2506 = vmatmul.mubr.msk.bf16.vlgmr.msra.gmra.mxu0 %vm1297_vm0, %v2780_v28 }
  0x93   : > { %2510 = vmatmul.mubr.msk.bf16.vlgmr.msra.gmra.mxu1 %vm1297_vm0, %v2781_v29 }
  0xf2   : > { %v2265_v30 = vpop.f32.mrf.mxu0 }
  0xf3   : > { %v2305_v31 = vpop.f32.mrf.mxu1 }
  0xf4   : > { %v2266_v33 = vpop.f32.mrf.mxu0 }
  0xf5   : > { %v2267_v34 = vadd.f32 %v2266_v33, %v2265_v30  ;;  %v2306_v35 = vpop.f32.mrf.mxu1 }
  0xf6   : > { %v2307_v36 = vadd.f32 %v2306_v35, %v2305_v31  ;;  %v2268_v37 = vpop.f32.mrf.mxu0 }
  0xf7   : > { %v1345_v38 = vadd.f32 %v2267_v34, %v2048_v32  ;;  %v2308_v39 = vpop.f32.mrf.mxu1 }
  0xf8   : > { %v2269_v40 = vpop.f32.mrf.mxu0 }
  0xf9   : > { %v3282_v41 = vadd.f32 %v2307_v36, %v1345_v38  ;;  %v2270_v42 = vadd.f32 %v2269_v40, %v2268_v37  ;;  %v2309_v43 = vpop.f32.mrf.mxu1 }
  0xfa   : > { %v2310_v44 = vadd.f32 %v2309_v43, %v2308_v39  ;;  %v2271_v46 = vpop.f32.mrf.mxu0 }
  0xfb   : > { %v1348_v45 = vadd.f32 %v2270_v42, %v2048_v32  ;;  %v2311_v48 = vpop.f32.mrf.mxu1 }
  0xfc   : > { %v2272_v49 = vpop.f32.mrf.mxu0 }
  0xfd   : > { %v3284_v47 = vadd.f32 %v2310_v44, %v1348_v45  ;;  %v2273_v50 = vadd.f32 %v2272_v49, %v2271_v46  ;;  %v2312_v51 = vpop.f32.mrf.mxu1 }
  0xfe   : > { %v2313_v52 = vadd.f32 %v2312_v51, %v2311_v48  ;;  %v2274_v53 = vpop.f32.mrf.mxu0 }
  0xff   : > { %v1353_v54 = vadd.f32 %v2273_v50, %v2048_v32  ;;  %v2314_v55 = vpop.f32.mrf.mxu1 }
 0x100   : > { %v2275_v56 = vpop.f32.mrf.mxu0 }
 0x101   : > { %v3286_v57 = vadd.f32 %v2313_v52, %v1353_v54  ;;  %v2276_v58 = vadd.f32 %v2275_v56, %v2274_v53  ;;  %v2315_v59 = vpop.f32.mrf.mxu1 }
 0x102   : > { %v2316_v60 = vadd.f32 %v2315_v59, %v2314_v55  ;;  %v2277_v63 = vpop.f32.mrf.mxu0 }
 0x103   : > { %v1356_v61 = vadd.f32 %v2276_v58, %v2048_v32  ;;  %v2317_v0 = vpop.f32.mrf.mxu1 }
 0x104   : > { %v2278_v1 = vpop.f32.mrf.mxu0 }
 0x105   : > { %v3288_v62 = vadd.f32 %v2316_v60, %v1356_v61  ;;  %v2279_v2 = vadd.f32 %v2278_v1, %v2277_v63  ;;  %v2318_v3 = vpop.f32.mrf.mxu1 }
 0x106   : > { %v2319_v4 = vadd.f32 %v2318_v3, %v2317_v0  ;;  %v2280_v5 = vpop.f32.mrf.mxu0 }
 0x107   : > { %v1361_v6 = vadd.f32 %v2279_v2, %v2048_v32  ;;  %v2320_v7 = vpop.f32.mrf.mxu1 }
 0x108   : > { %v2281_v8 = vpop.f32.mrf.mxu0 }
 0x109   : > { %v3290_v9 = vadd.f32 %v2319_v4, %v1361_v6  ;;  %v2282_v10 = vadd.f32 %v2281_v8, %v2280_v5  ;;  %v2321_v11 = vpop.f32.mrf.mxu1 }
 0x10a   : > { %v2322_v12 = vadd.f32 %v2321_v11, %v2320_v7  ;;  %v2283_v15 = vpop.f32.mrf.mxu0 }
 0x10b   : > { %v1364_v13 = vadd.f32 %v2282_v10, %v2048_v32  ;;  %v2323_v16 = vpop.f32.mrf.mxu1 }
 0x10c   : > { %v2284_v17 = vpop.f32.mrf.mxu0 }
 0x10d   : > { %v3292_v14 = vadd.f32 %v2322_v12, %v1364_v13  ;;  %v2324_v18 = vpop.f32.mrf.mxu1  ;;  %v2285_v19 = vadd.f32 %v2284_v17, %v2283_v15 }
 0x10e   : > { %v2325_v20 = vadd.f32 %v2324_v18, %v2323_v16  ;;  %v2286_v21 = vpop.f32.mrf.mxu0 }
 0x10f   : > { %v2326_v22 = vpop.f32.mrf.mxu1  ;;  %v1369_v23 = vadd.f32 %v2285_v19, %v2048_v32 }
 0x110   : > { %v2287_v24 = vpop.f32.mrf.mxu0 }
 0x111   : > { %v2327_v25 = vpop.f32.mrf.mxu1  ;;  %v3294_v26 = vadd.f32 %v2325_v20, %v1369_v23 }
 0x112   : > { %v2345_v27 = vpop.f32.mrf.mxu0 }
 0x113   : > { %v2385_v28 = vpop.f32.mrf.mxu1 }
 0x114   : > { %v2346_v29 = vpop.f32.mrf.mxu0 }
 0x115   : > { %v2386_v30 = vpop.f32.mrf.mxu1  ;;  %v2347_v18 = vadd.f32 %v2346_v29, %v2345_v27 }
 0x116   : > { %v2348_v31 = vpop.f32.mrf.mxu0 }
 0x117   : > { %v3296_v33 = vpop.f32.mrf.mxu1 }
 0x118   : > { %v2349_v34 = vpop.f32.mrf.mxu0 }
 0x119   : > { %v3298_v35 = vpop.f32.mrf.mxu1 }
 0x11a   : > { %v2351_v36 = vpop.f32.mrf.mxu0 }
 0x11b   : > { %v2391_v37 = vpop.f32.mrf.mxu1 }
 0x11c   : > { %v2352_v38 = vpop.f32.mrf.mxu0 }
 0x11d   : > { %v2392_v39 = vpop.f32.mrf.mxu1  ;;  %v2353_v20 = vadd.f32 %v2352_v38, %v2351_v36 }
 0x11e   : > { %v2354_v40 = vpop.f32.mrf.mxu0 }
 0x11f   : > { %v3300_v32 = vpop.f32.mrf.mxu1 }
 0x120   : > { %v2355_v42 = vpop.f32.mrf.mxu0 }
 0x121   : > { %v2395_v43 = vpop.f32.mrf.mxu1  ;;  %v2356_v24 = vadd.f32 %v2355_v42, %v2354_v40 }
 0x122   : > { %v2357_v44 = vpop.f32.mrf.mxu0 }
 0x123   : > { %v3302_v45 = vpop.f32.mrf.mxu1  ;;  %v1484_v36 = vadd.f32 %v2356_v24, %v3288_v62 }
 0x124   : > { %v2358_v46 = vpop.f32.mrf.mxu0 }
 0x125   : > { %v3304_v48 = vpop.f32.mrf.mxu1 }
 0x126   : > { %v2360_v49 = vpop.f32.mrf.mxu0 }
 0x127   : > { %v3306_v50 = vpop.f32.mrf.mxu1 }
 0x128   : > { %v2361_v51 = vpop.f32.mrf.mxu0 }
 0x129   : > { %v3308_v52 = vpop.f32.mrf.mxu1  ;;  %v2362_v38 = vadd.f32 %v2361_v51, %v2360_v49 }
 0x12a   : > { %v2363_v53 = vpop.f32.mrf.mxu0 }
 0x12b   : > { %v2403_v54 = vpop.f32.mrf.mxu1 }
 0x12c   : > { %v2364_v55 = vpop.f32.mrf.mxu0 }
 0x12d   : > { %v2404_v56 = vpop.f32.mrf.mxu1  ;;  %v2365_v22 = vadd.f32 %v2364_v55, %v2363_v53 }
 0x12e   : > { %v2366_v58 = vpop.f32.mrf.mxu0  ;;  %v2405_v42 = vadd.f32 %v2404_v56, %v2403_v54 }
 0x12f   : > { %v2406_v59 = vpop.f32.mrf.mxu1  ;;  %v1473_v58 = vadd.f32 %v2347_v18, %v3282_v41  ;;  %v1497_v27 = vadd.f32 %v2365_v22, %v3294_v26  ;;  %v2390_v41 = vadd.f32 %v3298_v35, %v3296_v33  ;;  %v2399_v33 = vadd.f32 %v3304_v48, %v3302_v45 }
 0x130   : > { %v2367_v60 = vpop.f32.mrf.mxu0  ;;  %v1492_v35 = vadd.f32 %v2362_v38, %v3292_v14 }
 0x131   : > { %v2407_v61 = vpop.f32.mrf.mxu1  ;;  %v2350_v60 = vadd.f32 %v2349_v34, %v2348_v31 }
 0x132   : > { %v2425_v63 = vpop.f32.mrf.mxu0  ;;  %v1481_v61 = vadd.f32 %v2353_v20, %v3286_v57 }
 0x133   : > { %v3310_v0 = vpop.f32.mrf.mxu1  ;;  %v1476_v57 = vadd.f32 %v2350_v60, %v3284_v47 }
 0x134   : > { %v2426_v1 = vpop.f32.mrf.mxu0 }
 0x135   : > { %v3312_v2 = vpop.f32.mrf.mxu1 }
 0x136   : > { %v2428_v3 = vpop.f32.mrf.mxu0 }
 0x137   : > { %v3314_v4 = vpop.f32.mrf.mxu1 }
 0x138   : > { %3416 = vst [vmem:[#allocation3_spill] sm:$0xff] %v3314_v4  ;;  %v2429_v5 = vpop.f32.mrf.mxu0 }
 0x139   : > { %v3316_v6 = vpop.f32.mrf.mxu1  ;;  %v2430_v54 = vadd.f32 %v2429_v5, %v2428_v3  ;;  %v2467_v5 = vadd.f32 %v3312_v2, %v3310_v0 }
 0x13a   : > { %3417 = vst [vmem:[#allocation4_spill] sm:$0xff] %v3316_v6  ;;  %v2431_v7 = vpop.f32.mrf.mxu0  ;;  %v2359_v6 = vadd.f32 %v2358_v46, %v2357_v44 }
 0x13b   : > { %v2471_v8 = vpop.f32.mrf.mxu1 }
 0x13c   : > { %v2432_v10 = vpop.f32.mrf.mxu0  ;;  %v1489_v26 = vadd.f32 %v2359_v6, %v3290_v9  ;;  %v1540_v6 = vadd.f32 %v2390_v41, %v1476_v57 }
 0x13d   : > { %v2472_v11 = vpop.f32.mrf.mxu1  ;;  %v2433_v55 = vadd.f32 %v2432_v10, %v2431_v7 }
 0x13e   : > { %v2434_v12 = vpop.f32.mrf.mxu0  ;;  %v1553_v7 = vadd.f32 %v2399_v33, %v1489_v26  ;;  %v1604_v18 = vadd.f32 %v2430_v54, %v1540_v6 }
 0x13f   : > { %v3318_v13 = vpop.f32.mrf.mxu1  ;;  %v3422_v24 = vld [vmem:[#allocation3_spill] sm:$0xff] }
 0x140   : > { %v2435_v15 = vpop.f32.mrf.mxu0 }
 0x141   : > { %v3320_v16 = vpop.f32.mrf.mxu1  ;;  %v2436_v62 = vadd.f32 %v2435_v15, %v2434_v12  ;;  %v2473_v15 = vadd.f32 %v2472_v11, %v2471_v8 }
 0x142   : > { %3418 = vst [vmem:[#allocation5_spill] sm:$0xff] %v3320_v16  ;;  %v2437_v17 = vpop.f32.mrf.mxu0  ;;  %v2387_v16 = vadd.f32 %v2386_v30, %v2385_v28  ;;  %v2396_v28 = vadd.f32 %v2395_v43, %v3300_v32 }
 0x143   : > { %v3322_v19 = vpop.f32.mrf.mxu1 }
 0x144   : > { %3419 = vst [vmem:[#allocation6_spill] sm:$0xff] %v3322_v19  ;;  %v2438_v21 = vpop.f32.mrf.mxu0  ;;  %v2393_v19 = vadd.f32 %v2392_v39, %v2391_v37  ;;  %v1537_v40 = vadd.f32 %v2387_v16, %v1473_v58  ;;  %v1561_v37 = vadd.f32 %v2405_v42, %v1497_v27  ;;  %v2427_v39 = vadd.f32 %v2426_v1, %v2425_v63 }
 0x145   : > { %v2478_v23 = vpop.f32.mrf.mxu1  ;;  %v1548_v49 = vadd.f32 %v2396_v28, %v1484_v36  ;;  %v2439_v51 = vadd.f32 %v2438_v21, %v2437_v17  ;;  %v2402_v63 = vadd.f32 %v3308_v52, %v3306_v50 }
 0x146   : > { %v2440_v25 = vpop.f32.mrf.mxu0  ;;  %v1545_v34 = vadd.f32 %v2393_v19, %v1481_v61  ;;  %v1601_v12 = vadd.f32 %v2427_v39, %v1537_v40 }
 0x147   : > { %v3325_v59 = vpop.f32.mrf.mxu1  ;;  %v1612_v45 = vadd.f32 %v2436_v62, %v1548_v49  ;;  %v1556_v16 = vadd.f32 %v2402_v63, %v1492_v35  ;;  %v1617_v17 = vadd.f32 %v2439_v51, %v1553_v7 }
 0x148   : > { %v2441_v4 = vpop.f32.mrf.mxu0  ;;  %v1609_v56 = vadd.f32 %v2433_v55, %v1545_v34  ;;  %v1665_v61 = vadd.f32 %v2467_v5, %v1601_v12 }
 0x149   : > { %v2481_v29 = vpop.f32.mrf.mxu1  ;;  %v2442_v1 = vadd.f32 %v2441_v4, %v2440_v25  ;;  %v3420_v19 = vld [vmem:[#allocation5_spill] sm:$0xff]  ;;  %v3423_v25 = vld [vmem:[#allocation4_spill] sm:$0xff] }
 0x14a   : > { %v2443_v53 = vpop.f32.mrf.mxu0  ;;  %v2476_v20 = vadd.f32 %v3420_v19, %v3318_v13  ;;  %v1673_v21 = vadd.f32 %v2473_v15, %v1609_v56  ;;  %v2470_v58 = vadd.f32 %v3423_v25, %v3422_v24  ;;  %v2482_v0 = vadd.f32 %v2481_v29, %v3325_v59 }
 0x14b   : > { %v2483_v31 = vpop.f32.mrf.mxu1  ;;  %v3421_v52 = vld [vmem:[#allocation6_spill] sm:$0xff]  ;;  %v1620_v22 = vadd.f32 %v2442_v1, %v1556_v16 }
 0x14c   : > { %v2444_v30 = vpop.f32.mrf.mxu0  ;;  %v2479_v4 = vadd.f32 %v2478_v23, %v3421_v52  ;;  %v1676_v36 = vadd.f32 %v2476_v20, %v1612_v45  ;;  %v1668_v42 = vadd.f32 %v2470_v58, %v1604_v18 }
 0x14d   : > { %v2445_v44 = vadd.f32 %v2444_v30, %v2443_v53  ;;  %v2484_v46 = vpop.f32.mrf.mxu1  ;;  %v1684_v57 = vadd.f32 %v2482_v0, %v1620_v22 }
 0x14e   : > { %v2446_v47 = vpop.f32.mrf.mxu0  ;;  %v2485_v43 = vadd.f32 %v2484_v46, %v2483_v31  ;;  %v1681_v38 = vadd.f32 %v2479_v4, %v1617_v17 }
 0x14f   : > { %v1625_v32 = vadd.f32 %v2445_v44, %v1561_v37  ;;  %v2486_v9 = vpop.f32.mrf.mxu1 }
 0x150   : > { %v2447_v10 = vpop.f32.mrf.mxu0 }
 0x151   : > { %v2487_v48 = vpop.f32.mrf.mxu1  ;;  %v1689_v14 = vadd.f32 %v2485_v43, %v1625_v32 }
 0x152   : > { %v2507_v3 = vpop.f32.mrf.mxu0 }
 0x153   : > { %v2511_v50 = vpop.f32.mrf.mxu1  ;;  %v1737_v60 = vadd.f32 %v2507_v3, %v1673_v21 }
 0x154   : > { %v1753_v8 = vadd.f32 %v2511_v50, %v1689_v14  ;;  %v1728_v11 = vpop.f32.mrf.mxu0 }
 0x155   : > { %v1744_v27 = vpop.f32.mrf.mxu1  ;;  %v1729_v53 = vadd.f32 %v1728_v11, %v1665_v61  ;;  %v1760_v34 = vmax.f32 %v1737_v60, 0.0 }
 0x156   : > { %v1764_v2 = vmax.f32 %v1753_v8, 0.0  ;;  %v2508_v13 = vpop.f32.mrf.mxu0  ;;  %v1745_v55 = vadd.f32 %v1744_v27, %v1681_v38 }
 0x157   : > { %v1740_v40 = vadd.f32 %v2508_v13, %v1676_v36  ;;  %v2512_v41 = vpop.f32.mrf.mxu1  ;;  %v1758_v29 = vmax.f32 %v1729_v53, 0.0 }
 0x158   : > { %v2230_v23 = vpack.c.bf16 %v1764_v2, %v1764_v2  ;;  %v1731_v31 = vpop.f32.mrf.mxu0  ;;  %v1762_v62 = vmax.f32 %v1745_v55, 0.0 }
 0x159   : > { %v1761_v28 = vmax.f32 %v1740_v40, 0.0  ;;  %v1732_v26 = vadd.f32 %v1731_v31, %v1668_v42  ;;  %v1747_v30 = vpop.f32.mrf.mxu1 }
 0x15a   : > { %1800 = vst [vmem:[%s3349_s12 + $0x18] sm:$0xf] %v2230_v23  ;;  %v1748_v59 = vadd.f32 %v1747_v30, %v1684_v57 }
 0x15b   : > { %v2240_v37 = vpack.c.bf16 %v1761_v28, %v1760_v34  ;;  %v1759_v39 = vmax.f32 %v1732_v26, 0.0 }
 0x15c   : > { %v1763_v44 = vmax.f32 %v1748_v59, 0.0  ;;  %1807 = sbr.rel (!%p2919_p4) target bundleno = 411 (0x19b), region = 36 }
 0x15d   : > { %2247 = vst [vmem:[%s3349_s12 + $0x8] sm:$0xff] %v2240_v37   ;;  %v2235_v46 = vpack.c.bf16 %v1759_v39, %v1758_v29 }
 0x15e   : > { %v2245_v49 = vpack.c.bf16 %v1763_v44, %v1762_v62 }
 0x15f   : > { %2236 = vst [vmem:[%s3349_s12] sm:$0xff] %v2235_v46  }
 0x160   : > { %2248 = vst [vmem:[%s3349_s12 + $0x10] sm:$0xff] %v2245_v49  }
 0x161   : > { %s3431_s9 = smov (!%p1810_p8, %s1809_s9), 7 }
 0x162   : > { %s2212_s18 = sshll.u32 %s3431_s9, 6 }
 0x163   : > { %p2215_p9 = scmp.eq.s32.totalorder %s2212_s18, 0 }
 0x164   : > { %2782 = sdivrem.u32 (!%p2215_p9), %s3431_s9, 7 }
 0x165   : > { %1818 = sbr.rel (%p2215_p9) target bundleno = 411 (0x19b), region = 40 }
 0x16d   : > { %s3368_s20 = spop.drf %2782 }
 0x16e   : > { %p2216_p10 = scmp.le.s32.totalorder %s3368_s20, 0 }
 0x16f   : > { %s3424_s15 = smov (!%p2216_p10), %s3362_s17  ;;  %s3425_s28 = smov (!%p2216_p10), %s3349_s12 }
 0x170   : > { %1999 = sbr.rel (%p2216_p10) target bundleno = 386 (0x182), region = 112  ;;  %s3377_s21 = smov (!%p2216_p10), 0  }
 0x171   : > { %s3379_s22 = smov (!%p2216_p10), 0  }
 0x175 LB: >> { %v1836_v33 = vld [vmem:[%s2848_s28] sm:$0xf]  ;;  %v1838_v35 = vld [vmem:[%s2848_s28 + $0x4] sm:$0xf]  ;;  %v1840_v51 = vld [vmem:[%s2848_s28 + $0x8] sm:$0xf]  ;;  %s2856_s22 = sphi %s3379_s22, %s1830_s22   ;;  %s2852_s21 = sphi %s3377_s21, %s3426_s21   ;;  %s2848_s28 = sphi %s3425_s28, %s1855_s28   ;;  %s2844_s15 = sphi %s3424_s15, %s1856_s15  }
 0x176   : >> { %1837 = vst [vmem:[%s2844_s15] sm:$0xf] %v1836_v33  ;;  %1839 = vst [vmem:[%s2844_s15 + $0x4] sm:$0xf] %v1838_v35  ;;  %v1842_v47 = vld [vmem:[%s2848_s28 + $0xc] sm:$0xf]  ;;  %s1850_s23 = sadd.s32 1, %s2852_s21 }
 0x177   : >> { %1841 = vst [vmem:[%s2844_s15 + $0x8] sm:$0xf] %v1840_v51  ;;  %v1844_v54 = vld [vmem:[%s2848_s28 + $0x10] sm:$0xf]  ;;  %v1846_v56 = vld [vmem:[%s2848_s28 + $0x14] sm:$0xf]  ;;  %p1851_p11 = scmp.ge.s32.totalorder %s1850_s23, %s3368_s20 }
 0x178   : >> { %1843 = vst [vmem:[%s2844_s15 + $0xc] sm:$0xf] %v1842_v47  ;;  %1845 = vst [vmem:[%s2844_s15 + $0x10] sm:$0xf] %v1844_v54  ;;  %v1848_v32 = vld [vmem:[%s2848_s28 + $0x18] sm:$0xf] }
 0x179   : >> { %1847 = vst [vmem:[%s2844_s15 + $0x14] sm:$0xf] %v1846_v56  ;;  %1849 = vst [vmem:[%s2844_s15 + $0x18] sm:$0xf] %v1848_v32  ;;  %s3433_s23 = smov (%p1851_p11, %s1850_s23), 0  ;;  %s1830_s22 = sadd.s32 1, %s2856_s22  }
 0x17a   : >> { %s1853_s25 = smul.u32 28, %s3433_s23  ;;  %p1829_p12 = scmp.ge.s32.totalorder %s1830_s22, %s3368_s20 }
 0x17b   : >> { %s3426_s21 = smov %s3433_s23 }
 0x17c   : >> { %s1855_s28 = scalar_lea.vmem %s3349_s12, %s1853_s25 [#allocation2]   ;;  %s1856_s15 = scalar_lea.vmem %s3362_s17, %s1853_s25  }
 0x17d   : > { %1832 = sbr.rel (!%p1829_p12) target bundleno = 373 (0x175), region = 118 }
 0x182 PF: > { %2784 = sdivrem.u32 %s3431_s9, 7 }
 0x183   : > { %s2217_s26 = smul.u32 28, %s3368_s20 }
 0x185   : > { %s1861_s27 = scalar_lea.vmem %s3349_s12, %s2217_s26 [#allocation2]   ;;  %s1863_s29 = scalar_lea.vmem %s3362_s17, %s2217_s26  }
 0x18b   : > { %s2785_s30 = spop.drf %2784 }
 0x18c   : > { %p2219_p13 = scmp.le.s32.totalorder %s2785_s30, 0 }
 0x18d   : > { %s2858_s4 = smov (!%p2219_p13), %s1863_s29   ;;  %s2862_s5 = smov (!%p2219_p13), %s1861_s27  }
 0x18e   : > { %2013 = sbr.rel (%p2219_p13) target bundleno = 411 (0x19b), region = 123  ;;  %s2866_s6 = smov (!%p2219_p13), 0  }
 0x18f   : > { %s2870_s7 = smov (!%p2219_p13), 0  }
 0x193 LB: >> { %v1873_v43 = vld [vmem:[%s2864_s5] sm:$0xf]  ;;  %s1875_s24 = sadd.s32 1, %s2868_s6  ;;  %s1867_s7 = sadd.s32 1, %s2872_s7   ;;  %s2872_s7 = sphi %s2870_s7, %s1867_s7   ;;  %s2868_s6 = sphi %s2866_s6, %s2867_s6   ;;  %s2864_s5 = sphi %s2862_s5, %s1880_s5   ;;  %s2860_s4 = sphi %s2858_s4, %s1881_s4  }
 0x194   : >> { %1874 = vst [vmem:[%s2860_s4] sm:$0xf] %v1873_v43  ;;  %p1876_p0 = scmp.ge.s32.totalorder %s1875_s24, %s2785_s30  ;;  %p1866_p1 = scmp.ge.s32.totalorder %s1867_s7, %s2785_s30 }
 0x196   : >> { %s3435_s24 = smov (%p1876_p0, %s1875_s24), 0  ;;  %1869 = sbr.rel (!%p1866_p1) target bundleno = 403 (0x193), region = 129 }
 0x197   : >> { %s2220_s8 = sshll.u32 %s3435_s24, 2  ;;  %s2867_s6 = smov %s3435_s24  }
 0x198   : >> { %s1880_s5 = scalar_lea.vmem %s1861_s27, %s2220_s8 [#allocation2]   ;;  %s1881_s4 = scalar_lea.vmem %s1863_s29, %s2220_s8  }
 0x19b PF: > { %p10_p2 = scmp.ge.s32.totalorder %s2909_s16, 4   ;;  %s3427_s12 = smov %s2836_s13 }
 0x19c   : > { %s3428_s13 = smov %s2917_s19  ;;  %s3429_s14 = smov %s2909_s16 }
 0x19d   :  { %12 = sbr.rel (!%p10_p2) target bundleno = 2 (0x2), region = 140 }

// kernel: forward.6
= control target key start
LH: loop header
LB: loop body
LE: loop exit
PB: predicated region body
PF: predicated region fallthrough
CT: control target
= control target key end

     0   :  { %s4497_s12 = smov 0   ;;  %s5750_s0 = inlined_call_operand.vmem [shape: bf16[32,3200], index: 0, kind: input, shape index: {}]   ;;  %s5751_s1 = inlined_call_operand.vmem [shape: bf16[3200,256], index: 1, kind: input, shape index: {}]   ;;  %s5752_s2 = inlined_call_operand.vmem [shape: f32[1,256], index: 2, kind: input, shape index: {}]   ;;  %s5753_s3 = inlined_call_operand.vmem [shape: bf16[32,256], index: 3, kind: output, shape index: {}]  }
   0x1 LB: > { %s3379_s13 = sadd.s32 4294967295, %s4474_s12   ;;  %p3383_p0 = scmp.ge.s32.totalorder %s4474_s12, 1  ;;  %s4474_s12 = sphi %s4497_s12, %s13_s12  }
   0x2   : > { %p139_p1 = scmp.lt.s32.totalorder %s4474_s12, 3 }
   0x4   : > { %p140_p2 = pnand %p3383_p0, %p139_p1 }
   0x5   : > { %s3384_s22 = sshll.u32 (!%p140_p2), %s3379_s13, 1 }
   0x6   : > { %143 = sbr.rel (%p140_p2) target bundleno = 634 (0x27a), region = 32  ;;  %p166_p3 = scmp.lt.s32.totalorder (!%p140_p2), %s3384_s22, 3 }
   0xb   : > { %v3831_v0 = vld [vmem:[%s5751_s1 + $0x74] ss:$8 sps:$4 sm:$0xff]   ;;  %v3833_v1 = vld [vmem:[%s5751_s1 + $0x70] ss:$8 sps:$4 sm:$0xff]   ;;  %v3837_v4 = vld [vmem:[%s5751_s1 + $0x64] ss:$8 sps:$4 sm:$0xff]  }
   0xc   : > { %2744 = vmatprep.subr.bf16.mxu0 %v3831_v0  ;;  %v3834_v2 = vld [vmem:[%s5751_s1 + $0x174] ss:$8 sps:$4 sm:$0xff]   ;;  %v3836_v3 = vld [vmem:[%s5751_s1 + $0x170] ss:$8 sps:$4 sm:$0xff]   ;;  %v3839_v5 = vld [vmem:[%s5751_s1 + $0x60] ss:$8 sps:$4 sm:$0xff]  }
   0xd   : > { %2745 = vmatpush1.bf16.msra.mxu0 %v3833_v1  ;;  %2787 = vmatprep.subr.bf16.mxu1 %v3834_v2  ;;  %v3840_v6 = vld [vmem:[%s5751_s1 + $0x164] ss:$8 sps:$4 sm:$0xff]   ;;  %v3842_v7 = vld [vmem:[%s5751_s1 + $0x160] ss:$8 sps:$4 sm:$0xff]   ;;  %v3843_v8 = vld [vmem:[%s5751_s1 + $0x54] ss:$8 sps:$4 sm:$0xff]  }
   0xe   : > { %2788 = vmatpush1.bf16.msra.mxu1 %v3836_v3  ;;  %2746 = vmatprep.subr.bf16.mxu0 %v3837_v4  ;;  %v3845_v9 = vld [vmem:[%s5751_s1 + $0x50] ss:$8 sps:$4 sm:$0xff]   ;;  %v3846_v10 = vld [vmem:[%s5751_s1 + $0x154] ss:$8 sps:$4 sm:$0xff]   ;;  %v3849_v11 = vld [vmem:[%s5751_s1 + $0x44] ss:$8 sps:$4 sm:$0xff]  }
   0xf   : > { %2789 = vmatprep.subr.bf16.mxu1 %v3840_v6  ;;  %v3848_v12 = vld [vmem:[%s5751_s1 + $0x150] ss:$8 sps:$4 sm:$0xff]   ;;  %v3852_v13 = vld [vmem:[%s5751_s1 + $0x144] ss:$8 sps:$4 sm:$0xff]   ;;  %v3851_v14 = vld [vmem:[%s5751_s1 + $0x40] ss:$8 sps:$4 sm:$0xff]  }
  0x10   : > { %v3855_v15 = vld [vmem:[%s5751_s1 + $0x34] ss:$8 sps:$4 sm:$0xff]   ;;  %v3854_v16 = vld [vmem:[%s5751_s1 + $0x140] ss:$8 sps:$4 sm:$0xff]   ;;  %v3857_v18 = vld [vmem:[%s5751_s1 + $0x30] ss:$8 sps:$4 sm:$0xff]  }
  0x11   : > { %2747 = vmatpush1.bf16.msra.mxu0 %v3839_v5  ;;  %v3858_v17 = vld [vmem:[%s5751_s1 + $0x134] ss:$8 sps:$4 sm:$0xff]   ;;  %v3861_v19 = vld [vmem:[%s5751_s1 + $0x24] ss:$8 sps:$4 sm:$0xff]   ;;  %v3860_v20 = vld [vmem:[%s5751_s1 + $0x130] ss:$8 sps:$4 sm:$0xff]  }
  0x12   : > { %2748 = vmatprep.subr.bf16.mxu0 %v3843_v8  ;;  %2790 = vmatpush1.bf16.msra.mxu1 %v3842_v7  ;;  %v3864_v21 = vld [vmem:[%s5751_s1 + $0x124] ss:$8 sps:$4 sm:$0xff]   ;;  %v3863_v22 = vld [vmem:[%s5751_s1 + $0x20] ss:$8 sps:$4 sm:$0xff]   ;;  %v3867_v23 = vld [vmem:[%s5751_s1 + $0x14] ss:$8 sps:$4 sm:$0xff]  }
  0x13   : > { %2791 = vmatprep.subr.bf16.mxu1 %v3846_v10  ;;  %v3866_v24 = vld [vmem:[%s5751_s1 + $0x120] ss:$8 sps:$4 sm:$0xff]   ;;  %v3870_v25 = vld [vmem:[%s5751_s1 + $0x114] ss:$8 sps:$4 sm:$0xff]   ;;  %v3869_v26 = vld [vmem:[%s5751_s1 + $0x10] ss:$8 sps:$4 sm:$0xff]  }
  0x14   : > { %v3873_v27 = vld [vmem:[%s5751_s1 + $0x4] ss:$8 sps:$4 sm:$0xff]   ;;  %v3872_v28 = vld [vmem:[%s5751_s1 + $0x110] ss:$8 sps:$4 sm:$0xff]   ;;  %v3875_v30 = vld [vmem:[%s5751_s1] ss:$8 sps:$4 sm:$0xff]  }
  0x15   : > { %2749 = vmatpush1.bf16.msra.mxu0 %v3845_v9  ;;  %v3876_v29 = vld [vmem:[%s5751_s1 + $0x104] ss:$8 sps:$4 sm:$0xff]   ;;  %v3879_v31 = vld [vmem:[%s5751_s1 + $0xf4] ss:$8 sps:$4 sm:$0xff]   ;;  %v3878_v32 = vld [vmem:[%s5751_s1 + $0x100] ss:$8 sps:$4 sm:$0xff]  }
  0x16   : > { %2750 = vmatprep.subr.bf16.mxu0 %v3849_v11  ;;  %2792 = vmatpush1.bf16.msra.mxu1 %v3848_v12  ;;  %v3882_v33 = vld [vmem:[%s5751_s1 + $0x1f4] ss:$8 sps:$4 sm:$0xff]   ;;  %v3881_v34 = vld [vmem:[%s5751_s1 + $0xf0] ss:$8 sps:$4 sm:$0xff]   ;;  %v3885_v35 = vld [vmem:[%s5751_s1 + $0xe4] ss:$8 sps:$4 sm:$0xff]  }
  0x17   : > { %2793 = vmatprep.subr.bf16.mxu1 %v3852_v13  ;;  %s5755_s22 = smov (!%p166_p3, %s3384_s22), 3  ;;  %v3884_v36 = vld [vmem:[%s5751_s1 + $0x1f0] ss:$8 sps:$4 sm:$0xff]   ;;  %v3888_v37 = vld [vmem:[%s5751_s1 + $0x1e4] ss:$8 sps:$4 sm:$0xff]  }
  0x18   : > { %v3887_v38 = vld [vmem:[%s5751_s1 + $0xe0] ss:$8 sps:$4 sm:$0xff]   ;;  %v3891_v39 = vld [vmem:[%s5751_s1 + $0xd4] ss:$8 sps:$4 sm:$0xff]   ;;  %s3821_s19 = smul.u32 100, %s5755_s22  ;;  %s3818_s24 = sshll.u32 %s5755_s22, 3 }
  0x19   : > { %2751 = vmatpush1.bf16.msra.mxu0 %v3851_v14  ;;  %v3890_v40 = vld [vmem:[%s5751_s1 + $0x1e0] ss:$8 sps:$4 sm:$0xff]   ;;  %v3894_v41 = vld [vmem:[%s5751_s1 + $0x1d4] ss:$8 sps:$4 sm:$0xff]   ;;  %v3893_v42 = vld [vmem:[%s5751_s1 + $0xd0] ss:$8 sps:$4 sm:$0xff]   ;;  %s177_s27 = scalar_lea.vmem %s5753_s3, %s3818_s24 }
  0x1a   : > { %2752 = vmatprep.subr.bf16.mxu0 %v3855_v15  ;;  %2794 = vmatpush1.bf16.msra.mxu1 %v3854_v16  ;;  %v3897_v43 = vld [vmem:[%s5751_s1 + $0xc4] ss:$8 sps:$4 sm:$0xff]   ;;  %s4645_s13 = scalar_lea.vmem %s5750_s0, %s3821_s19  ;;  %v3896_v44 = vld [vmem:[%s5751_s1 + $0x1d0] ss:$8 sps:$4 sm:$0xff]   ;;  %v3899_v46 = vld [vmem:[%s5751_s1 + $0xc0] ss:$8 sps:$4 sm:$0xff]  }
  0x1b   : > { %2795 = vmatprep.subr.bf16.mxu1 %v3858_v17  ;;  %v3900_v45 = vld [vmem:[%s5751_s1 + $0x1c4] ss:$8 sps:$4 sm:$0xff]   ;;  %v3903_v48 = vld [vmem:[%s5751_s1 + $0xb4] ss:$8 sps:$4 sm:$0xff]   ;;  %v3902_v49 = vld [vmem:[%s5751_s1 + $0x1c0] ss:$8 sps:$4 sm:$0xff]  }
  0x1c   : > { %v3928_v47 = vld [vmem:[%s4645_s13 + $0x4] ss:$100 sps:$4 sm:$0xff]   ;;  %v3906_v50 = vld [vmem:[%s5751_s1 + $0x1b4] ss:$8 sps:$4 sm:$0xff]   ;;  %v3935_v51 = vld [vmem:[%s4645_s13 + $0xc] ss:$100 sps:$4 sm:$0xff]  }
  0x1d   : > { %2753 = vmatpush1.bf16.msra.mxu0 %v3857_v18  ;;  %2776 = vmatprep.mubr.bf16.mxu0 %v3928_v47  ;;  %v3905_v52 = vld [vmem:[%s5751_s1 + $0xb0] ss:$8 sps:$4 sm:$0xff]   ;;  %v3909_v53 = vld [vmem:[%s5751_s1 + $0xa4] ss:$8 sps:$4 sm:$0xff]   ;;  %v3911_v56 = vld [vmem:[%s5751_s1 + $0xa0] ss:$8 sps:$4 sm:$0xff]  }
  0x1e   : > { %2754 = vmatprep.subr.bf16.mxu0 %v3861_v19  ;;  %2796 = vmatpush1.bf16.msra.mxu1 %v3860_v20  ;;  %v3908_v54 = vld [vmem:[%s5751_s1 + $0x1b0] ss:$8 sps:$4 sm:$0xff]   ;;  %v3912_v55 = vld [vmem:[%s5751_s1 + $0x1a4] ss:$8 sps:$4 sm:$0xff]   ;;  %v3915_v57 = vld [vmem:[%s5751_s1 + $0x94] ss:$8 sps:$4 sm:$0xff]  }
  0x1f   : > { %2797 = vmatprep.subr.bf16.mxu1 %v3864_v21  ;;  %2819 = vmatprep.mubr.bf16.mxu1 %v3935_v51  ;;  %v3914_v58 = vld [vmem:[%s5751_s1 + $0x1a0] ss:$8 sps:$4 sm:$0xff]   ;;  %v3918_v59 = vld [vmem:[%s5751_s1 + $0x194] ss:$8 sps:$4 sm:$0xff]   ;;  %v3917_v60 = vld [vmem:[%s5751_s1 + $0x90] ss:$8 sps:$4 sm:$0xff]  }
  0x20   : > { %v3921_v61 = vld [vmem:[%s5751_s1 + $0x84] ss:$8 sps:$4 sm:$0xff]   ;;  %v3920_v62 = vld [vmem:[%s5751_s1 + $0x190] ss:$8 sps:$4 sm:$0xff]   ;;  %v3923_v0 = vld [vmem:[%s5751_s1 + $0x80] ss:$8 sps:$4 sm:$0xff]  }
  0x21   : > { %2755 = vmatpush1.bf16.msra.mxu0 %v3863_v22  ;;  %v3924_v63 = vld [vmem:[%s5751_s1 + $0x184] ss:$8 sps:$4 sm:$0xff]   ;;  %v3932_v1 = vld [vmem:[%s5751_s1 + $0x274] ss:$8 sps:$4 sm:$0xff]   ;;  %v3929_v2 = vld [vmem:[%s5751_s1 + $0x180] ss:$8 sps:$4 sm:$0xff]  }
  0x22   : > { %2756 = vmatprep.subr.bf16.mxu0 %v3867_v23  ;;  %2798 = vmatpush1.bf16.msra.mxu1 %v3866_v24  ;;  %v3926_v3 = vld [vmem:[%s4645_s13] ss:$100 sps:$4 sm:$0xff]   ;;  %v3938_v4 = vld [vmem:[%s5751_s1 + $0x374] ss:$8 sps:$4 sm:$0xff]   ;;  %v3930_v5 = vld [vmem:[%s5751_s1 + $0x270] ss:$8 sps:$4 sm:$0xff]  }
  0x23   : > { %2799 = vmatprep.subr.bf16.mxu1 %v3870_v25  ;;  %v3933_v6 = vld [vmem:[%s4645_s13 + $0x8] ss:$100 sps:$4 sm:$0xff]   ;;  %v3936_v8 = vld [vmem:[%s5751_s1 + $0x370] ss:$8 sps:$4 sm:$0xff]   ;;  %v3947_v11 = vld [vmem:[%s5751_s1 + $0x254] ss:$8 sps:$4 sm:$0xff]  }
  0x24   : > { %v3941_v7 = vld [vmem:[%s5751_s1 + $0x264] ss:$8 sps:$4 sm:$0xff]   ;;  %v3939_v10 = vld [vmem:[%s5751_s1 + $0x260] ss:$8 sps:$4 sm:$0xff]   ;;  %v3950_v13 = vld [vmem:[%s5751_s1 + $0x354] ss:$8 sps:$4 sm:$0xff]  }
  0x25   : > { %2757 = vmatpush1.bf16.msra.mxu0 %v3869_v26  ;;  %v3944_v9 = vld [vmem:[%s5751_s1 + $0x364] ss:$8 sps:$4 sm:$0xff]   ;;  %v3942_v12 = vld [vmem:[%s5751_s1 + $0x360] ss:$8 sps:$4 sm:$0xff]   ;;  %v3945_v14 = vld [vmem:[%s5751_s1 + $0x250] ss:$8 sps:$4 sm:$0xff]  }
  0x26   : > { %2758 = vmatprep.subr.bf16.mxu0 %v3873_v27  ;;  %2800 = vmatpush1.bf16.msra.mxu1 %v3872_v28  ;;  %v3953_v15 = vld [vmem:[%s5751_s1 + $0x244] ss:$8 sps:$4 sm:$0xff]   ;;  %v3948_v16 = vld [vmem:[%s5751_s1 + $0x350] ss:$8 sps:$4 sm:$0xff]   ;;  %v3951_v18 = vld [vmem:[%s5751_s1 + $0x240] ss:$8 sps:$4 sm:$0xff]  }
  0x27   : > { %2801 = vmatprep.subr.bf16.mxu1 %v3876_v29  ;;  %v3956_v17 = vld [vmem:[%s5751_s1 + $0x344] ss:$8 sps:$4 sm:$0xff]   ;;  %v3959_v19 = vld [vmem:[%s5751_s1 + $0x234] ss:$8 sps:$4 sm:$0xff]   ;;  %v3954_v20 = vld [vmem:[%s5751_s1 + $0x340] ss:$8 sps:$4 sm:$0xff]  }
  0x28   : > { %v3962_v21 = vld [vmem:[%s5751_s1 + $0x334] ss:$8 sps:$4 sm:$0xff]   ;;  %v3957_v22 = vld [vmem:[%s5751_s1 + $0x230] ss:$8 sps:$4 sm:$0xff]   ;;  %v3965_v23 = vld [vmem:[%s5751_s1 + $0x224] ss:$8 sps:$4 sm:$0xff]  }
  0x29   : > { %2759 = vmatpush1.bf16.msra.mxu0 %v3875_v30  ;;  %v3960_v24 = vld [vmem:[%s5751_s1 + $0x330] ss:$8 sps:$4 sm:$0xff]   ;;  %v3968_v25 = vld [vmem:[%s5751_s1 + $0x324] ss:$8 sps:$4 sm:$0xff]   ;;  %v3963_v26 = vld [vmem:[%s5751_s1 + $0x220] ss:$8 sps:$4 sm:$0xff]  }
  0x2a   : > { %2760 = vmatprep.subr.bf16.mxu0 %v3879_v31  ;;  %2802 = vmatpush1.bf16.msra.mxu1 %v3878_v32  ;;  %v3971_v27 = vld [vmem:[%s5751_s1 + $0x214] ss:$8 sps:$4 sm:$0xff]   ;;  %v3966_v28 = vld [vmem:[%s5751_s1 + $0x320] ss:$8 sps:$4 sm:$0xff]   ;;  %v3969_v30 = vld [vmem:[%s5751_s1 + $0x210] ss:$8 sps:$4 sm:$0xff]  }
  0x2b   : > { %2803 = vmatprep.subr.bf16.mxu1 %v3882_v33  ;;  %v3974_v29 = vld [vmem:[%s5751_s1 + $0x314] ss:$8 sps:$4 sm:$0xff]   ;;  %v3972_v31 = vld [vmem:[%s5751_s1 + $0x310] ss:$8 sps:$4 sm:$0xff]   ;;  %v3977_v32 = vld [vmem:[%s5751_s1 + $0x204] ss:$8 sps:$4 sm:$0xff]  }
  0x2c   : > { %v4031_v33 = vld [vmem:[%s4645_s13 + $0x14] ss:$100 sps:$4 sm:$0xff]   ;;  %v4004_v51 = vld [vmem:[%s5751_s1 + $0x3c4] ss:$8 sps:$4 sm:$0xff]  }
  0x2d   : > { %2761 = vmatpush2.bf16.msra.mxu0 %v3881_v34  ;;  %v3980_v34 = vld [vmem:[%s5751_s1 + $0x304] ss:$8 sps:$4 sm:$0xff]   ;;  %v3998_v47 = vld [vmem:[%s5751_s1 + $0x3d4] ss:$8 sps:$4 sm:$0xff]  }
  0x2e   : > { %2762 = vmatprep.subr.bf16.mxu0 %v3885_v35  ;;  %2804 = vmatpush2.bf16.msra.mxu1 %v3884_v36  ;;  %v3975_v35 = vld [vmem:[%s5751_s1 + $0x200] ss:$8 sps:$4 sm:$0xff]  }
  0x2f   : > { %2805 = vmatprep.subr.bf16.mxu1 %v3888_v37  ;;  %v4037_v36 = vld [vmem:[%s4645_s13 + $0x1c] ss:$100 sps:$4 sm:$0xff]  }
  0x30   : > { %v3983_v37 = vld [vmem:[%s5751_s1 + $0x2f4] ss:$8 sps:$4 sm:$0xff]  }
  0x31   : > { %2763 = vmatpush2.bf16.msra.mxu0 %v3887_v38  ;;  %v3978_v38 = vld [vmem:[%s5751_s1 + $0x300] ss:$8 sps:$4 sm:$0xff]  }
  0x32   : > { %2764 = vmatprep.subr.bf16.mxu0 %v3891_v39  ;;  %2806 = vmatpush2.bf16.msra.mxu1 %v3890_v40  ;;  %v3986_v39 = vld [vmem:[%s5751_s1 + $0x3f4] ss:$8 sps:$4 sm:$0xff]   ;;  %v3981_v40 = vld [vmem:[%s5751_s1 + $0x2f0] ss:$8 sps:$4 sm:$0xff]  }
  0x33   : > { %2807 = vmatprep.subr.bf16.mxu1 %v3894_v41  ;;  %v3989_v41 = vld [vmem:[%s5751_s1 + $0x2e4] ss:$8 sps:$4 sm:$0xff]  }
  0x35   : > { %2765 = vmatpush2.bf16.msra.mxu0 %v3893_v42  ;;  %v3984_v42 = vld [vmem:[%s5751_s1 + $0x3f0] ss:$8 sps:$4 sm:$0xff]  }
  0x36   : > { %2766 = vmatprep.subr.bf16.mxu0 %v3897_v43  ;;  %2808 = vmatpush2.bf16.msra.mxu1 %v3896_v44  ;;  %v3992_v43 = vld [vmem:[%s5751_s1 + $0x3e4] ss:$8 sps:$4 sm:$0xff]   ;;  %v3987_v44 = vld [vmem:[%s5751_s1 + $0x2e0] ss:$8 sps:$4 sm:$0xff]  }
  0x37   : > { %2809 = vmatprep.subr.bf16.mxu1 %v3900_v45  ;;  %v3995_v45 = vld [vmem:[%s5751_s1 + $0x2d4] ss:$8 sps:$4 sm:$0xff]  }
  0x39   : > { %2767 = vmatpush2.bf16.msra.mxu0 %v3899_v46  ;;  %v3990_v46 = vld [vmem:[%s5751_s1 + $0x3e0] ss:$8 sps:$4 sm:$0xff]  }
  0x3a   : > { %2768 = vmatprep.subr.bf16.mxu0 %v3903_v48  ;;  %2810 = vmatpush2.bf16.msra.mxu1 %v3902_v49  ;;  %v3993_v48 = vld [vmem:[%s5751_s1 + $0x2d0] ss:$8 sps:$4 sm:$0xff]   ;;  %v4001_v49 = vld [vmem:[%s5751_s1 + $0x2c4] ss:$8 sps:$4 sm:$0xff]  }
  0x3b   : > { %2811 = vmatprep.subr.bf16.mxu1 %v3906_v50  ;;  %v3996_v50 = vld [vmem:[%s5751_s1 + $0x3d0] ss:$8 sps:$4 sm:$0xff]  }
  0x3d   : > { %2769 = vmatpush2.bf16.msra.mxu0 %v3905_v52  ;;  %v3999_v52 = vld [vmem:[%s5751_s1 + $0x2c0] ss:$8 sps:$4 sm:$0xff]  }
  0x3e   : > { %2770 = vmatprep.subr.bf16.mxu0 %v3909_v53  ;;  %2812 = vmatpush2.bf16.msra.mxu1 %v3908_v54  ;;  %v4007_v53 = vld [vmem:[%s5751_s1 + $0x2b4] ss:$8 sps:$4 sm:$0xff]   ;;  %v4002_v54 = vld [vmem:[%s5751_s1 + $0x3c0] ss:$8 sps:$4 sm:$0xff]  }
  0x3f   : > { %2813 = vmatprep.subr.bf16.mxu1 %v3912_v55  ;;  %v4010_v55 = vld [vmem:[%s5751_s1 + $0x3b4] ss:$8 sps:$4 sm:$0xff]  }
  0x41   : > { %2771 = vmatpush2.bf16.msra.mxu0 %v3911_v56  ;;  %v4005_v56 = vld [vmem:[%s5751_s1 + $0x2b0] ss:$8 sps:$4 sm:$0xff]  }
  0x42   : > { %2772 = vmatprep.subr.bf16.mxu0 %v3915_v57  ;;  %2814 = vmatpush2.bf16.msra.mxu1 %v3914_v58  ;;  %v4013_v57 = vld [vmem:[%s5751_s1 + $0x2a4] ss:$8 sps:$4 sm:$0xff]   ;;  %v4008_v58 = vld [vmem:[%s5751_s1 + $0x3b0] ss:$8 sps:$4 sm:$0xff]  }
  0x43   : > { %2815 = vmatprep.subr.bf16.mxu1 %v3918_v59  ;;  %v4016_v59 = vld [vmem:[%s5751_s1 + $0x3a4] ss:$8 sps:$4 sm:$0xff]  }
  0x45   : > { %2773 = vmatpush2.bf16.msra.mxu0 %v3917_v60  ;;  %v4011_v60 = vld [vmem:[%s5751_s1 + $0x2a0] ss:$8 sps:$4 sm:$0xff]  }
  0x46   : > { %2774 = vmatprep.subr.bf16.mxu0 %v3921_v61  ;;  %2816 = vmatpush2.bf16.msra.mxu1 %v3920_v62  ;;  %v4019_v61 = vld [vmem:[%s5751_s1 + $0x294] ss:$8 sps:$4 sm:$0xff]   ;;  %v4014_v62 = vld [vmem:[%s5751_s1 + $0x3a0] ss:$8 sps:$4 sm:$0xff]  }
  0x47   : > { %2817 = vmatprep.subr.bf16.mxu1 %v3924_v63  ;;  %v4022_v63 = vld [vmem:[%s5751_s1 + $0x394] ss:$8 sps:$4 sm:$0xff]  }
  0x49   : > { %2775 = vmatpush2.bf16.msra.mxu0 %v3923_v0  ;;  %v4017_v0 = vld [vmem:[%s5751_s1 + $0x290] ss:$8 sps:$4 sm:$0xff]  }
  0x4a   : > { %2830 = vmatprep.subr.bf16.mxu0 %v3932_v1  ;;  %2818 = vmatpush2.bf16.msra.mxu1 %v3929_v2  ;;  %v4025_v1 = vld [vmem:[%s5751_s1 + $0x284] ss:$8 sps:$4 sm:$0xff]   ;;  %v4020_v2 = vld [vmem:[%s5751_s1 + $0x390] ss:$8 sps:$4 sm:$0xff]  }
  0x4b   : > { %2873 = vmatprep.subr.bf16.mxu1 %v3938_v4  ;;  %v4023_v4 = vld [vmem:[%s5751_s1 + $0x280] ss:$8 sps:$4 sm:$0xff]  }
  0x4c   : > { %2777 = vmatmul.mubr.bf16.vlgmr.msra.gmra.mxu0 %v3926_v3  ;;  %v4028_v3 = vld [vmem:[%s5751_s1 + $0x384] ss:$8 sps:$4 sm:$0xff]  }
  0x4d   : > { %2831 = vmatpush1.bf16.msra.mxu0 %v3930_v5  ;;  %2820 = vmatmul.mubr.bf16.vlgmr.msra.gmra.mxu1 %v3933_v6  ;;  %v4034_v5 = vld [vmem:[%s5751_s1 + $0x474] ss:$8 sps:$4 sm:$0xff]   ;;  %v4026_v6 = vld [vmem:[%s5751_s1 + $0x380] ss:$8 sps:$4 sm:$0xff]  }
  0x4e   : > { %2832 = vmatprep.subr.bf16.mxu0 %v3941_v7  ;;  %2874 = vmatpush1.bf16.msra.mxu1 %v3936_v8  ;;  %v4029_v7 = vld [vmem:[%s4645_s13 + $0x10] ss:$100 sps:$4 sm:$0xff]  }
  0x4f   : > { %2875 = vmatprep.subr.bf16.mxu1 %v3944_v9  ;;  %2862 = vmatprep.mubr.bf16.mxu0 %v4031_v33  ;;  %v4040_v8 = vld [vmem:[%s5751_s1 + $0x574] ss:$8 sps:$4 sm:$0xff]   ;;  %v4032_v9 = vld [vmem:[%s5751_s1 + $0x470] ss:$8 sps:$4 sm:$0xff]  }
  0x50   : > { %2905 = vmatprep.mubr.bf16.mxu1 %v4037_v36  ;;  %v4073_v33 = vld [vmem:[%s5751_s1 + $0x414] ss:$8 sps:$4 sm:$0xff]   ;;  %v4071_v36 = vld [vmem:[%s5751_s1 + $0x410] ss:$8 sps:$4 sm:$0xff]  }
  0x51   : > { %2833 = vmatpush1.bf16.msra.mxu0 %v3939_v10  ;;  %v4035_v10 = vld [vmem:[%s4645_s13 + $0x18] ss:$100 sps:$4 sm:$0xff]  }
  0x52   : > { %2834 = vmatprep.subr.bf16.mxu0 %v3947_v11  ;;  %2876 = vmatpush1.bf16.msra.mxu1 %v3942_v12  ;;  %v4043_v11 = vld [vmem:[%s5751_s1 + $0x464] ss:$8 sps:$4 sm:$0xff]   ;;  %v4038_v12 = vld [vmem:[%s5751_s1 + $0x570] ss:$8 sps:$4 sm:$0xff]  }
  0x53   : > { %2877 = vmatprep.subr.bf16.mxu1 %v3950_v13  ;;  %v4046_v13 = vld [vmem:[%s5751_s1 + $0x564] ss:$8 sps:$4 sm:$0xff]  }
  0x55   : > { %2835 = vmatpush1.bf16.msra.mxu0 %v3945_v14  ;;  %v4041_v14 = vld [vmem:[%s5751_s1 + $0x460] ss:$8 sps:$4 sm:$0xff]  }
  0x56   : > { %2836 = vmatprep.subr.bf16.mxu0 %v3953_v15  ;;  %2878 = vmatpush1.bf16.msra.mxu1 %v3948_v16  ;;  %v4049_v15 = vld [vmem:[%s5751_s1 + $0x454] ss:$8 sps:$4 sm:$0xff]   ;;  %v4044_v16 = vld [vmem:[%s5751_s1 + $0x560] ss:$8 sps:$4 sm:$0xff]  }
  0x57   : > { %2879 = vmatprep.subr.bf16.mxu1 %v3956_v17  ;;  %v4052_v17 = vld [vmem:[%s5751_s1 + $0x554] ss:$8 sps:$4 sm:$0xff]  }
  0x59   : > { %2837 = vmatpush1.bf16.msra.mxu0 %v3951_v18  ;;  %v4133_v18 = vld [vmem:[%s4645_s13 + $0x24] ss:$100 sps:$4 sm:$0xff]  }
  0x5a   : > { %2838 = vmatprep.subr.bf16.mxu0 %v3959_v19  ;;  %2880 = vmatpush1.bf16.msra.mxu1 %v3954_v20  ;;  %v4047_v19 = vld [vmem:[%s5751_s1 + $0x450] ss:$8 sps:$4 sm:$0xff]  }
  0x5b   : > { %2881 = vmatprep.subr.bf16.mxu1 %v3962_v21  ;;  %v4050_v20 = vld [vmem:[%s5751_s1 + $0x550] ss:$8 sps:$4 sm:$0xff]   ;;  %v4055_v21 = vld [vmem:[%s5751_s1 + $0x444] ss:$8 sps:$4 sm:$0xff]  }
  0x5d   : > { %2839 = vmatpush1.bf16.msra.mxu0 %v3957_v22  ;;  %v4139_v22 = vld [vmem:[%s4645_s13 + $0x2c] ss:$100 sps:$4 sm:$0xff]  }
  0x5e   : > { %2840 = vmatprep.subr.bf16.mxu0 %v3965_v23  ;;  %2882 = vmatpush1.bf16.msra.mxu1 %v3960_v24  ;;  %v4058_v23 = vld [vmem:[%s5751_s1 + $0x544] ss:$8 sps:$4 sm:$0xff]   ;;  %v4053_v24 = vld [vmem:[%s5751_s1 + $0x440] ss:$8 sps:$4 sm:$0xff]  }
  0x5f   : > { %2883 = vmatprep.subr.bf16.mxu1 %v3968_v25  ;;  %v4061_v25 = vld [vmem:[%s5751_s1 + $0x434] ss:$8 sps:$4 sm:$0xff]  }
  0x61   : > { %2841 = vmatpush1.bf16.msra.mxu0 %v3963_v26  ;;  %v4056_v26 = vld [vmem:[%s5751_s1 + $0x540] ss:$8 sps:$4 sm:$0xff]  }
  0x62   : > { %2842 = vmatprep.subr.bf16.mxu0 %v3971_v27  ;;  %2884 = vmatpush1.bf16.msra.mxu1 %v3966_v28  ;;  %v4064_v27 = vld [vmem:[%s5751_s1 + $0x534] ss:$8 sps:$4 sm:$0xff]   ;;  %v4059_v28 = vld [vmem:[%s5751_s1 + $0x430] ss:$8 sps:$4 sm:$0xff]  }
  0x63   : > { %2885 = vmatprep.subr.bf16.mxu1 %v3974_v29  ;;  %v4067_v29 = vld [vmem:[%s5751_s1 + $0x424] ss:$8 sps:$4 sm:$0xff]  }
  0x65   : > { %2843 = vmatpush1.bf16.msra.mxu0 %v3969_v30  ;;  %v4062_v30 = vld [vmem:[%s5751_s1 + $0x530] ss:$8 sps:$4 sm:$0xff]  }
  0x66   : > { %2844 = vmatprep.subr.bf16.mxu0 %v3977_v32  ;;  %2886 = vmatpush1.bf16.msra.mxu1 %v3972_v31  ;;  %v4070_v31 = vld [vmem:[%s5751_s1 + $0x524] ss:$8 sps:$4 sm:$0xff]   ;;  %v4065_v32 = vld [vmem:[%s5751_s1 + $0x420] ss:$8 sps:$4 sm:$0xff]  }
  0x67   : > { %2887 = vmatprep.subr.bf16.mxu1 %v3980_v34  ;;  %v4068_v34 = vld [vmem:[%s5751_s1 + $0x520] ss:$8 sps:$4 sm:$0xff]  }
  0x69   : > { %2845 = vmatpush1.bf16.msra.mxu0 %v3975_v35  ;;  %v4076_v35 = vld [vmem:[%s5751_s1 + $0x514] ss:$8 sps:$4 sm:$0xff]  }
  0x6a   : > { %2846 = vmatprep.subr.bf16.mxu0 %v3983_v37  ;;  %2888 = vmatpush1.bf16.msra.mxu1 %v3978_v38  ;;  %v4079_v37 = vld [vmem:[%s5751_s1 + $0x404] ss:$8 sps:$4 sm:$0xff]   ;;  %v4074_v38 = vld [vmem:[%s5751_s1 + $0x510] ss:$8 sps:$4 sm:$0xff]  }
  0x6b   : > { %2889 = vmatprep.subr.bf16.mxu1 %v3986_v39  ;;  %v4082_v39 = vld [vmem:[%s5751_s1 + $0x504] ss:$8 sps:$4 sm:$0xff]  }
  0x6d   : > { %2847 = vmatpush2.bf16.msra.mxu0 %v3981_v40  ;;  %v4077_v40 = vld [vmem:[%s5751_s1 + $0x400] ss:$8 sps:$4 sm:$0xff]  }
  0x6e   : > { %2848 = vmatprep.subr.bf16.mxu0 %v3989_v41  ;;  %2890 = vmatpush2.bf16.msra.mxu1 %v3984_v42  ;;  %v4085_v41 = vld [vmem:[%s5751_s1 + $0x4f4] ss:$8 sps:$4 sm:$0xff]   ;;  %v4080_v42 = vld [vmem:[%s5751_s1 + $0x500] ss:$8 sps:$4 sm:$0xff]  }
  0x6f   : > { %2891 = vmatprep.subr.bf16.mxu1 %v3992_v43  ;;  %v4088_v43 = vld [vmem:[%s5751_s1 + $0x5f4] ss:$8 sps:$4 sm:$0xff]  }
  0x71   : > { %2849 = vmatpush2.bf16.msra.mxu0 %v3987_v44  ;;  %v4083_v44 = vld [vmem:[%s5751_s1 + $0x4f0] ss:$8 sps:$4 sm:$0xff]  }
  0x72   : > { %2850 = vmatprep.subr.bf16.mxu0 %v3995_v45  ;;  %2892 = vmatpush2.bf16.msra.mxu1 %v3990_v46  ;;  %v4091_v45 = vld [vmem:[%s5751_s1 + $0x4e4] ss:$8 sps:$4 sm:$0xff]   ;;  %v4086_v46 = vld [vmem:[%s5751_s1 + $0x5f0] ss:$8 sps:$4 sm:$0xff]  }
  0x73   : > { %2893 = vmatprep.subr.bf16.mxu1 %v3998_v47  ;;  %v4094_v47 = vld [vmem:[%s5751_s1 + $0x5e4] ss:$8 sps:$4 sm:$0xff]  }
  0x75   : > { %2851 = vmatpush2.bf16.msra.mxu0 %v3993_v48  ;;  %v4089_v48 = vld [vmem:[%s5751_s1 + $0x4e0] ss:$8 sps:$4 sm:$0xff]  }
  0x76   : > { %2852 = vmatprep.subr.bf16.mxu0 %v4001_v49  ;;  %2894 = vmatpush2.bf16.msra.mxu1 %v3996_v50  ;;  %v4097_v49 = vld [vmem:[%s5751_s1 + $0x4d4] ss:$8 sps:$4 sm:$0xff]   ;;  %v4092_v50 = vld [vmem:[%s5751_s1 + $0x5e0] ss:$8 sps:$4 sm:$0xff]  }
  0x77   : > { %2895 = vmatprep.subr.bf16.mxu1 %v4004_v51  ;;  %v4100_v51 = vld [vmem:[%s5751_s1 + $0x5d4] ss:$8 sps:$4 sm:$0xff]  }
  0x79   : > { %2853 = vmatpush2.bf16.msra.mxu0 %v3999_v52  ;;  %v4095_v52 = vld [vmem:[%s5751_s1 + $0x4d0] ss:$8 sps:$4 sm:$0xff]  }
  0x7a   : > { %2854 = vmatprep.subr.bf16.mxu0 %v4007_v53  ;;  %2896 = vmatpush2.bf16.msra.mxu1 %v4002_v54  ;;  %v4103_v53 = vld [vmem:[%s5751_s1 + $0x4c4] ss:$8 sps:$4 sm:$0xff]   ;;  %v4098_v54 = vld [vmem:[%s5751_s1 + $0x5d0] ss:$8 sps:$4 sm:$0xff]  }
  0x7b   : > { %2897 = vmatprep.subr.bf16.mxu1 %v4010_v55  ;;  %v4106_v55 = vld [vmem:[%s5751_s1 + $0x5c4] ss:$8 sps:$4 sm:$0xff]  }
  0x7d   : > { %2855 = vmatpush2.bf16.msra.mxu0 %v4005_v56  ;;  %v4101_v56 = vld [vmem:[%s5751_s1 + $0x4c0] ss:$8 sps:$4 sm:$0xff]  }
  0x7e   : > { %2856 = vmatprep.subr.bf16.mxu0 %v4013_v57  ;;  %2898 = vmatpush2.bf16.msra.mxu1 %v4008_v58  ;;  %v4109_v57 = vld [vmem:[%s5751_s1 + $0x4b4] ss:$8 sps:$4 sm:$0xff]   ;;  %v4104_v58 = vld [vmem:[%s5751_s1 + $0x5c0] ss:$8 sps:$4 sm:$0xff]  }
  0x7f   : > { %2899 = vmatprep.subr.bf16.mxu1 %v4016_v59  ;;  %v4112_v59 = vld [vmem:[%s5751_s1 + $0x5b4] ss:$8 sps:$4 sm:$0xff]  }
  0x81   : > { %2857 = vmatpush2.bf16.msra.mxu0 %v4011_v60  ;;  %v4107_v60 = vld [vmem:[%s5751_s1 + $0x4b0] ss:$8 sps:$4 sm:$0xff]  }
  0x82   : > { %2858 = vmatprep.subr.bf16.mxu0 %v4019_v61  ;;  %2900 = vmatpush2.bf16.msra.mxu1 %v4014_v62  ;;  %v4115_v61 = vld [vmem:[%s5751_s1 + $0x4a4] ss:$8 sps:$4 sm:$0xff]   ;;  %v4110_v62 = vld [vmem:[%s5751_s1 + $0x5b0] ss:$8 sps:$4 sm:$0xff]  }
  0x83   : > { %2901 = vmatprep.subr.bf16.mxu1 %v4022_v63  ;;  %v4118_v63 = vld [vmem:[%s5751_s1 + $0x5a4] ss:$8 sps:$4 sm:$0xff]  }
  0x85   : > { %2859 = vmatpush2.bf16.msra.mxu0 %v4017_v0  ;;  %v4113_v0 = vld [vmem:[%s5751_s1 + $0x4a0] ss:$8 sps:$4 sm:$0xff]  }
  0x86   : > { %2860 = vmatprep.subr.bf16.mxu0 %v4025_v1  ;;  %2902 = vmatpush2.bf16.msra.mxu1 %v4020_v2  ;;  %v4121_v1 = vld [vmem:[%s5751_s1 + $0x494] ss:$8 sps:$4 sm:$0xff]   ;;  %v4116_v2 = vld [vmem:[%s5751_s1 + $0x5a0] ss:$8 sps:$4 sm:$0xff]  }
  0x87   : > { %2903 = vmatprep.subr.bf16.mxu1 %v4028_v3  ;;  %v4124_v3 = vld [vmem:[%s5751_s1 + $0x594] ss:$8 sps:$4 sm:$0xff]  }
  0x89   : > { %2861 = vmatpush2.bf16.msra.mxu0 %v4023_v4  ;;  %v4119_v4 = vld [vmem:[%s5751_s1 + $0x490] ss:$8 sps:$4 sm:$0xff]  }
  0x8a   : > { %2916 = vmatprep.subr.bf16.mxu0 %v4034_v5  ;;  %2904 = vmatpush2.bf16.msra.mxu1 %v4026_v6  ;;  %v4127_v5 = vld [vmem:[%s5751_s1 + $0x484] ss:$8 sps:$4 sm:$0xff]   ;;  %v4122_v6 = vld [vmem:[%s5751_s1 + $0x590] ss:$8 sps:$4 sm:$0xff]  }
  0x8b   : > { %2959 = vmatprep.subr.bf16.mxu1 %v4040_v8  ;;  %v4130_v8 = vld [vmem:[%s5751_s1 + $0x584] ss:$8 sps:$4 sm:$0xff]  }
  0x8c   : > { %2863 = vmatmul.mubr.bf16.vlgmr.msra.gmra.mxu0 %v4029_v7  ;;  %v4125_v7 = vld [vmem:[%s5751_s1 + $0x480] ss:$8 sps:$4 sm:$0xff]  }
  0x8d   : > { %2917 = vmatpush1.bf16.msra.mxu0 %v4032_v9  ;;  %2906 = vmatmul.mubr.bf16.vlgmr.msra.gmra.mxu1 %v4035_v10  ;;  %v4128_v9 = vld [vmem:[%s5751_s1 + $0x580] ss:$8 sps:$4 sm:$0xff]   ;;  %v4136_v10 = vld [vmem:[%s5751_s1 + $0x674] ss:$8 sps:$4 sm:$0xff]  }
  0x8e   : > { %2918 = vmatprep.subr.bf16.mxu0 %v4043_v11  ;;  %2960 = vmatpush1.bf16.msra.mxu1 %v4038_v12  ;;  %v4131_v11 = vld [vmem:[%s4645_s13 + $0x20] ss:$100 sps:$4 sm:$0xff]   ;;  %v4134_v12 = vld [vmem:[%s5751_s1 + $0x670] ss:$8 sps:$4 sm:$0xff]  }
  0x8f   : > { %2961 = vmatprep.subr.bf16.mxu1 %v4046_v13  ;;  %2948 = vmatprep.mubr.bf16.mxu0 %v4133_v18  ;;  %v4137_v13 = vld [vmem:[%s4645_s13 + $0x28] ss:$100 sps:$4 sm:$0xff]   ;;  %v4241_v18 = vld [vmem:[%s4645_s13 + $0x3c] ss:$100 sps:$4 sm:$0xff]  }
  0x90   : > { %2991 = vmatprep.mubr.bf16.mxu1 %v4139_v22  ;;  %v4146_v22 = vld [vmem:[%s5751_s1 + $0x760] ss:$8 sps:$4 sm:$0xff]  }
  0x91   : > { %2919 = vmatpush1.bf16.msra.mxu0 %v4041_v14  ;;  %v4142_v14 = vld [vmem:[%s5751_s1 + $0x774] ss:$8 sps:$4 sm:$0xff]  }
  0x92   : > { %2920 = vmatprep.subr.bf16.mxu0 %v4049_v15  ;;  %2962 = vmatpush1.bf16.msra.mxu1 %v4044_v16  ;;  %v4235_v15 = vld [vmem:[%s4645_s13 + $0x34] ss:$100 sps:$4 sm:$0xff]   ;;  %v4145_v16 = vld [vmem:[%s5751_s1 + $0x664] ss:$8 sps:$4 sm:$0xff]  }
  0x93   : > { %2963 = vmatprep.subr.bf16.mxu1 %v4052_v17  ;;  %v4140_v17 = vld [vmem:[%s5751_s1 + $0x770] ss:$8 sps:$4 sm:$0xff]  }
  0x95   : > { %2921 = vmatpush1.bf16.msra.mxu0 %v4047_v19  ;;  %v4148_v19 = vld [vmem:[%s5751_s1 + $0x764] ss:$8 sps:$4 sm:$0xff]  }
  0x96   : > { %2922 = vmatprep.subr.bf16.mxu0 %v4055_v21  ;;  %2964 = vmatpush1.bf16.msra.mxu1 %v4050_v20  ;;  %v4143_v20 = vld [vmem:[%s5751_s1 + $0x660] ss:$8 sps:$4 sm:$0xff]   ;;  %v4151_v21 = vld [vmem:[%s5751_s1 + $0x654] ss:$8 sps:$4 sm:$0xff]  }
  0x97   : > { %2965 = vmatprep.subr.bf16.mxu1 %v4058_v23  ;;  %v4154_v23 = vld [vmem:[%s5751_s1 + $0x754] ss:$8 sps:$4 sm:$0xff]  }
  0x99   : > { %2923 = vmatpush1.bf16.msra.mxu0 %v4053_v24  ;;  %v4149_v24 = vld [vmem:[%s5751_s1 + $0x650] ss:$8 sps:$4 sm:$0xff]  }
  0x9a   : > { %2924 = vmatprep.subr.bf16.mxu0 %v4061_v25  ;;  %2966 = vmatpush1.bf16.msra.mxu1 %v4056_v26  ;;  %v4157_v25 = vld [vmem:[%s5751_s1 + $0x644] ss:$8 sps:$4 sm:$0xff]   ;;  %v4152_v26 = vld [vmem:[%s5751_s1 + $0x750] ss:$8 sps:$4 sm:$0xff]  }
  0x9b   : > { %2967 = vmatprep.subr.bf16.mxu1 %v4064_v27  ;;  %v4160_v27 = vld [vmem:[%s5751_s1 + $0x744] ss:$8 sps:$4 sm:$0xff]  }
  0x9d   : > { %2925 = vmatpush1.bf16.msra.mxu0 %v4059_v28  ;;  %v4155_v28 = vld [vmem:[%s5751_s1 + $0x640] ss:$8 sps:$4 sm:$0xff]  }
  0x9e   : > { %2926 = vmatprep.subr.bf16.mxu0 %v4067_v29  ;;  %2968 = vmatpush1.bf16.msra.mxu1 %v4062_v30  ;;  %v4163_v29 = vld [vmem:[%s5751_s1 + $0x634] ss:$8 sps:$4 sm:$0xff]   ;;  %v4158_v30 = vld [vmem:[%s5751_s1 + $0x740] ss:$8 sps:$4 sm:$0xff]  }
  0x9f   : > { %2969 = vmatprep.subr.bf16.mxu1 %v4070_v31  ;;  %v4166_v31 = vld [vmem:[%s5751_s1 + $0x734] ss:$8 sps:$4 sm:$0xff]  }
  0xa1   : > { %2927 = vmatpush1.bf16.msra.mxu0 %v4065_v32  ;;  %v4161_v32 = vld [vmem:[%s5751_s1 + $0x630] ss:$8 sps:$4 sm:$0xff]  }
  0xa2   : > { %2928 = vmatprep.subr.bf16.mxu0 %v4073_v33  ;;  %2970 = vmatpush1.bf16.msra.mxu1 %v4068_v34  ;;  %v4169_v33 = vld [vmem:[%s5751_s1 + $0x624] ss:$8 sps:$4 sm:$0xff]   ;;  %v4164_v34 = vld [vmem:[%s5751_s1 + $0x730] ss:$8 sps:$4 sm:$0xff]  }
  0xa3   : > { %2971 = vmatprep.subr.bf16.mxu1 %v4076_v35  ;;  %v4172_v35 = vld [vmem:[%s5751_s1 + $0x724] ss:$8 sps:$4 sm:$0xff]  }
  0xa5   : > { %2929 = vmatpush1.bf16.msra.mxu0 %v4071_v36  ;;  %v4167_v36 = vld [vmem:[%s5751_s1 + $0x620] ss:$8 sps:$4 sm:$0xff]  }
  0xa6   : > { %2930 = vmatprep.subr.bf16.mxu0 %v4079_v37  ;;  %2972 = vmatpush1.bf16.msra.mxu1 %v4074_v38  ;;  %v4175_v37 = vld [vmem:[%s5751_s1 + $0x614] ss:$8 sps:$4 sm:$0xff]   ;;  %v4170_v38 = vld [vmem:[%s5751_s1 + $0x720] ss:$8 sps:$4 sm:$0xff]  }
  0xa7   : > { %2973 = vmatprep.subr.bf16.mxu1 %v4082_v39  ;;  %v4178_v39 = vld [vmem:[%s5751_s1 + $0x714] ss:$8 sps:$4 sm:$0xff]  }
  0xa9   : > { %2931 = vmatpush1.bf16.msra.mxu0 %v4077_v40  ;;  %v4173_v40 = vld [vmem:[%s5751_s1 + $0x610] ss:$8 sps:$4 sm:$0xff]  }
  0xaa   : > { %2932 = vmatprep.subr.bf16.mxu0 %v4085_v41  ;;  %2974 = vmatpush1.bf16.msra.mxu1 %v4080_v42  ;;  %v4181_v41 = vld [vmem:[%s5751_s1 + $0x604] ss:$8 sps:$4 sm:$0xff]   ;;  %v4176_v42 = vld [vmem:[%s5751_s1 + $0x710] ss:$8 sps:$4 sm:$0xff]  }
  0xab   : > { %2975 = vmatprep.subr.bf16.mxu1 %v4088_v43  ;;  %v4184_v43 = vld [vmem:[%s5751_s1 + $0x704] ss:$8 sps:$4 sm:$0xff]  }
  0xad   : > { %2933 = vmatpush2.bf16.msra.mxu0 %v4083_v44  ;;  %v4179_v44 = vld [vmem:[%s5751_s1 + $0x600] ss:$8 sps:$4 sm:$0xff]  }
  0xae   : > { %2934 = vmatprep.subr.bf16.mxu0 %v4091_v45  ;;  %2976 = vmatpush2.bf16.msra.mxu1 %v4086_v46  ;;  %v4187_v45 = vld [vmem:[%s5751_s1 + $0x6f4] ss:$8 sps:$4 sm:$0xff]   ;;  %v4182_v46 = vld [vmem:[%s5751_s1 + $0x700] ss:$8 sps:$4 sm:$0xff]  }
  0xaf   : > { %2977 = vmatprep.subr.bf16.mxu1 %v4094_v47  ;;  %v4190_v47 = vld [vmem:[%s5751_s1 + $0x7f4] ss:$8 sps:$4 sm:$0xff]  }
  0xb1   : > { %2935 = vmatpush2.bf16.msra.mxu0 %v4089_v48  ;;  %v4185_v48 = vld [vmem:[%s5751_s1 + $0x6f0] ss:$8 sps:$4 sm:$0xff]  }
  0xb2   : > { %2936 = vmatprep.subr.bf16.mxu0 %v4097_v49  ;;  %2978 = vmatpush2.bf16.msra.mxu1 %v4092_v50  ;;  %v4193_v49 = vld [vmem:[%s5751_s1 + $0x6e4] ss:$8 sps:$4 sm:$0xff]   ;;  %v4188_v50 = vld [vmem:[%s5751_s1 + $0x7f0] ss:$8 sps:$4 sm:$0xff]  }
  0xb3   : > { %2979 = vmatprep.subr.bf16.mxu1 %v4100_v51  ;;  %v4196_v51 = vld [vmem:[%s5751_s1 + $0x7e4] ss:$8 sps:$4 sm:$0xff]  }
  0xb5   : > { %2937 = vmatpush2.bf16.msra.mxu0 %v4095_v52  ;;  %v4191_v52 = vld [vmem:[%s5751_s1 + $0x6e0] ss:$8 sps:$4 sm:$0xff]  }
  0xb6   : > { %2938 = vmatprep.subr.bf16.mxu0 %v4103_v53  ;;  %2980 = vmatpush2.bf16.msra.mxu1 %v4098_v54  ;;  %v4199_v53 = vld [vmem:[%s5751_s1 + $0x6d4] ss:$8 sps:$4 sm:$0xff]   ;;  %v4194_v54 = vld [vmem:[%s5751_s1 + $0x7e0] ss:$8 sps:$4 sm:$0xff]  }
  0xb7   : > { %2981 = vmatprep.subr.bf16.mxu1 %v4106_v55  ;;  %v4202_v55 = vld [vmem:[%s5751_s1 + $0x7d4] ss:$8 sps:$4 sm:$0xff]  }
  0xb9   : > { %2939 = vmatpush2.bf16.msra.mxu0 %v4101_v56  ;;  %v4197_v56 = vld [vmem:[%s5751_s1 + $0x6d0] ss:$8 sps:$4 sm:$0xff]  }
  0xba   : > { %2940 = vmatprep.subr.bf16.mxu0 %v4109_v57  ;;  %2982 = vmatpush2.bf16.msra.mxu1 %v4104_v58  ;;  %v4205_v57 = vld [vmem:[%s5751_s1 + $0x6c4] ss:$8 sps:$4 sm:$0xff]   ;;  %v4200_v58 = vld [vmem:[%s5751_s1 + $0x7d0] ss:$8 sps:$4 sm:$0xff]  }
  0xbb   : > { %2983 = vmatprep.subr.bf16.mxu1 %v4112_v59  ;;  %v4208_v59 = vld [vmem:[%s5751_s1 + $0x7c4] ss:$8 sps:$4 sm:$0xff]  }
  0xbd   : > { %2941 = vmatpush2.bf16.msra.mxu0 %v4107_v60  ;;  %v4203_v60 = vld [vmem:[%s5751_s1 + $0x6c0] ss:$8 sps:$4 sm:$0xff]  }
  0xbe   : > { %2942 = vmatprep.subr.bf16.mxu0 %v4115_v61  ;;  %2984 = vmatpush2.bf16.msra.mxu1 %v4110_v62  ;;  %v4211_v61 = vld [vmem:[%s5751_s1 + $0x6b4] ss:$8 sps:$4 sm:$0xff]   ;;  %v4206_v62 = vld [vmem:[%s5751_s1 + $0x7c0] ss:$8 sps:$4 sm:$0xff]  }
  0xbf   : > { %2985 = vmatprep.subr.bf16.mxu1 %v4118_v63  ;;  %v4214_v63 = vld [vmem:[%s5751_s1 + $0x7b4] ss:$8 sps:$4 sm:$0xff]  }
  0xc1   : > { %2943 = vmatpush2.bf16.msra.mxu0 %v4113_v0  ;;  %v4209_v0 = vld [vmem:[%s5751_s1 + $0x6b0] ss:$8 sps:$4 sm:$0xff]  }
  0xc2   : > { %2944 = vmatprep.subr.bf16.mxu0 %v4121_v1  ;;  %2986 = vmatpush2.bf16.msra.mxu1 %v4116_v2  ;;  %v4217_v1 = vld [vmem:[%s5751_s1 + $0x6a4] ss:$8 sps:$4 sm:$0xff]   ;;  %v4212_v2 = vld [vmem:[%s5751_s1 + $0x7b0] ss:$8 sps:$4 sm:$0xff]  }
  0xc3   : > { %2987 = vmatprep.subr.bf16.mxu1 %v4124_v3  ;;  %v4220_v3 = vld [vmem:[%s5751_s1 + $0x7a4] ss:$8 sps:$4 sm:$0xff]  }
  0xc5   : > { %2945 = vmatpush2.bf16.msra.mxu0 %v4119_v4  ;;  %v4215_v4 = vld [vmem:[%s5751_s1 + $0x6a0] ss:$8 sps:$4 sm:$0xff]  }
  0xc6   : > { %2946 = vmatprep.subr.bf16.mxu0 %v4127_v5  ;;  %2988 = vmatpush2.bf16.msra.mxu1 %v4122_v6  ;;  %v4223_v5 = vld [vmem:[%s5751_s1 + $0x694] ss:$8 sps:$4 sm:$0xff]   ;;  %v4218_v6 = vld [vmem:[%s5751_s1 + $0x7a0] ss:$8 sps:$4 sm:$0xff]  }
  0xc7   : > { %2989 = vmatprep.subr.bf16.mxu1 %v4130_v8  ;;  %v4221_v8 = vld [vmem:[%s5751_s1 + $0x690] ss:$8 sps:$4 sm:$0xff]  }
  0xc9   : > { %2947 = vmatpush2.bf16.msra.mxu0 %v4125_v7  ;;  %v4226_v7 = vld [vmem:[%s5751_s1 + $0x794] ss:$8 sps:$4 sm:$0xff]  }
  0xca   : > { %3002 = vmatprep.subr.bf16.mxu0 %v4136_v10  ;;  %2990 = vmatpush2.bf16.msra.mxu1 %v4128_v9  ;;  %v4229_v9 = vld [vmem:[%s5751_s1 + $0x684] ss:$8 sps:$4 sm:$0xff]   ;;  %v4224_v10 = vld [vmem:[%s5751_s1 + $0x790] ss:$8 sps:$4 sm:$0xff]  }
  0xcb   : > { %3045 = vmatprep.subr.bf16.mxu1 %v4142_v14  ;;  %v4238_v14 = vld [vmem:[%s5751_s1 + $0x874] ss:$8 sps:$4 sm:$0xff]  }
  0xcc   : > { %2949 = vmatmul.mubr.bf16.vlgmr.msra.gmra.mxu0 %v4131_v11  ;;  %v4227_v11 = vld [vmem:[%s5751_s1 + $0x680] ss:$8 sps:$4 sm:$0xff]  }
  0xcd   : > { %3003 = vmatpush1.bf16.msra.mxu0 %v4134_v12  ;;  %3034 = vmatprep.mubr.bf16.mxu0 %v4235_v15  ;;  %v4232_v12 = vld [vmem:[%s5751_s1 + $0x784] ss:$8 sps:$4 sm:$0xff]   ;;  %v4233_v15 = vld [vmem:[%s4645_s13 + $0x30] ss:$100 sps:$4 sm:$0xff]  }
  0xce   : > { %2992 = vmatmul.mubr.bf16.vlgmr.msra.gmra.mxu1 %v4137_v13  ;;  %3004 = vmatprep.subr.bf16.mxu0 %v4145_v16  ;;  %v4230_v13 = vld [vmem:[%s5751_s1 + $0x780] ss:$8 sps:$4 sm:$0xff]   ;;  %v4236_v16 = vld [vmem:[%s5751_s1 + $0x870] ss:$8 sps:$4 sm:$0xff]  }
  0xcf   : > { %3046 = vmatpush1.bf16.msra.mxu1 %v4140_v17  ;;  %3077 = vmatprep.mubr.bf16.mxu1 %v4241_v18  ;;  %v4239_v17 = vld [vmem:[%s4645_s13 + $0x38] ss:$100 sps:$4 sm:$0xff]  }
  0xd0   : > { %3047 = vmatprep.subr.bf16.mxu1 %v4148_v19  ;;  %v4244_v18 = vld [vmem:[%s5751_s1 + $0x974] ss:$8 sps:$4 sm:$0xff]   ;;  %v4337_v19 = vld [vmem:[%s4645_s13 + $0x44] ss:$100 sps:$4 sm:$0xff]  }
  0xd1   : > { %3005 = vmatpush1.bf16.msra.mxu0 %v4143_v20  ;;  %v4247_v20 = vld [vmem:[%s5751_s1 + $0x864] ss:$8 sps:$4 sm:$0xff]  }
  0xd2   : > { %3006 = vmatprep.subr.bf16.mxu0 %v4151_v21  ;;  %v4242_v21 = vld [vmem:[%s5751_s1 + $0x970] ss:$8 sps:$4 sm:$0xff]  }
  0xd3   : > { %3048 = vmatpush1.bf16.msra.mxu1 %v4146_v22  ;;  %v4343_v22 = vld [vmem:[%s4645_s13 + $0x4c] ss:$100 sps:$4 sm:$0xff]  }
  0xd4   : > { %3049 = vmatprep.subr.bf16.mxu1 %v4154_v23  ;;  %v4250_v23 = vld [vmem:[%s5751_s1 + $0x964] ss:$8 sps:$4 sm:$0xff]  }
  0xd5   : > { %3007 = vmatpush1.bf16.msra.mxu0 %v4149_v24  ;;  %v4245_v24 = vld [vmem:[%s5751_s1 + $0x860] ss:$8 sps:$4 sm:$0xff]  }
  0xd6   : > { %3008 = vmatprep.subr.bf16.mxu0 %v4157_v25  ;;  %v4253_v25 = vld [vmem:[%s5751_s1 + $0x854] ss:$8 sps:$4 sm:$0xff]  }
  0xd7   : > { %3050 = vmatpush1.bf16.msra.mxu1 %v4152_v26  ;;  %v4248_v26 = vld [vmem:[%s5751_s1 + $0x960] ss:$8 sps:$4 sm:$0xff]  }
  0xd8   : > { %3051 = vmatprep.subr.bf16.mxu1 %v4160_v27  ;;  %v4256_v27 = vld [vmem:[%s5751_s1 + $0x954] ss:$8 sps:$4 sm:$0xff]  }
  0xd9   : > { %3009 = vmatpush1.bf16.msra.mxu0 %v4155_v28  ;;  %v4251_v28 = vld [vmem:[%s5751_s1 + $0x850] ss:$8 sps:$4 sm:$0xff]  }
  0xda   : > { %3010 = vmatprep.subr.bf16.mxu0 %v4163_v29  ;;  %v4259_v29 = vld [vmem:[%s5751_s1 + $0x844] ss:$8 sps:$4 sm:$0xff]  }
  0xdb   : > { %3052 = vmatpush1.bf16.msra.mxu1 %v4158_v30  ;;  %v4254_v30 = vld [vmem:[%s5751_s1 + $0x950] ss:$8 sps:$4 sm:$0xff]  }
  0xdc   : > { %3053 = vmatprep.subr.bf16.mxu1 %v4166_v31  ;;  %v4262_v31 = vld [vmem:[%s5751_s1 + $0x944] ss:$8 sps:$4 sm:$0xff]  }
  0xdd   : > { %3011 = vmatpush1.bf16.msra.mxu0 %v4161_v32  ;;  %v4257_v32 = vld [vmem:[%s5751_s1 + $0x840] ss:$8 sps:$4 sm:$0xff]  }
  0xde   : > { %3012 = vmatprep.subr.bf16.mxu0 %v4169_v33  ;;  %v4265_v33 = vld [vmem:[%s5751_s1 + $0x834] ss:$8 sps:$4 sm:$0xff]  }
  0xdf   : > { %3054 = vmatpush1.bf16.msra.mxu1 %v4164_v34  ;;  %v4260_v34 = vld [vmem:[%s5751_s1 + $0x940] ss:$8 sps:$4 sm:$0xff]  }
  0xe0   : > { %3055 = vmatprep.subr.bf16.mxu1 %v4172_v35  ;;  %v4268_v35 = vld [vmem:[%s5751_s1 + $0x934] ss:$8 sps:$4 sm:$0xff]  }
  0xe1   : > { %3013 = vmatpush1.bf16.msra.mxu0 %v4167_v36  ;;  %v4263_v36 = vld [vmem:[%s5751_s1 + $0x830] ss:$8 sps:$4 sm:$0xff]  }
  0xe2   : > { %3014 = vmatprep.subr.bf16.mxu0 %v4175_v37  ;;  %v4271_v37 = vld [vmem:[%s5751_s1 + $0x824] ss:$8 sps:$4 sm:$0xff]  }
  0xe3   : > { %3056 = vmatpush1.bf16.msra.mxu1 %v4170_v38  ;;  %v4266_v38 = vld [vmem:[%s5751_s1 + $0x930] ss:$8 sps:$4 sm:$0xff]  }
  0xe4   : > { %3057 = vmatprep.subr.bf16.mxu1 %v4178_v39  ;;  %v4274_v39 = vld [vmem:[%s5751_s1 + $0x924] ss:$8 sps:$4 sm:$0xff]  }
  0xe5   : > { %3015 = vmatpush1.bf16.msra.mxu0 %v4173_v40  ;;  %v4269_v40 = vld [vmem:[%s5751_s1 + $0x820] ss:$8 sps:$4 sm:$0xff]  }
  0xe6   : > { %3016 = vmatprep.subr.bf16.mxu0 %v4181_v41  ;;  %v4277_v41 = vld [vmem:[%s5751_s1 + $0x814] ss:$8 sps:$4 sm:$0xff]  }
  0xe7   : > { %3058 = vmatpush1.bf16.msra.mxu1 %v4176_v42  ;;  %v4272_v42 = vld [vmem:[%s5751_s1 + $0x920] ss:$8 sps:$4 sm:$0xff]  }
  0xe8   : > { %3059 = vmatprep.subr.bf16.mxu1 %v4184_v43  ;;  %v4280_v43 = vld [vmem:[%s5751_s1 + $0x914] ss:$8 sps:$4 sm:$0xff]  }
  0xe9   : > { %3017 = vmatpush1.bf16.msra.mxu0 %v4179_v44  ;;  %v4275_v44 = vld [vmem:[%s5751_s1 + $0x810] ss:$8 sps:$4 sm:$0xff]  }
  0xea   : > { %3018 = vmatprep.subr.bf16.mxu0 %v4187_v45  ;;  %v4283_v45 = vld [vmem:[%s5751_s1 + $0x804] ss:$8 sps:$4 sm:$0xff]  }
  0xeb   : > { %3060 = vmatpush1.bf16.msra.mxu1 %v4182_v46  ;;  %v4278_v46 = vld [vmem:[%s5751_s1 + $0x910] ss:$8 sps:$4 sm:$0xff]  }
  0xec   : > { %3061 = vmatprep.subr.bf16.mxu1 %v4190_v47  ;;  %v4286_v47 = vld [vmem:[%s5751_s1 + $0x904] ss:$8 sps:$4 sm:$0xff]  }
  0xed   : > { %3019 = vmatpush2.bf16.msra.mxu0 %v4185_v48  ;;  %v4281_v48 = vld [vmem:[%s5751_s1 + $0x800] ss:$8 sps:$4 sm:$0xff]  }
  0xee   : > { %3020 = vmatprep.subr.bf16.mxu0 %v4193_v49  ;;  %v4289_v49 = vld [vmem:[%s5751_s1 + $0x8f4] ss:$8 sps:$4 sm:$0xff]  }
  0xef   : > { %3062 = vmatpush2.bf16.msra.mxu1 %v4188_v50  ;;  %v4284_v50 = vld [vmem:[%s5751_s1 + $0x900] ss:$8 sps:$4 sm:$0xff]  }
  0xf0   : > { %3063 = vmatprep.subr.bf16.mxu1 %v4196_v51  ;;  %v4292_v51 = vld [vmem:[%s5751_s1 + $0x9f4] ss:$8 sps:$4 sm:$0xff]  }
  0xf1   : > { %3021 = vmatpush2.bf16.msra.mxu0 %v4191_v52  ;;  %v4287_v52 = vld [vmem:[%s5751_s1 + $0x8f0] ss:$8 sps:$4 sm:$0xff]  }
  0xf2   : > { %3022 = vmatprep.subr.bf16.mxu0 %v4199_v53  ;;  %v4295_v53 = vld [vmem:[%s5751_s1 + $0x8e4] ss:$8 sps:$4 sm:$0xff]  }
  0xf3   : > { %3064 = vmatpush2.bf16.msra.mxu1 %v4194_v54  ;;  %v4290_v54 = vld [vmem:[%s5751_s1 + $0x9f0] ss:$8 sps:$4 sm:$0xff]  }
  0xf4   : > { %3065 = vmatprep.subr.bf16.mxu1 %v4202_v55  ;;  %v4298_v55 = vld [vmem:[%s5751_s1 + $0x9e4] ss:$8 sps:$4 sm:$0xff]  }
  0xf5   : > { %3023 = vmatpush2.bf16.msra.mxu0 %v4197_v56  ;;  %v4293_v56 = vld [vmem:[%s5751_s1 + $0x8e0] ss:$8 sps:$4 sm:$0xff]  }
  0xf6   : > { %3024 = vmatprep.subr.bf16.mxu0 %v4205_v57  ;;  %v4301_v57 = vld [vmem:[%s5751_s1 + $0x8d4] ss:$8 sps:$4 sm:$0xff]  }
  0xf7   : > { %3066 = vmatpush2.bf16.msra.mxu1 %v4200_v58  ;;  %v4296_v58 = vld [vmem:[%s5751_s1 + $0x9e0] ss:$8 sps:$4 sm:$0xff]  }
  0xf8   : > { %3067 = vmatprep.subr.bf16.mxu1 %v4208_v59  ;;  %v4304_v59 = vld [vmem:[%s5751_s1 + $0x9d4] ss:$8 sps:$4 sm:$0xff]  }
  0xf9   : > { %3025 = vmatpush2.bf16.msra.mxu0 %v4203_v60  ;;  %v4299_v60 = vld [vmem:[%s5751_s1 + $0x8d0] ss:$8 sps:$4 sm:$0xff]  }
  0xfa   : > { %3026 = vmatprep.subr.bf16.mxu0 %v4211_v61  ;;  %v4307_v61 = vld [vmem:[%s5751_s1 + $0x8c4] ss:$8 sps:$4 sm:$0xff]  }
  0xfb   : > { %3068 = vmatpush2.bf16.msra.mxu1 %v4206_v62  ;;  %v4302_v62 = vld [vmem:[%s5751_s1 + $0x9d0] ss:$8 sps:$4 sm:$0xff]  }
  0xfc   : > { %3069 = vmatprep.subr.bf16.mxu1 %v4214_v63  ;;  %v4310_v63 = vld [vmem:[%s5751_s1 + $0x9c4] ss:$8 sps:$4 sm:$0xff]  }
  0xfd   : > { %3027 = vmatpush2.bf16.msra.mxu0 %v4209_v0  ;;  %v4305_v0 = vld [vmem:[%s5751_s1 + $0x8c0] ss:$8 sps:$4 sm:$0xff]  }
  0xfe   : > { %3028 = vmatprep.subr.bf16.mxu0 %v4217_v1  ;;  %v4313_v1 = vld [vmem:[%s5751_s1 + $0x8b4] ss:$8 sps:$4 sm:$0xff]  }
  0xff   : > { %3070 = vmatpush2.bf16.msra.mxu1 %v4212_v2  ;;  %v4308_v2 = vld [vmem:[%s5751_s1 + $0x9c0] ss:$8 sps:$4 sm:$0xff]  }
 0x100   : > { %3071 = vmatprep.subr.bf16.mxu1 %v4220_v3  ;;  %v4316_v3 = vld [vmem:[%s5751_s1 + $0x9b4] ss:$8 sps:$4 sm:$0xff]  }
 0x101   : > { %3029 = vmatpush2.bf16.msra.mxu0 %v4215_v4  ;;  %v4311_v4 = vld [vmem:[%s5751_s1 + $0x8b0] ss:$8 sps:$4 sm:$0xff]  }
 0x102   : > { %3030 = vmatprep.subr.bf16.mxu0 %v4223_v5  ;;  %v4319_v5 = vld [vmem:[%s5751_s1 + $0x8a4] ss:$8 sps:$4 sm:$0xff]  }
 0x103   : > { %3072 = vmatpush2.bf16.msra.mxu1 %v4218_v6  ;;  %v4314_v6 = vld [vmem:[%s5751_s1 + $0x9b0] ss:$8 sps:$4 sm:$0xff]  }
 0x104   : > { %3073 = vmatprep.subr.bf16.mxu1 %v4226_v7  ;;  %v4322_v7 = vld [vmem:[%s5751_s1 + $0x9a4] ss:$8 sps:$4 sm:$0xff]  }
 0x105   : > { %3031 = vmatpush2.bf16.msra.mxu0 %v4221_v8  ;;  %v4317_v8 = vld [vmem:[%s5751_s1 + $0x8a0] ss:$8 sps:$4 sm:$0xff]  }
 0x106   : > { %3032 = vmatprep.subr.bf16.mxu0 %v4229_v9  ;;  %v4325_v9 = vld [vmem:[%s5751_s1 + $0x894] ss:$8 sps:$4 sm:$0xff]  }
 0x107   : > { %3074 = vmatpush2.bf16.msra.mxu1 %v4224_v10  ;;  %v4320_v10 = vld [vmem:[%s5751_s1 + $0x9a0] ss:$8 sps:$4 sm:$0xff]  }
 0x108   : > { %3075 = vmatprep.subr.bf16.mxu1 %v4232_v12  ;;  %v4323_v12 = vld [vmem:[%s5751_s1 + $0x890] ss:$8 sps:$4 sm:$0xff]  }
 0x109   : > { %3033 = vmatpush2.bf16.msra.mxu0 %v4227_v11  ;;  %v4328_v11 = vld [vmem:[%s5751_s1 + $0x994] ss:$8 sps:$4 sm:$0xff]  }
 0x10a   : > { %3088 = vmatprep.subr.bf16.mxu0 %v4238_v14  ;;  %v4326_v14 = vld [vmem:[%s5751_s1 + $0x990] ss:$8 sps:$4 sm:$0xff]  }
 0x10b   : > { %3076 = vmatpush2.bf16.msra.mxu1 %v4230_v13  ;;  %v4331_v13 = vld [vmem:[%s5751_s1 + $0x884] ss:$8 sps:$4 sm:$0xff]  }
 0x10c   : > { %3035 = vmatmul.mubr.bf16.vlgmr.msra.gmra.mxu0 %v4233_v15  ;;  %3131 = vmatprep.subr.bf16.mxu1 %v4244_v18  ;;  %v4334_v15 = vld [vmem:[%s5751_s1 + $0x984] ss:$8 sps:$4 sm:$0xff]   ;;  %v4332_v18 = vld [vmem:[%s5751_s1 + $0x980] ss:$8 sps:$4 sm:$0xff]  }
 0x10d   : > { %3089 = vmatpush1.bf16.msra.mxu0 %v4236_v16  ;;  %3120 = vmatprep.mubr.bf16.mxu0 %v4337_v19  ;;  %v4329_v16 = vld [vmem:[%s5751_s1 + $0x880] ss:$8 sps:$4 sm:$0xff]  }
 0x10e   : > { %3078 = vmatmul.mubr.bf16.vlgmr.msra.gmra.mxu1 %v4239_v17  ;;  %3090 = vmatprep.subr.bf16.mxu0 %v4247_v20  ;;  %v4340_v17 = vld [vmem:[%s5751_s1 + $0xa74] ss:$8 sps:$4 sm:$0xff]   ;;  %v4335_v19 = vld [vmem:[%s4645_s13 + $0x40] ss:$100 sps:$4 sm:$0xff]  }
 0x10f   : > { %3132 = vmatpush1.bf16.msra.mxu1 %v4242_v21  ;;  %3163 = vmatprep.mubr.bf16.mxu1 %v4343_v22  ;;  %v4346_v20 = vld [vmem:[%s5751_s1 + $0xb74] ss:$8 sps:$4 sm:$0xff]   ;;  %v4338_v21 = vld [vmem:[%s5751_s1 + $0xa70] ss:$8 sps:$4 sm:$0xff]  }
 0x110   : > { %3133 = vmatprep.subr.bf16.mxu1 %v4250_v23  ;;  %v4439_v22 = vld [vmem:[%s4645_s13 + $0x54] ss:$100 sps:$4 sm:$0xff]   ;;  %v4341_v23 = vld [vmem:[%s4645_s13 + $0x48] ss:$100 sps:$4 sm:$0xff]  }
 0x111   : > { %3091 = vmatpush1.bf16.msra.mxu0 %v4245_v24  ;;  %v4349_v24 = vld [vmem:[%s5751_s1 + $0xa64] ss:$8 sps:$4 sm:$0xff]  }
 0x112   : > { %3092 = vmatprep.subr.bf16.mxu0 %v4253_v25  ;;  %v4344_v25 = vld [vmem:[%s5751_s1 + $0xb70] ss:$8 sps:$4 sm:$0xff]  }
 0x113   : > { %3134 = vmatpush1.bf16.msra.mxu1 %v4248_v26  ;;  %v4445_v26 = vld [vmem:[%s4645_s13 + $0x5c] ss:$100 sps:$4 sm:$0xff]  }
 0x114   : > { %3135 = vmatprep.subr.bf16.mxu1 %v4256_v27  ;;  %v4352_v27 = vld [vmem:[%s5751_s1 + $0xb64] ss:$8 sps:$4 sm:$0xff]  }
 0x115   : > { %3093 = vmatpush1.bf16.msra.mxu0 %v4251_v28  ;;  %v4347_v28 = vld [vmem:[%s5751_s1 + $0xa60] ss:$8 sps:$4 sm:$0xff]  }
 0x116   : > { %3094 = vmatprep.subr.bf16.mxu0 %v4259_v29  ;;  %v4355_v29 = vld [vmem:[%s5751_s1 + $0xa54] ss:$8 sps:$4 sm:$0xff]  }
 0x117   : > { %3136 = vmatpush1.bf16.msra.mxu1 %v4254_v30  ;;  %v4350_v30 = vld [vmem:[%s5751_s1 + $0xb60] ss:$8 sps:$4 sm:$0xff]  }
 0x118   : > { %3137 = vmatprep.subr.bf16.mxu1 %v4262_v31  ;;  %v4358_v31 = vld [vmem:[%s5751_s1 + $0xb54] ss:$8 sps:$4 sm:$0xff]  }
 0x119   : > { %3095 = vmatpush1.bf16.msra.mxu0 %v4257_v32  ;;  %v4353_v32 = vld [vmem:[%s5751_s1 + $0xa50] ss:$8 sps:$4 sm:$0xff]  }
 0x11a   : > { %3096 = vmatprep.subr.bf16.mxu0 %v4265_v33  ;;  %v4361_v33 = vld [vmem:[%s5751_s1 + $0xa44] ss:$8 sps:$4 sm:$0xff]  }
 0x11b   : > { %3138 = vmatpush1.bf16.msra.mxu1 %v4260_v34  ;;  %v4356_v34 = vld [vmem:[%s5751_s1 + $0xb50] ss:$8 sps:$4 sm:$0xff]  }
 0x11c   : > { %3139 = vmatprep.subr.bf16.mxu1 %v4268_v35  ;;  %v4364_v35 = vld [vmem:[%s5751_s1 + $0xb44] ss:$8 sps:$4 sm:$0xff]  }
 0x11d   : > { %3097 = vmatpush1.bf16.msra.mxu0 %v4263_v36  ;;  %v4359_v36 = vld [vmem:[%s5751_s1 + $0xa40] ss:$8 sps:$4 sm:$0xff]  }
 0x11e   : > { %3098 = vmatprep.subr.bf16.mxu0 %v4271_v37  ;;  %v4367_v37 = vld [vmem:[%s5751_s1 + $0xa34] ss:$8 sps:$4 sm:$0xff]  }
 0x11f   : > { %3140 = vmatpush1.bf16.msra.mxu1 %v4266_v38  ;;  %v4362_v38 = vld [vmem:[%s5751_s1 + $0xb40] ss:$8 sps:$4 sm:$0xff]  }
 0x120   : > { %3141 = vmatprep.subr.bf16.mxu1 %v4274_v39  ;;  %v4370_v39 = vld [vmem:[%s5751_s1 + $0xb34] ss:$8 sps:$4 sm:$0xff]  }
 0x121   : > { %3099 = vmatpush1.bf16.msra.mxu0 %v4269_v40  ;;  %v4365_v40 = vld [vmem:[%s5751_s1 + $0xa30] ss:$8 sps:$4 sm:$0xff]  }
 0x122   : > { %3100 = vmatprep.subr.bf16.mxu0 %v4277_v41  ;;  %v4373_v41 = vld [vmem:[%s5751_s1 + $0xa24] ss:$8 sps:$4 sm:$0xff]  }
 0x123   : > { %3142 = vmatpush1.bf16.msra.mxu1 %v4272_v42  ;;  %v4368_v42 = vld [vmem:[%s5751_s1 + $0xb30] ss:$8 sps:$4 sm:$0xff]  }
 0x124   : > { %3143 = vmatprep.subr.bf16.mxu1 %v4280_v43  ;;  %v4376_v43 = vld [vmem:[%s5751_s1 + $0xb24] ss:$8 sps:$4 sm:$0xff]  }
 0x125   : > { %3101 = vmatpush1.bf16.msra.mxu0 %v4275_v44  ;;  %v4371_v44 = vld [vmem:[%s5751_s1 + $0xa20] ss:$8 sps:$4 sm:$0xff]  }
 0x126   : > { %3102 = vmatprep.subr.bf16.mxu0 %v4283_v45  ;;  %v4379_v45 = vld [vmem:[%s5751_s1 + $0xa14] ss:$8 sps:$4 sm:$0xff]  }
 0x127   : > { %3144 = vmatpush1.bf16.msra.mxu1 %v4278_v46  ;;  %v4374_v46 = vld [vmem:[%s5751_s1 + $0xb20] ss:$8 sps:$4 sm:$0xff]  }
 0x128   : > { %3145 = vmatprep.subr.bf16.mxu1 %v4286_v47  ;;  %v4382_v47 = vld [vmem:[%s5751_s1 + $0xb14] ss:$8 sps:$4 sm:$0xff]  }
 0x129   : > { %3103 = vmatpush1.bf16.msra.mxu0 %v4281_v48  ;;  %v4377_v48 = vld [vmem:[%s5751_s1 + $0xa10] ss:$8 sps:$4 sm:$0xff]  }
 0x12a   : > { %3104 = vmatprep.subr.bf16.mxu0 %v4289_v49  ;;  %v4385_v49 = vld [vmem:[%s5751_s1 + $0xa04] ss:$8 sps:$4 sm:$0xff]  }
 0x12b   : > { %3146 = vmatpush1.bf16.msra.mxu1 %v4284_v50  ;;  %v4380_v50 = vld [vmem:[%s5751_s1 + $0xb10] ss:$8 sps:$4 sm:$0xff]  }
 0x12c   : > { %3147 = vmatprep.subr.bf16.mxu1 %v4292_v51  ;;  %v4388_v51 = vld [vmem:[%s5751_s1 + $0xb04] ss:$8 sps:$4 sm:$0xff]  }
 0x12d   : > { %3105 = vmatpush2.bf16.msra.mxu0 %v4287_v52  ;;  %v4383_v52 = vld [vmem:[%s5751_s1 + $0xa00] ss:$8 sps:$4 sm:$0xff]  }
 0x12e   : > { %3106 = vmatprep.subr.bf16.mxu0 %v4295_v53  ;;  %v4391_v53 = vld [vmem:[%s5751_s1 + $0xaf4] ss:$8 sps:$4 sm:$0xff]  }
 0x12f   : > { %3148 = vmatpush2.bf16.msra.mxu1 %v4290_v54  ;;  %v4386_v54 = vld [vmem:[%s5751_s1 + $0xb00] ss:$8 sps:$4 sm:$0xff]  }
 0x130   : > { %3149 = vmatprep.subr.bf16.mxu1 %v4298_v55  ;;  %v4394_v55 = vld [vmem:[%s5751_s1 + $0xbf4] ss:$8 sps:$4 sm:$0xff]  }
 0x131   : > { %3107 = vmatpush2.bf16.msra.mxu0 %v4293_v56  ;;  %v4389_v56 = vld [vmem:[%s5751_s1 + $0xaf0] ss:$8 sps:$4 sm:$0xff]  }
 0x132   : > { %3108 = vmatprep.subr.bf16.mxu0 %v4301_v57  ;;  %v4397_v57 = vld [vmem:[%s5751_s1 + $0xae4] ss:$8 sps:$4 sm:$0xff]  }
 0x133   : > { %3150 = vmatpush2.bf16.msra.mxu1 %v4296_v58  ;;  %v4392_v58 = vld [vmem:[%s5751_s1 + $0xbf0] ss:$8 sps:$4 sm:$0xff]  }
 0x134   : > { %3151 = vmatprep.subr.bf16.mxu1 %v4304_v59  ;;  %v4400_v59 = vld [vmem:[%s5751_s1 + $0xbe4] ss:$8 sps:$4 sm:$0xff]  }
 0x135   : > { %3109 = vmatpush2.bf16.msra.mxu0 %v4299_v60  ;;  %v4395_v60 = vld [vmem:[%s5751_s1 + $0xae0] ss:$8 sps:$4 sm:$0xff]  }
 0x136   : > { %3110 = vmatprep.subr.bf16.mxu0 %v4307_v61  ;;  %v4403_v61 = vld [vmem:[%s5751_s1 + $0xad4] ss:$8 sps:$4 sm:$0xff]  }
 0x137   : > { %3152 = vmatpush2.bf16.msra.mxu1 %v4302_v62  ;;  %v4398_v62 = vld [vmem:[%s5751_s1 + $0xbe0] ss:$8 sps:$4 sm:$0xff]  }
 0x138   : > { %3153 = vmatprep.subr.bf16.mxu1 %v4310_v63  ;;  %v4406_v63 = vld [vmem:[%s5751_s1 + $0xbd4] ss:$8 sps:$4 sm:$0xff]  }
 0x139   : > { %3111 = vmatpush2.bf16.msra.mxu0 %v4305_v0  ;;  %v4401_v0 = vld [vmem:[%s5751_s1 + $0xad0] ss:$8 sps:$4 sm:$0xff]  }
 0x13a   : > { %3112 = vmatprep.subr.bf16.mxu0 %v4313_v1  ;;  %v4409_v1 = vld [vmem:[%s5751_s1 + $0xac4] ss:$8 sps:$4 sm:$0xff]  }
 0x13b   : > { %3154 = vmatpush2.bf16.msra.mxu1 %v4308_v2  ;;  %v4404_v2 = vld [vmem:[%s5751_s1 + $0xbd0] ss:$8 sps:$4 sm:$0xff]  }
 0x13c   : > { %3155 = vmatprep.subr.bf16.mxu1 %v4316_v3  ;;  %v4412_v3 = vld [vmem:[%s5751_s1 + $0xbc4] ss:$8 sps:$4 sm:$0xff]  }
 0x13d   : > { %3113 = vmatpush2.bf16.msra.mxu0 %v4311_v4  ;;  %v4407_v4 = vld [vmem:[%s5751_s1 + $0xac0] ss:$8 sps:$4 sm:$0xff]  }
 0x13e   : > { %3114 = vmatprep.subr.bf16.mxu0 %v4319_v5  ;;  %v4415_v5 = vld [vmem:[%s5751_s1 + $0xab4] ss:$8 sps:$4 sm:$0xff]  }
 0x13f   : > { %3156 = vmatpush2.bf16.msra.mxu1 %v4314_v6  ;;  %v4410_v6 = vld [vmem:[%s5751_s1 + $0xbc0] ss:$8 sps:$4 sm:$0xff]  }
 0x140   : > { %3157 = vmatprep.subr.bf16.mxu1 %v4322_v7  ;;  %v4418_v7 = vld [vmem:[%s5751_s1 + $0xbb4] ss:$8 sps:$4 sm:$0xff]  }
 0x141   : > { %3115 = vmatpush2.bf16.msra.mxu0 %v4317_v8  ;;  %v4413_v8 = vld [vmem:[%s5751_s1 + $0xab0] ss:$8 sps:$4 sm:$0xff]  }
 0x142   : > { %3116 = vmatprep.subr.bf16.mxu0 %v4325_v9  ;;  %v4421_v9 = vld [vmem:[%s5751_s1 + $0xaa4] ss:$8 sps:$4 sm:$0xff]  }
 0x143   : > { %3158 = vmatpush2.bf16.msra.mxu1 %v4320_v10  ;;  %v4416_v10 = vld [vmem:[%s5751_s1 + $0xbb0] ss:$8 sps:$4 sm:$0xff]  }
 0x144   : > { %3159 = vmatprep.subr.bf16.mxu1 %v4328_v11  ;;  %v4424_v11 = vld [vmem:[%s5751_s1 + $0xba4] ss:$8 sps:$4 sm:$0xff]  }
 0x145   : > { %3117 = vmatpush2.bf16.msra.mxu0 %v4323_v12  ;;  %v4419_v12 = vld [vmem:[%s5751_s1 + $0xaa0] ss:$8 sps:$4 sm:$0xff]  }
 0x146   : > { %3118 = vmatprep.subr.bf16.mxu0 %v4331_v13  ;;  %v4427_v13 = vld [vmem:[%s5751_s1 + $0xa94] ss:$8 sps:$4 sm:$0xff]  }
 0x147   : > { %3160 = vmatpush2.bf16.msra.mxu1 %v4326_v14  ;;  %v4422_v14 = vld [vmem:[%s5751_s1 + $0xba0] ss:$8 sps:$4 sm:$0xff]  }
 0x148   : > { %3161 = vmatprep.subr.bf16.mxu1 %v4334_v15  ;;  %v4430_v15 = vld [vmem:[%s5751_s1 + $0xb94] ss:$8 sps:$4 sm:$0xff]  }
 0x149   : > { %3119 = vmatpush2.bf16.msra.mxu0 %v4329_v16  ;;  %v4425_v16 = vld [vmem:[%s5751_s1 + $0xa90] ss:$8 sps:$4 sm:$0xff]  }
 0x14a   : > { %3174 = vmatprep.subr.bf16.mxu0 %v4340_v17  ;;  %v4433_v17 = vld [vmem:[%s5751_s1 + $0xa84] ss:$8 sps:$4 sm:$0xff]  }
 0x14b   : > { %3162 = vmatpush2.bf16.msra.mxu1 %v4332_v18  ;;  %v4428_v18 = vld [vmem:[%s5751_s1 + $0xb90] ss:$8 sps:$4 sm:$0xff]  }
 0x14c   : > { %3121 = vmatmul.mubr.bf16.vlgmr.msra.gmra.mxu0 %v4335_v19  ;;  %3217 = vmatprep.subr.bf16.mxu1 %v4346_v20  ;;  %v4436_v19 = vld [vmem:[%s5751_s1 + $0xb84] ss:$8 sps:$4 sm:$0xff]   ;;  %v4431_v20 = vld [vmem:[%s5751_s1 + $0xa80] ss:$8 sps:$4 sm:$0xff]  }
 0x14d   : > { %3175 = vmatpush1.bf16.msra.mxu0 %v4338_v21  ;;  %3206 = vmatprep.mubr.bf16.mxu0 %v4439_v22  ;;  %v4442_v21 = vld [vmem:[%s5751_s1 + $0xc74] ss:$8 sps:$4 sm:$0xff]   ;;  %v4434_v22 = vld [vmem:[%s5751_s1 + $0xb80] ss:$8 sps:$4 sm:$0xff]  }
 0x14e   : > { %3164 = vmatmul.mubr.bf16.vlgmr.msra.gmra.mxu1 %v4341_v23  ;;  %3176 = vmatprep.subr.bf16.mxu0 %v4349_v24  ;;  %v4437_v23 = vld [vmem:[%s4645_s13 + $0x50] ss:$100 sps:$4 sm:$0xff]  }
 0x14f   : > { %3218 = vmatpush1.bf16.msra.mxu1 %v4344_v25  ;;  %3249 = vmatprep.mubr.bf16.mxu1 %v4445_v26  ;;  %v4440_v24 = vld [vmem:[%s5751_s1 + $0xc70] ss:$8 sps:$4 sm:$0xff]   ;;  %v4448_v26 = vld [vmem:[%s5751_s1 + $0xc64] ss:$8 sps:$4 sm:$0xff]  }
 0x150   : > { %3219 = vmatprep.subr.bf16.mxu1 %v4352_v27  ;;  %v4443_v25 = vld [vmem:[%s4645_s13 + $0x58] ss:$100 sps:$4 sm:$0xff]   ;;  %v4446_v27 = vld [vmem:[%s5751_s1 + $0xc60] ss:$8 sps:$4 sm:$0xff]  }
 0x151   : > { %3177 = vmatpush1.bf16.msra.mxu0 %v4347_v28  ;;  %v4476_v28 = vmov 0  }
 0x152   : > { %3178 = vmatprep.subr.bf16.mxu0 %v4355_v29  ;;  %v4451_v29 = vld [vmem:[%s5751_s1 + $0xc54] ss:$8 sps:$4 sm:$0xff]  }
 0x153   : > { %3220 = vmatpush1.bf16.msra.mxu1 %v4350_v30  ;;  %v4449_v30 = vld [vmem:[%s5751_s1 + $0xc50] ss:$8 sps:$4 sm:$0xff]  }
 0x154   : > { %3221 = vmatprep.subr.bf16.mxu1 %v4358_v31  ;;  %v4454_v31 = vld [vmem:[%s5751_s1 + $0xc44] ss:$8 sps:$4 sm:$0xff]  }
 0x155   : > { %3179 = vmatpush1.bf16.msra.mxu0 %v4353_v32  ;;  %v4452_v32 = vld [vmem:[%s5751_s1 + $0xc40] ss:$8 sps:$4 sm:$0xff]  }
 0x156   : > { %3180 = vmatprep.subr.bf16.mxu0 %v4361_v33  ;;  %v4457_v33 = vld [vmem:[%s5751_s1 + $0xc34] ss:$8 sps:$4 sm:$0xff]  }
 0x157   : > { %3222 = vmatpush1.bf16.msra.mxu1 %v4356_v34  ;;  %v4455_v34 = vld [vmem:[%s5751_s1 + $0xc30] ss:$8 sps:$4 sm:$0xff]  }
 0x158   : > { %3223 = vmatprep.subr.bf16.mxu1 %v4364_v35  ;;  %v4460_v35 = vld [vmem:[%s5751_s1 + $0xc24] ss:$8 sps:$4 sm:$0xff]  }
 0x159   : > { %3181 = vmatpush1.bf16.msra.mxu0 %v4359_v36  ;;  %v4458_v36 = vld [vmem:[%s5751_s1 + $0xc20] ss:$8 sps:$4 sm:$0xff]  }
 0x15a   : > { %3182 = vmatprep.subr.bf16.mxu0 %v4367_v37  ;;  %v4463_v37 = vld [vmem:[%s5751_s1 + $0xc14] ss:$8 sps:$4 sm:$0xff]  }
 0x15b   : > { %3224 = vmatpush1.bf16.msra.mxu1 %v4362_v38  ;;  %v4461_v38 = vld [vmem:[%s5751_s1 + $0xc10] ss:$8 sps:$4 sm:$0xff]  }
 0x15c   : > { %3225 = vmatprep.subr.bf16.mxu1 %v4370_v39  ;;  %v4466_v39 = vld [vmem:[%s5751_s1 + $0xc04] ss:$8 sps:$4 sm:$0xff]  }
 0x15d   : > { %3183 = vmatpush1.bf16.msra.mxu0 %v4365_v40  ;;  %v4464_v40 = vld [vmem:[%s5751_s1 + $0xc00] ss:$8 sps:$4 sm:$0xff]  }
 0x15e   : > { %3184 = vmatprep.subr.bf16.mxu0 %v4373_v41  ;;  %v4467_v41 = vld [vmem:[%s4645_s13 + $0x60] ss:$100 sps:$4 sm:$0xff]  }
 0x15f   : > { %3226 = vmatpush1.bf16.msra.mxu1 %v4368_v42  ;;  %v2778_v42 = vpop.f32.mrf.mxu0 }
 0x160   : > { %3227 = vmatprep.subr.bf16.mxu1 %v4376_v43 }
 0x161   : > { %3185 = vmatpush1.bf16.msra.mxu0 %v4371_v44  ;;  %v2780_v43 = vpop.f32.mrf.mxu0  ;;  %v2821_v44 = vpop.f32.mrf.mxu1 }
 0x162   : > { %3186 = vmatprep.subr.bf16.mxu0 %v4379_v45 }
 0x163   : > { %3228 = vmatpush1.bf16.msra.mxu1 %v4374_v46  ;;  %v2782_v45 = vpop.f32.mrf.mxu0  ;;  %v2823_v46 = vpop.f32.mrf.mxu1 }
 0x164   : > { %3229 = vmatprep.subr.bf16.mxu1 %v4382_v47 }
 0x165   : > { %3187 = vmatpush1.bf16.msra.mxu0 %v4377_v48  ;;  %v2784_v47 = vpop.f32.mrf.mxu0  ;;  %v2825_v48 = vpop.f32.mrf.mxu1 }
 0x166   : > { %3188 = vmatprep.subr.bf16.mxu0 %v4385_v49 }
 0x167   : > { %3230 = vmatpush1.bf16.msra.mxu1 %v4380_v50  ;;  %v2864_v49 = vpop.f32.mrf.mxu0  ;;  %v2827_v50 = vpop.f32.mrf.mxu1 }
 0x168   : > { %3231 = vmatprep.subr.bf16.mxu1 %v4388_v51 }
 0x169   : > { %3189 = vmatpush1.bf16.msra.mxu0 %v4383_v52  ;;  %v2866_v51 = vpop.f32.mrf.mxu0  ;;  %v2907_v52 = vpop.f32.mrf.mxu1 }
 0x16a   : > { %3190 = vmatprep.subr.bf16.mxu0 %v4391_v53 }
 0x16b   : > { %3232 = vmatpush1.bf16.msra.mxu1 %v4386_v54  ;;  %v2868_v53 = vpop.f32.mrf.mxu0  ;;  %v2909_v54 = vpop.f32.mrf.mxu1 }
 0x16c   : > { %3233 = vmatprep.subr.bf16.mxu1 %v4394_v55 }
 0x16d   : > { %3191 = vmatpush2.bf16.msra.mxu0 %v4389_v56  ;;  %v2870_v55 = vpop.f32.mrf.mxu0  ;;  %v2911_v56 = vpop.f32.mrf.mxu1 }
 0x16e   : > { %3192 = vmatprep.subr.bf16.mxu0 %v4397_v57 }
 0x16f   : > { %3234 = vmatpush2.bf16.msra.mxu1 %v4392_v58  ;;  %v2913_v58 = vpop.f32.mrf.mxu1 }
 0x170   : > { %3235 = vmatprep.subr.bf16.mxu1 %v4400_v59 }
 0x171   : > { %3193 = vmatpush2.bf16.msra.mxu0 %v4395_v60 }
 0x172   : > { %3194 = vmatprep.subr.bf16.mxu0 %v4403_v61  ;;  %v608_v61 = vlaneseq }
 0x173   : > { %3236 = vmatpush2.bf16.msra.mxu1 %v4398_v62 }
 0x174   : > { %3237 = vmatprep.subr.bf16.mxu1 %v4406_v63 }
 0x175   : > { %3195 = vmatpush2.bf16.msra.mxu0 %v4401_v0  ;;  %v609_v0 = vshrl.u32 %v608_v61, 7 }
 0x176   : > { %3196 = vmatprep.subr.bf16.mxu0 %v4409_v1 }
 0x177   : > { %3238 = vmatpush2.bf16.msra.mxu1 %v4404_v2 }
 0x178   : > { %3239 = vmatprep.subr.bf16.mxu1 %v4412_v3  ;;  %v610_v3 = vsub.s32 0, %v609_v0 }
 0x179   : > { %3197 = vmatpush2.bf16.msra.mxu0 %v4407_v4  ;;  %v606_v4 = vld [vmem:[%s5752_s2] sm:$0x3] }
 0x17a   : > { %3198 = vmatprep.subr.bf16.mxu0 %v4415_v5 }
 0x17b   : > { %3240 = vmatpush2.bf16.msra.mxu1 %v4410_v6  ;;  %v614_v6 = vsub.s32 1, %v609_v0 }
 0x17c   : > { %3241 = vmatprep.subr.bf16.mxu1 %v4418_v7 }
 0x17d   : > { %3199 = vmatpush2.bf16.msra.mxu0 %v4413_v8  ;;  %v611_v8 = vrot.slane %v606_v4, %v610_v3 }
 0x17e   : > { %3200 = vmatprep.subr.bf16.mxu0 %v4421_v9 }
 0x17f   : > { %3242 = vmatpush2.bf16.msra.mxu1 %v4416_v10 }
 0x180   : > { %3243 = vmatprep.subr.bf16.mxu1 %v4424_v11  ;;  %v615_v11 = vrot.slane %v606_v4, %v614_v6 }
 0x181   : > { %3201 = vmatpush2.bf16.msra.mxu0 %v4419_v12  ;;  %v2779_v12 = vadd.f32 %v2778_v42, %v611_v8 }
 0x182   : > { %3202 = vmatprep.subr.bf16.mxu0 %v4427_v13 }
 0x183   : > { %3244 = vmatpush2.bf16.msra.mxu1 %v4422_v14 }
 0x184   : > { %3245 = vmatprep.subr.bf16.mxu1 %v4430_v15  ;;  %v2781_v15 = vadd.f32 %v2780_v43, %v615_v11 }
 0x185   : > { %3203 = vmatpush2.bf16.msra.mxu0 %v4425_v16  ;;  %v2822_v16 = vadd.f32 %v2821_v44, %v2779_v12 }
 0x186   : > { %3204 = vmatprep.subr.bf16.mxu0 %v4433_v17  ;;  %v2783_v17 = vadd.f32 %v2782_v45, %v611_v8 }
 0x187   : > { %3246 = vmatpush2.bf16.msra.mxu1 %v4428_v18 }
 0x188   : > { %3247 = vmatprep.subr.bf16.mxu1 %v4436_v19 }
 0x189   : > { %3205 = vmatpush2.bf16.msra.mxu0 %v4431_v20  ;;  %v2824_v20 = vadd.f32 %v2823_v46, %v2781_v15 }
 0x18a   : > { %3260 = vmatprep.subr.bf16.mxu0 %v4442_v21  ;;  %v2785_v21 = vadd.f32 %v2784_v47, %v615_v11 }
 0x18b   : > { %3248 = vmatpush2.bf16.msra.mxu1 %v4434_v22  ;;  %v2865_v22 = vadd.f32 %v2864_v49, %v2822_v16 }
 0x18c   : > { %3207 = vmatmul.mubr.bf16.vlgmr.msra.gmra.mxu0 %v4437_v23  ;;  %v2950_v57 = vpop.f32.mrf.mxu0 }
 0x18d   : > { %3261 = vmatpush1.bf16.msra.mxu0 %v4440_v24  ;;  %3292 = vmatprep.mubr.bf16.mxu0 %v4476_v28  ;;  %v2826_v24 = vadd.f32 %v2825_v48, %v2783_v17  ;;  %v2908_v28 = vadd.f32 %v2907_v52, %v2865_v22 }
 0x18e   : > { %3250 = vmatmul.mubr.bf16.vlgmr.msra.gmra.mxu1 %v4443_v25  ;;  %3262 = vmatprep.subr.bf16.mxu0 %v4448_v26  ;;  %v2952_v59 = vpop.f32.mrf.mxu0  ;;  %v2993_v60 = vpop.f32.mrf.mxu1  ;;  %v2867_v25 = vadd.f32 %v2866_v51, %v2824_v20 }
 0x190   : > { %v2954_v62 = vpop.f32.mrf.mxu0  ;;  %v2995_v63 = vpop.f32.mrf.mxu1 }
 0x191   : > { %3263 = vmatpush1.bf16.msra.mxu0 %v4446_v27  ;;  %v2828_v27 = vadd.f32 %v2827_v50, %v2785_v21 }
 0x192   : > { %3264 = vmatprep.subr.bf16.mxu0 %v4451_v29  ;;  %v2956_v1 = vpop.f32.mrf.mxu0  ;;  %v2997_v2 = vpop.f32.mrf.mxu1  ;;  %v2869_v29 = vadd.f32 %v2868_v53, %v2826_v24 }
 0x194   : > { %v2999_v7 = vpop.f32.mrf.mxu1 }
 0x195   : > { %3265 = vmatpush1.bf16.msra.mxu0 %v4449_v30 }
 0x196   : > { %3266 = vmatprep.subr.bf16.mxu0 %v4454_v31 }
 0x199   : > { %3267 = vmatpush1.bf16.msra.mxu0 %v4452_v32  ;;  %v2910_v32 = vadd.f32 %v2909_v54, %v2867_v25 }
 0x19a   : > { %3268 = vmatprep.subr.bf16.mxu0 %v4457_v33  ;;  %v2871_v33 = vadd.f32 %v2870_v55, %v2828_v27 }
 0x19d   : > { %3269 = vmatpush1.bf16.msra.mxu0 %v4455_v34  ;;  %v2951_v34 = vadd.f32 %v2950_v57, %v2908_v28 }
 0x19e   : > { %3270 = vmatprep.subr.bf16.mxu0 %v4460_v35  ;;  %v2912_v35 = vadd.f32 %v2911_v56, %v2869_v29 }
 0x1a1   : > { %3271 = vmatpush1.bf16.msra.mxu0 %v4458_v36  ;;  %v2953_v36 = vadd.f32 %v2952_v59, %v2910_v32 }
 0x1a2   : > { %3272 = vmatprep.subr.bf16.mxu0 %v4463_v37 }
 0x1a3   : > { %v2996_v42 = vadd.f32 %v2995_v63, %v2953_v36 }
 0x1a5   : > { %3273 = vmatpush1.bf16.msra.mxu0 %v4461_v38 }
 0x1a6   : > { %3274 = vmatprep.subr.bf16.mxu0 %v4466_v39  ;;  %v2914_v39 = vadd.f32 %v2913_v58, %v2871_v33 }
 0x1a8   : > { %v2957_v43 = vadd.f32 %v2956_v1, %v2914_v39 }
 0x1a9   : > { %3275 = vmatpush1.bf16.msra.mxu0 %v4464_v40  ;;  %v2994_v40 = vadd.f32 %v2993_v60, %v2951_v34 }
 0x1aa   : > { %v3000_v50 = vadd.f32 %v2999_v7, %v2957_v43 }
 0x1ac   : > { %3293 = vmatmul.mubr.bf16.vlgmr.msra.gmra.mxu0 %v4467_v41  ;;  %v2955_v41 = vadd.f32 %v2954_v62, %v2912_v35 }
 0x1ae   : > { %v2998_v47 = vadd.f32 %v2997_v2, %v2955_v41 }
 0x1cc   : > { %v3036_v5 = vpop.f32.mrf.mxu0 }
 0x1cd   : > { %v3037_v44 = vadd.f32 %v3036_v5, %v2994_v40 }
 0x1ce   : > { %v3038_v9 = vpop.f32.mrf.mxu0  ;;  %v3079_v10 = vpop.f32.mrf.mxu1 }
 0x1cf   : > { %v3039_v48 = vadd.f32 %v3038_v9, %v2996_v42  ;;  %v3080_v51 = vadd.f32 %v3079_v10, %v3037_v44 }
 0x1d0   : > { %v3040_v13 = vpop.f32.mrf.mxu0  ;;  %v3081_v14 = vpop.f32.mrf.mxu1 }
 0x1d1   : > { %v3041_v52 = vadd.f32 %v3040_v13, %v2998_v47  ;;  %v3082_v54 = vadd.f32 %v3081_v14, %v3039_v48 }
 0x1d2   : > { %v3042_v18 = vpop.f32.mrf.mxu0  ;;  %v3083_v19 = vpop.f32.mrf.mxu1 }
 0x1d3   : > { %v3043_v55 = vadd.f32 %v3042_v18, %v3000_v50  ;;  %v3084_v58 = vadd.f32 %v3083_v19, %v3041_v52 }
 0x1d4   : > { %v3085_v26 = vpop.f32.mrf.mxu1 }
 0x1d5   : > { %v3086_v61 = vadd.f32 %v3085_v26, %v3043_v55 }
 0x20c   : > { %v3122_v23 = vpop.f32.mrf.mxu0 }
 0x20d   : > { %v3123_v56 = vadd.f32 %v3122_v23, %v3080_v51 }
 0x20e   : > { %v3124_v30 = vpop.f32.mrf.mxu0  ;;  %v3165_v31 = vpop.f32.mrf.mxu1 }
 0x20f   : > { %v3125_v60 = vadd.f32 %v3124_v30, %v3082_v54  ;;  %v3166_v62 = vadd.f32 %v3165_v31, %v3123_v56 }
 0x210   : > { %v3126_v37 = vpop.f32.mrf.mxu0  ;;  %v3167_v38 = vpop.f32.mrf.mxu1 }
 0x211   : > { %v3127_v63 = vadd.f32 %v3126_v37, %v3084_v58  ;;  %v3168_v3 = vadd.f32 %v3167_v38, %v3125_v60 }
 0x212   : > { %v3128_v45 = vpop.f32.mrf.mxu0  ;;  %v3169_v46 = vpop.f32.mrf.mxu1 }
 0x213   : > { %v3129_v2 = vadd.f32 %v3128_v45, %v3086_v61  ;;  %v3170_v5 = vadd.f32 %v3169_v46, %v3127_v63 }
 0x214   : > { %v3171_v53 = vpop.f32.mrf.mxu1 }
 0x215   : > { %v3172_v9 = vadd.f32 %v3171_v53, %v3129_v2 }
 0x24c   : > { %v3208_v49 = vpop.f32.mrf.mxu0 }
 0x24d   : > { %v3209_v4 = vadd.f32 %v3208_v49, %v3166_v62 }
 0x24e   : > { %v3210_v57 = vpop.f32.mrf.mxu0  ;;  %v3251_v59 = vpop.f32.mrf.mxu1 }
 0x24f   : > { %v3211_v6 = vadd.f32 %v3210_v57, %v3168_v3  ;;  %v3252_v10 = vadd.f32 %v3251_v59, %v3209_v4 }
 0x250   : > { %v3212_v0 = vpop.f32.mrf.mxu0  ;;  %v3253_v1 = vpop.f32.mrf.mxu1 }
 0x251   : > { %v3213_v11 = vadd.f32 %v3212_v0, %v3170_v5  ;;  %v3254_v13 = vadd.f32 %v3253_v1, %v3211_v6 }
 0x252   : > { %v3214_v7 = vpop.f32.mrf.mxu0  ;;  %v3255_v8 = vpop.f32.mrf.mxu1 }
 0x253   : > { %v3215_v14 = vadd.f32 %v3214_v7, %v3172_v9  ;;  %v3256_v18 = vadd.f32 %v3255_v8, %v3213_v11 }
 0x254   : > { %v3257_v16 = vpop.f32.mrf.mxu1 }
 0x255   : > { %v3258_v21 = vadd.f32 %v3257_v16, %v3215_v14 }
 0x26c   : > { %v3294_v12 = vpop.f32.mrf.mxu0 }
 0x26d   : > { %v3295_v15 = vadd.f32 %v3294_v12, %v3252_v10 }
 0x26e   : > { %v3296_v17 = vpop.f32.mrf.mxu0 }
 0x26f   : > { %v3297_v19 = vadd.f32 %v3296_v17, %v3254_v13  ;;  %v3303_v22 = vmax.f32 %v3295_v15, 0.0 }
 0x270   : > { %v3298_v20 = vpop.f32.mrf.mxu0 }
 0x271   : > { %v3304_v23 = vmax.f32 %v3297_v19, 0.0  ;;  %v3299_v24 = vadd.f32 %v3298_v20, %v3256_v18 }
 0x272   : > { %v3300_v25 = vpop.f32.mrf.mxu0 }
 0x273   : > { %v3819_v26 = vpack.c.bf16 %v3304_v23, %v3303_v22  ;;  %v3301_v27 = vadd.f32 %v3300_v25, %v3258_v21  ;;  %v3305_v28 = vmax.f32 %v3299_v24, 0.0 }
 0x275   : > { %3319 = vst [vmem:[%s177_s27] sm:$0xff] %v3819_v26  ;;  %v3306_v29 = vmax.f32 %v3301_v27, 0.0 }
 0x277   : > { %v3820_v30 = vpack.c.bf16 %v3306_v29, %v3305_v28 }
 0x279   : > { %3320 = vst [vmem:[%s177_s27 + $0x8] sm:$0xff] %v3820_v30 }
 0x27a PF: > { %s13_s12 = sadd.s32 1, %s4474_s12  }
 0x27b   : > { %p10_p4 = scmp.ge.s32.totalorder %s13_s12, 4  }
 0x27d   :  { %12 = sbr.rel (!%p10_p4) target bundleno = 1 (0x1), region = 62 }

// kernel: forward.7
= control target key start
LH: loop header
LB: loop body
LE: loop exit
PB: predicated region body
PF: predicated region fallthrough
CT: control target
= control target key end

     0   :  { %v3821_v22 = vmov 1966171168   ;;  %v546_v24 = vlaneseq  ;;  %s4674_s1 = inlined_call_operand.vmem [shape: bf16[4096,128], index: 1, kind: input, shape index: {}]   ;;  %s4675_s0 = inlined_call_operand.vmem [shape: bf16[2,4096], index: 0, kind: input, shape index: {}]   ;;  %s4676_s2 = inlined_call_operand.vmem [shape: f32[1,128], index: 2, kind: input, shape index: {}]   ;;  %s4677_s3 = inlined_call_operand.vmem [shape: f32[2,128], index: 3, kind: output, shape index: {}]  }
   0x1   :  { %v3561_v0 = vld [vmem:[%s4674_s1 + $0x78] sm:$0xff]   ;;  %v3565_v4 = vld [vmem:[%s4674_s1 + $0x70] sm:$0xff]   ;;  %v3569_v8 = vld [vmem:[%s4674_s1 + $0x68] sm:$0xff]   ;;  %v544_v23 = vunpack.c.l.s4 %v3821_v22 }
   0x2   :  { %v3562_v1 = vld [vmem:[%s4674_s1 + $0xf8] sm:$0xff]   ;;  %3208 = vmatprep.subr.bf16.mxu0 %v3561_v0  ;;  %v3566_v5 = vld [vmem:[%s4674_s1 + $0xf0] sm:$0xff]   ;;  %v3570_v9 = vld [vmem:[%s4674_s1 + $0xe8] sm:$0xff]   ;;  %v547_v30 = vshrl.u32 %v546_v24, 7 }
   0x3   :  { %v3563_v2 = vld [vmem:[%s4674_s1 + $0x38] sm:$0xff]   ;;  %3230 = vmatprep.subr.bf16.mxu1 %v3562_v1  ;;  %v3567_v6 = vld [vmem:[%s4674_s1 + $0x30] sm:$0xff]   ;;  %v3571_v10 = vld [vmem:[%s4674_s1 + $0x28] sm:$0xff]   ;;  %v545_v29 = vunpack.c.0.s8 %v544_v23 }
   0x4   :  { %v3564_v3 = vld [vmem:[%s4674_s1 + $0xb8] sm:$0xff]   ;;  %3209 = vmatpush3.bf16.msra.mxu0 %v3563_v2  ;;  %v3568_v7 = vld [vmem:[%s4674_s1 + $0xb0] sm:$0xff]   ;;  %v3572_v11 = vld [vmem:[%s4674_s1 + $0xa8] sm:$0xff]  }
   0x5   :  { %3231 = vmatpush3.bf16.msra.mxu1 %v3564_v3  ;;  %3210 = vmatprep.subr.bf16.mxu0 %v3565_v4  ;;  %v3573_v12 = vld [vmem:[%s4674_s1 + $0x60] sm:$0xff]   ;;  %v3577_v16 = vld [vmem:[%s4674_s1 + $0x58] sm:$0xff]   ;;  %v3581_v20 = vld [vmem:[%s4674_s1 + $0x50] sm:$0xff]   ;;  %v3932_v35 = vsub.s32 %v545_v29, %v547_v30 }
   0x6   :  { %3232 = vmatprep.subr.bf16.mxu1 %v3566_v5  ;;  %v3574_v13 = vld [vmem:[%s4674_s1 + $0xe0] sm:$0xff]   ;;  %v3578_v17 = vld [vmem:[%s4674_s1 + $0xd8] sm:$0xff]   ;;  %v3582_v21 = vld [vmem:[%s4674_s1 + $0xd0] sm:$0xff]  }
   0x7   :  { %v3575_v14 = vld [vmem:[%s4674_s1 + $0x20] sm:$0xff]   ;;  %v3579_v18 = vld [vmem:[%s4674_s1 + $0x18] sm:$0xff]   ;;  %v3583_v25 = vld [vmem:[%s4674_s1 + $0x10] sm:$0xff]  }
   0x8   :  { %3211 = vmatpush3.bf16.msra.mxu0 %v3567_v6  ;;  %v3576_v15 = vld [vmem:[%s4674_s1 + $0xa0] sm:$0xff]   ;;  %v3580_v19 = vld [vmem:[%s4674_s1 + $0x98] sm:$0xff]   ;;  %v3584_v26 = vld [vmem:[%s4674_s1 + $0x90] sm:$0xff]  }
   0x9   :  { %3233 = vmatpush3.bf16.msra.mxu1 %v3568_v7  ;;  %3212 = vmatprep.subr.bf16.mxu0 %v3569_v8  ;;  %v3585_v27 = vld [vmem:[%s4674_s1 + $0x48] sm:$0xff]   ;;  %v3589_v33 = vld [vmem:[%s4674_s1 + $0x40] sm:$0xff]   ;;  %v3594_v41 = vld [vmem:[%s4674_s1 + $0x178] sm:$0xff]  }
   0xa   :  { %3234 = vmatprep.subr.bf16.mxu1 %v3570_v9  ;;  %v3586_v28 = vld [vmem:[%s4674_s1 + $0xc8] sm:$0xff]   ;;  %v3590_v34 = vld [vmem:[%s4674_s1 + $0xc0] sm:$0xff]   ;;  %v3595_v42 = vld [vmem:[%s4674_s1 + $0x1f8] sm:$0xff]  }
   0xb   :  { %v3587_v31 = vld [vmem:[%s4674_s1 + $0x8] sm:$0xff]   ;;  %v3591_v36 = vld [vmem:[%s4674_s1] sm:$0xff]   ;;  %v3596_v46 = vld [vmem:[%s4674_s1 + $0x138] sm:$0xff]  }
   0xc   :  { %3213 = vmatpush3.bf16.msra.mxu0 %v3571_v10  ;;  %v3588_v32 = vld [vmem:[%s4674_s1 + $0x88] sm:$0xff]   ;;  %v3592_v37 = vld [vmem:[%s4674_s1 + $0x80] sm:$0xff]   ;;  %v3597_v48 = vld [vmem:[%s4674_s1 + $0x1b8] sm:$0xff]  }
   0xd   :  { %3235 = vmatpush3.bf16.msra.mxu1 %v3572_v11  ;;  %3214 = vmatprep.subr.bf16.mxu0 %v3573_v12  ;;  %v15_v38 = vld [vmem:[%s4675_s0] sm:$0xff]  ;;  %v3598_v51 = vld [vmem:[%s4674_s1 + $0x170] sm:$0xff]   ;;  %v3602_v58 = vld [vmem:[%s4674_s1 + $0x168] sm:$0xff]  }
   0xe   :  { %3236 = vmatprep.subr.bf16.mxu1 %v3574_v13  ;;  %v542_v39 = vcombine.high %v15_v38, %v15_v38  ;;  %v549_v40 = vrot.slane %v15_v38, %v3932_v35  ;;  %v3599_v53 = vld [vmem:[%s4674_s1 + $0x1f0] sm:$0xff]   ;;  %v3603_v59 = vld [vmem:[%s4674_s1 + $0x1e8] sm:$0xff]   ;;  %v3606_v62 = vld [vmem:[%s4674_s1 + $0x160] sm:$0xff]  }
   0xf   :  { %v3600_v55 = vld [vmem:[%s4674_s1 + $0x130] sm:$0xff]   ;;  %v3604_v60 = vld [vmem:[%s4674_s1 + $0x128] sm:$0xff]   ;;  %v3607_v63 = vld [vmem:[%s4674_s1 + $0x1e0] sm:$0xff]  }
  0x10   :  { %3215 = vmatpush3.bf16.msra.mxu0 %v3575_v14  ;;  %v557_v43 = vcombine.high %v549_v40, %v549_v40  ;;  %v565_v44 = vrot.slane %v549_v40, %v3932_v35  ;;  %v3952_v45 = vrot.slane %v542_v39, %v3932_v35  ;;  %v3601_v56 = vld [vmem:[%s4674_s1 + $0x1b0] sm:$0xff]   ;;  %v3605_v61 = vld [vmem:[%s4674_s1 + $0x1a8] sm:$0xff]   ;;  %v3608_v0 = vld [vmem:[%s4674_s1 + $0x120] sm:$0xff]  }
  0x11   :  { %3237 = vmatpush3.bf16.msra.mxu1 %v3576_v15  ;;  %3216 = vmatprep.subr.bf16.mxu0 %v3577_v16  ;;  %v3609_v1 = vld [vmem:[%s4674_s1 + $0x1a0] sm:$0xff]   ;;  %v3610_v2 = vld [vmem:[%s4674_s1 + $0x158] sm:$0xff]   ;;  %v3614_v6 = vld [vmem:[%s4674_s1 + $0x150] sm:$0xff]  }
  0x12   :  { %3238 = vmatprep.subr.bf16.mxu1 %v3578_v17  ;;  %v579_v47 = vrot.slane %v557_v43, %v3932_v35  ;;  %v558_v49 = vcombine.high %v3952_v45, %v3952_v45  ;;  %v587_v50 = vcombine.high %v565_v44, %v565_v44  ;;  %v3611_v3 = vld [vmem:[%s4674_s1 + $0x1d8] sm:$0xff]   ;;  %v3615_v7 = vld [vmem:[%s4674_s1 + $0x1d0] sm:$0xff]   ;;  %v3618_v10 = vld [vmem:[%s4674_s1 + $0x148] sm:$0xff]  }
  0x13   :  { %v3612_v4 = vld [vmem:[%s4674_s1 + $0x118] sm:$0xff]   ;;  %v3616_v8 = vld [vmem:[%s4674_s1 + $0x110] sm:$0xff]   ;;  %v3619_v11 = vld [vmem:[%s4674_s1 + $0x1c8] sm:$0xff]  }
  0x14   :  { %3217 = vmatpush3.bf16.msra.mxu0 %v3579_v18  ;;  %2338 = vmatprep.mubr.bf16.mxu0 %v579_v47  ;;  %v589_v52 = vcombine.high %v579_v47, %v579_v47  ;;  %v586_v54 = vrot.slane %v558_v49, %v3932_v35  ;;  %v3613_v5 = vld [vmem:[%s4674_s1 + $0x198] sm:$0xff]   ;;  %v3617_v9 = vld [vmem:[%s4674_s1 + $0x190] sm:$0xff]   ;;  %v3620_v12 = vld [vmem:[%s4674_s1 + $0x108] sm:$0xff]   ;;  %v572_v18 = vrot.slane %v3952_v45, %v3932_v35 }
  0x15   :  { %3239 = vmatpush3.bf16.msra.mxu1 %v3580_v19  ;;  %3218 = vmatprep.subr.bf16.mxu0 %v3581_v20  ;;  %v3621_v13 = vld [vmem:[%s4674_s1 + $0x188] sm:$0xff]   ;;  %v3622_v14 = vld [vmem:[%s4674_s1 + $0x140] sm:$0xff]   ;;  %v3626_v19 = vld [vmem:[%s4674_s1 + $0x278] sm:$0xff]  }
  0x16   :  { %3240 = vmatprep.subr.bf16.mxu1 %v3582_v21  ;;  %2378 = vmatprep.mubr.bf16.mxu1 %v589_v52  ;;  %v590_v57 = vcombine.high %v586_v54, %v586_v54  ;;  %v3623_v15 = vld [vmem:[%s4674_s1 + $0x1c0] sm:$0xff]   ;;  %v3627_v20 = vld [vmem:[%s4674_s1 + $0x2f8] sm:$0xff]   ;;  %v588_v23 = vcombine.high %v572_v18, %v572_v18  ;;  %v3630_v24 = vld [vmem:[%s4674_s1 + $0x270] sm:$0xff]  }
  0x17   :  { %v3624_v16 = vld [vmem:[%s4674_s1 + $0x100] sm:$0xff]   ;;  %v3628_v21 = vld [vmem:[%s4674_s1 + $0x238] sm:$0xff]   ;;  %v3635_v29 = vld [vmem:[%s4674_s1 + $0x2e8] sm:$0xff]  }
  0x18   :  { %3219 = vmatpush3.bf16.msra.mxu0 %v3583_v25  ;;  %v3625_v17 = vld [vmem:[%s4674_s1 + $0x180] sm:$0xff]   ;;  %v3629_v22 = vld [vmem:[%s4674_s1 + $0x2b8] sm:$0xff]   ;;  %v3631_v25 = vld [vmem:[%s4674_s1 + $0x2f0] sm:$0xff]  }
  0x19   :  { %3241 = vmatpush3.bf16.msra.mxu1 %v3584_v26  ;;  %3220 = vmatprep.subr.bf16.mxu0 %v3585_v27  ;;  %v3632_v26 = vld [vmem:[%s4674_s1 + $0x230] sm:$0xff]   ;;  %v3636_v30 = vld [vmem:[%s4674_s1 + $0x228] sm:$0xff]   ;;  %v3643_v38 = vld [vmem:[%s4674_s1 + $0x2d8] sm:$0xff]  }
  0x1a   :  { %3242 = vmatprep.subr.bf16.mxu1 %v3586_v28  ;;  %v3633_v27 = vld [vmem:[%s4674_s1 + $0x2b0] sm:$0xff]   ;;  %v3634_v28 = vld [vmem:[%s4674_s1 + $0x268] sm:$0xff]   ;;  %v3644_v39 = vld [vmem:[%s4674_s1 + $0x218] sm:$0xff]  }
  0x1b   :  { %v3645_v40 = vld [vmem:[%s4674_s1 + $0x298] sm:$0xff]   ;;  %v3648_v43 = vld [vmem:[%s4674_s1 + $0x210] sm:$0xff]   ;;  %v3650_v45 = vld [vmem:[%s4674_s1 + $0x248] sm:$0xff]  }
  0x1c   :  { %3221 = vmatpush3.bf16.msra.mxu0 %v3587_v31  ;;  %v3637_v31 = vld [vmem:[%s4674_s1 + $0x2a8] sm:$0xff]   ;;  %v3654_v49 = vld [vmem:[%s4674_s1 + $0x240] sm:$0xff]  }
  0x1d   :  { %3243 = vmatpush3.bf16.msra.mxu1 %v3588_v32  ;;  %3222 = vmatprep.subr.bf16.mxu0 %v3589_v33  ;;  %v3638_v32 = vld [vmem:[%s4674_s1 + $0x260] sm:$0xff]   ;;  %v3652_v47 = vld [vmem:[%s4674_s1 + $0x208] sm:$0xff]  }
  0x1e   :  { %3244 = vmatprep.subr.bf16.mxu1 %v3590_v34  ;;  %v3639_v33 = vld [vmem:[%s4674_s1 + $0x2e0] sm:$0xff]   ;;  %v16_v52 = vld [vmem:[%s4675_s0 + $0x8] sm:$0xff] }
  0x1f   :  { %v3640_v34 = vld [vmem:[%s4674_s1 + $0x220] sm:$0xff]  }
  0x20   :  { %3223 = vmatpush3.bf16.msra.mxu0 %v3591_v36  ;;  %v3641_v36 = vld [vmem:[%s4674_s1 + $0x2a0] sm:$0xff]  }
  0x21   :  { %3245 = vmatpush3.bf16.msra.mxu1 %v3592_v37  ;;  %3252 = vmatprep.subr.bf16.mxu0 %v3594_v41  ;;  %v3642_v37 = vld [vmem:[%s4674_s1 + $0x258] sm:$0xff]   ;;  %v3646_v41 = vld [vmem:[%s4674_s1 + $0x250] sm:$0xff]  }
  0x22   :  { %3274 = vmatprep.subr.bf16.mxu1 %v3595_v42  ;;  %v3647_v42 = vld [vmem:[%s4674_s1 + $0x2d0] sm:$0xff]  }
  0x23   :  { %2339 = vmatmul.mubr.bf16.vlgmr.msra.gmra.mxu0 %v565_v44  ;;  %v3649_v44 = vld [vmem:[%s4674_s1 + $0x290] sm:$0xff]  }
  0x24   :  { %3253 = vmatpush3.bf16.msra.mxu0 %v3596_v46  ;;  %2379 = vmatmul.mubr.bf16.vlgmr.msra.gmra.mxu1 %v587_v50  ;;  %v3651_v46 = vld [vmem:[%s4674_s1 + $0x2c8] sm:$0xff]   ;;  %v3655_v50 = vld [vmem:[%s4674_s1 + $0x2c0] sm:$0xff]  }
  0x25   :  { %3254 = vmatprep.subr.bf16.mxu0 %v3598_v51  ;;  %3275 = vmatpush3.bf16.msra.mxu1 %v3597_v48  ;;  %v3653_v48 = vld [vmem:[%s4674_s1 + $0x288] sm:$0xff]   ;;  %v3656_v51 = vld [vmem:[%s4674_s1 + $0x200] sm:$0xff]  }
  0x26   :  { %2418 = vmatprep.mubr.bf16.mxu0 %v586_v54  ;;  %3276 = vmatprep.subr.bf16.mxu1 %v3599_v53  ;;  %v3657_v53 = vld [vmem:[%s4674_s1 + $0x280] sm:$0xff]   ;;  %v598_v54 = vrot.slane %v16_v52, %v3932_v35 }
  0x27   :  { %2458 = vmatprep.mubr.bf16.mxu1 %v590_v57 }
  0x28   :  { %3255 = vmatpush3.bf16.msra.mxu0 %v3600_v55  ;;  %v591_v55 = vcombine.high %v16_v52, %v16_v52  ;;  %v606_v57 = vcombine.high %v598_v54, %v598_v54  ;;  %v3707_v52 = vld [vmem:[%s4674_s1 + $0x458] sm:$0xff]  }
  0x29   :  { %3256 = vmatprep.subr.bf16.mxu0 %v3602_v58  ;;  %3277 = vmatpush3.bf16.msra.mxu1 %v3601_v56  ;;  %v3658_v56 = vld [vmem:[%s4674_s1 + $0x378] sm:$0xff]   ;;  %v614_v58 = vrot.slane %v598_v54, %v3932_v35 }
  0x2a   :  { %3278 = vmatprep.subr.bf16.mxu1 %v3603_v59  ;;  %v3659_v59 = vld [vmem:[%s4674_s1 + $0x3f8] sm:$0xff]  }
  0x2b   :  { %v3709_v54 = vld [vmem:[%s4674_s1 + $0x418] sm:$0xff]  }
  0x2c   :  { %3257 = vmatpush3.bf16.msra.mxu0 %v3604_v60  ;;  %v4158_v60 = vrot.slane %v591_v55, %v3932_v35  ;;  %v3710_v55 = vld [vmem:[%s4674_s1 + $0x498] sm:$0xff]  }
  0x2d   :  { %3258 = vmatprep.subr.bf16.mxu0 %v3606_v62  ;;  %3279 = vmatpush3.bf16.msra.mxu1 %v3605_v61  ;;  %v3660_v61 = vld [vmem:[%s4674_s1 + $0x338] sm:$0xff]   ;;  %v628_v62 = vrot.slane %v606_v57, %v3932_v35  ;;  %v3712_v57 = vld [vmem:[%s4674_s1 + $0x4d0] sm:$0xff]  }
  0x2e   :  { %3280 = vmatprep.subr.bf16.mxu1 %v3607_v63  ;;  %v3661_v63 = vld [vmem:[%s4674_s1 + $0x3b8] sm:$0xff]  }
  0x30   :  { %3259 = vmatpush3.bf16.msra.mxu0 %v3608_v0  ;;  %v607_v0 = vcombine.high %v4158_v60, %v4158_v60 }
  0x31   :  { %3260 = vmatprep.subr.bf16.mxu0 %v3610_v2  ;;  %3281 = vmatpush3.bf16.msra.mxu1 %v3609_v1  ;;  %v636_v1 = vcombine.high %v614_v58, %v614_v58  ;;  %v3662_v2 = vld [vmem:[%s4674_s1 + $0x370] sm:$0xff]  }
  0x32   :  { %3282 = vmatprep.subr.bf16.mxu1 %v3611_v3  ;;  %v638_v3 = vcombine.high %v628_v62, %v628_v62 }
  0x34   :  { %3261 = vmatpush3.bf16.msra.mxu0 %v3612_v4  ;;  %v3663_v4 = vld [vmem:[%s4674_s1 + $0x3f0] sm:$0xff]  }
  0x35   :  { %3262 = vmatprep.subr.bf16.mxu0 %v3614_v6  ;;  %3283 = vmatpush3.bf16.msra.mxu1 %v3613_v5  ;;  %v635_v5 = vrot.slane %v607_v0, %v3932_v35  ;;  %v3664_v6 = vld [vmem:[%s4674_s1 + $0x330] sm:$0xff]   ;;  %v3719_v0 = vld [vmem:[%s4674_s1 + $0x440] sm:$0xff]  }
  0x36   :  { %3284 = vmatprep.subr.bf16.mxu1 %v3615_v7  ;;  %v3665_v7 = vld [vmem:[%s4674_s1 + $0x3b0] sm:$0xff]  }
  0x38   :  { %3263 = vmatpush3.bf16.msra.mxu0 %v3616_v8  ;;  %v639_v8 = vcombine.high %v635_v5, %v635_v5 }
  0x39   :  { %3264 = vmatprep.subr.bf16.mxu0 %v3618_v10  ;;  %3285 = vmatpush3.bf16.msra.mxu1 %v3617_v9  ;;  %v3666_v9 = vld [vmem:[%s4674_s1 + $0x368] sm:$0xff]  }
  0x3a   :  { %3286 = vmatprep.subr.bf16.mxu1 %v3619_v11  ;;  %v3667_v10 = vld [vmem:[%s4674_s1 + $0x3e8] sm:$0xff]  }
  0x3b   :  { %v3668_v11 = vld [vmem:[%s4674_s1 + $0x328] sm:$0xff]  }
  0x3c   :  { %3265 = vmatpush3.bf16.msra.mxu0 %v3620_v12  ;;  %v3669_v12 = vld [vmem:[%s4674_s1 + $0x3a8] sm:$0xff]  }
  0x3d   :  { %3266 = vmatprep.subr.bf16.mxu0 %v3622_v14  ;;  %3287 = vmatpush3.bf16.msra.mxu1 %v3621_v13  ;;  %v3670_v13 = vld [vmem:[%s4674_s1 + $0x360] sm:$0xff]  }
  0x3e   :  { %3288 = vmatprep.subr.bf16.mxu1 %v3623_v15  ;;  %v3671_v14 = vld [vmem:[%s4674_s1 + $0x3e0] sm:$0xff]  }
  0x3f   :  { %v3672_v15 = vld [vmem:[%s4674_s1 + $0x320] sm:$0xff]  }
  0x40   :  { %3267 = vmatpush3.bf16.msra.mxu0 %v3624_v16  ;;  %v3673_v16 = vld [vmem:[%s4674_s1 + $0x3a0] sm:$0xff]  }
  0x41   :  { %3296 = vmatprep.subr.bf16.mxu0 %v3626_v19  ;;  %3289 = vmatpush3.bf16.msra.mxu1 %v3625_v17  ;;  %v3674_v17 = vld [vmem:[%s4674_s1 + $0x358] sm:$0xff]  }
  0x42   :  { %3318 = vmatprep.subr.bf16.mxu1 %v3627_v20  ;;  %v3676_v19 = vld [vmem:[%s4674_s1 + $0x318] sm:$0xff]  }
  0x43   :  { %2419 = vmatmul.mubr.bf16.vlgmr.msra.gmra.mxu0 %v572_v18  ;;  %v3675_v18 = vld [vmem:[%s4674_s1 + $0x3d8] sm:$0xff]  }
  0x44   :  { %3297 = vmatpush3.bf16.msra.mxu0 %v3628_v21  ;;  %2459 = vmatmul.mubr.bf16.vlgmr.msra.gmra.mxu1 %v588_v23  ;;  %v3677_v20 = vld [vmem:[%s4674_s1 + $0x398] sm:$0xff]   ;;  %v3678_v21 = vld [vmem:[%s4674_s1 + $0x350] sm:$0xff]  }
  0x45   :  { %3298 = vmatprep.subr.bf16.mxu0 %v3630_v24  ;;  %3319 = vmatpush3.bf16.msra.mxu1 %v3629_v22  ;;  %v3679_v22 = vld [vmem:[%s4674_s1 + $0x3d0] sm:$0xff]  }
  0x46   :  { %3320 = vmatprep.subr.bf16.mxu1 %v3631_v25  ;;  %2498 = vmatprep.mubr.bf16.mxu0 %v628_v62  ;;  %v3680_v23 = vld [vmem:[%s4674_s1 + $0x310] sm:$0xff]   ;;  %v3682_v25 = vld [vmem:[%s4674_s1 + $0x348] sm:$0xff]  }
  0x47   :  { %2538 = vmatprep.mubr.bf16.mxu1 %v638_v3  ;;  %v3681_v24 = vld [vmem:[%s4674_s1 + $0x390] sm:$0xff]   ;;  %v3717_v62 = vld [vmem:[%s4674_s1 + $0x408] sm:$0xff]  }
  0x48   :  { %3299 = vmatpush3.bf16.msra.mxu0 %v3632_v26  ;;  %v3683_v26 = vld [vmem:[%s4674_s1 + $0x3c8] sm:$0xff]   ;;  %v17_v3 = vld [vmem:[%s4675_s0 + $0x10] sm:$0xff] }
  0x49   :  { %3300 = vmatprep.subr.bf16.mxu0 %v3634_v28  ;;  %3321 = vmatpush3.bf16.msra.mxu1 %v3633_v27  ;;  %v3684_v27 = vld [vmem:[%s4674_s1 + $0x308] sm:$0xff]  }
  0x4a   :  { %3322 = vmatprep.subr.bf16.mxu1 %v3635_v29  ;;  %v3685_v28 = vld [vmem:[%s4674_s1 + $0x388] sm:$0xff]   ;;  %v3686_v29 = vld [vmem:[%s4674_s1 + $0x340] sm:$0xff]  }
  0x4c   :  { %3301 = vmatpush3.bf16.msra.mxu0 %v3636_v30  ;;  %v3687_v30 = vld [vmem:[%s4674_s1 + $0x3c0] sm:$0xff]  }
  0x4d   :  { %3302 = vmatprep.subr.bf16.mxu0 %v3638_v32  ;;  %3323 = vmatpush3.bf16.msra.mxu1 %v3637_v31  ;;  %v3688_v31 = vld [vmem:[%s4674_s1 + $0x300] sm:$0xff]  }
  0x4e   :  { %3324 = vmatprep.subr.bf16.mxu1 %v3639_v33  ;;  %v3689_v32 = vld [vmem:[%s4674_s1 + $0x380] sm:$0xff]   ;;  %v621_v33 = vrot.slane %v4158_v60, %v3932_v35  ;;  %v3715_v60 = vld [vmem:[%s4674_s1 + $0x448] sm:$0xff]  }
  0x50   :  { %3303 = vmatpush3.bf16.msra.mxu0 %v3640_v34  ;;  %v3691_v34 = vld [vmem:[%s4674_s1 + $0x478] sm:$0xff]  }
  0x51   :  { %3304 = vmatprep.subr.bf16.mxu0 %v3642_v37  ;;  %3325 = vmatpush3.bf16.msra.mxu1 %v3641_v36  ;;  %v3692_v36 = vld [vmem:[%s4674_s1 + $0x4f8] sm:$0xff]  }
  0x52   :  { %3326 = vmatprep.subr.bf16.mxu1 %v3643_v38  ;;  %v3693_v37 = vld [vmem:[%s4674_s1 + $0x438] sm:$0xff]  }
  0x53   :  { %v3694_v38 = vld [vmem:[%s4674_s1 + $0x4b8] sm:$0xff]  }
  0x54   :  { %3305 = vmatpush3.bf16.msra.mxu0 %v3644_v39  ;;  %v637_v39 = vcombine.high %v621_v33, %v621_v33 }
  0x55   :  { %3306 = vmatprep.subr.bf16.mxu0 %v3646_v41  ;;  %3327 = vmatpush3.bf16.msra.mxu1 %v3645_v40  ;;  %v3695_v40 = vld [vmem:[%s4674_s1 + $0x470] sm:$0xff]  }
  0x56   :  { %3328 = vmatprep.subr.bf16.mxu1 %v3647_v42  ;;  %v3696_v41 = vld [vmem:[%s4674_s1 + $0x4f0] sm:$0xff]  }
  0x57   :  { %v3697_v42 = vld [vmem:[%s4674_s1 + $0x430] sm:$0xff]  }
  0x58   :  { %3307 = vmatpush3.bf16.msra.mxu0 %v3648_v43  ;;  %v3698_v43 = vld [vmem:[%s4674_s1 + $0x4b0] sm:$0xff]  }
  0x59   :  { %3308 = vmatprep.subr.bf16.mxu0 %v3650_v45  ;;  %3329 = vmatpush3.bf16.msra.mxu1 %v3649_v44  ;;  %v3699_v44 = vld [vmem:[%s4674_s1 + $0x468] sm:$0xff]  }
  0x5a   :  { %3330 = vmatprep.subr.bf16.mxu1 %v3651_v46  ;;  %v3700_v45 = vld [vmem:[%s4674_s1 + $0x4e8] sm:$0xff]  }
  0x5b   :  { %v3701_v46 = vld [vmem:[%s4674_s1 + $0x428] sm:$0xff]  }
  0x5c   :  { %3309 = vmatpush3.bf16.msra.mxu0 %v3652_v47  ;;  %v3702_v47 = vld [vmem:[%s4674_s1 + $0x4a8] sm:$0xff]  }
  0x5d   :  { %3310 = vmatprep.subr.bf16.mxu0 %v3654_v49  ;;  %3331 = vmatpush3.bf16.msra.mxu1 %v3653_v48  ;;  %v3703_v48 = vld [vmem:[%s4674_s1 + $0x460] sm:$0xff]  }
  0x5e   :  { %3332 = vmatprep.subr.bf16.mxu1 %v3655_v50  ;;  %v3704_v49 = vld [vmem:[%s4674_s1 + $0x4e0] sm:$0xff]  }
  0x5f   :  { %v3705_v50 = vld [vmem:[%s4674_s1 + $0x420] sm:$0xff]  }
  0x60   :  { %3311 = vmatpush3.bf16.msra.mxu0 %v3656_v51  ;;  %v3706_v51 = vld [vmem:[%s4674_s1 + $0x4a0] sm:$0xff]  }
  0x61   :  { %3340 = vmatprep.subr.bf16.mxu0 %v3658_v56  ;;  %3333 = vmatpush3.bf16.msra.mxu1 %v3657_v53  ;;  %v3708_v53 = vld [vmem:[%s4674_s1 + $0x4d8] sm:$0xff]   ;;  %v3711_v56 = vld [vmem:[%s4674_s1 + $0x450] sm:$0xff]  }
  0x62   :  { %3362 = vmatprep.subr.bf16.mxu1 %v3659_v59  ;;  %v3714_v59 = vld [vmem:[%s4674_s1 + $0x490] sm:$0xff]  }
  0x63   :  { %2499 = vmatmul.mubr.bf16.vlgmr.msra.gmra.mxu0 %v614_v58  ;;  %v3713_v58 = vld [vmem:[%s4674_s1 + $0x410] sm:$0xff]  }
  0x64   :  { %3341 = vmatpush3.bf16.msra.mxu0 %v3660_v61  ;;  %2539 = vmatmul.mubr.bf16.vlgmr.msra.gmra.mxu1 %v636_v1  ;;  %v3716_v61 = vld [vmem:[%s4674_s1 + $0x4c8] sm:$0xff]   ;;  %v3720_v1 = vld [vmem:[%s4674_s1 + $0x4c0] sm:$0xff]  }
  0x65   :  { %3342 = vmatprep.subr.bf16.mxu0 %v3662_v2  ;;  %3363 = vmatpush3.bf16.msra.mxu1 %v3661_v63  ;;  %v3718_v63 = vld [vmem:[%s4674_s1 + $0x488] sm:$0xff]   ;;  %v3721_v2 = vld [vmem:[%s4674_s1 + $0x400] sm:$0xff]  }
  0x66   :  { %2578 = vmatprep.mubr.bf16.mxu0 %v635_v5  ;;  %3364 = vmatprep.subr.bf16.mxu1 %v3663_v4  ;;  %v3722_v4 = vld [vmem:[%s4674_s1 + $0x480] sm:$0xff]   ;;  %v647_v5 = vrot.slane %v17_v3, %v3932_v35 }
  0x67   :  { %2618 = vmatprep.mubr.bf16.mxu1 %v639_v8 }
  0x68   :  { %3343 = vmatpush3.bf16.msra.mxu0 %v3664_v6  ;;  %v640_v6 = vcombine.high %v17_v3, %v17_v3  ;;  %v655_v8 = vcombine.high %v647_v5, %v647_v5  ;;  %v3772_v3 = vld [vmem:[%s4674_s1 + $0x658] sm:$0xff]  }
  0x69   :  { %3344 = vmatprep.subr.bf16.mxu0 %v3666_v9  ;;  %3365 = vmatpush3.bf16.msra.mxu1 %v3665_v7  ;;  %v3723_v7 = vld [vmem:[%s4674_s1 + $0x578] sm:$0xff]   ;;  %v663_v9 = vrot.slane %v647_v5, %v3932_v35 }
  0x6a   :  { %3366 = vmatprep.subr.bf16.mxu1 %v3667_v10  ;;  %v3724_v10 = vld [vmem:[%s4674_s1 + $0x5f8] sm:$0xff]  }
  0x6b   :  { %v3774_v5 = vld [vmem:[%s4674_s1 + $0x618] sm:$0xff]  }
  0x6c   :  { %3345 = vmatpush3.bf16.msra.mxu0 %v3668_v11  ;;  %v4364_v11 = vrot.slane %v640_v6, %v3932_v35  ;;  %v3775_v6 = vld [vmem:[%s4674_s1 + $0x698] sm:$0xff]  }
  0x6d   :  { %3346 = vmatprep.subr.bf16.mxu0 %v3670_v13  ;;  %3367 = vmatpush3.bf16.msra.mxu1 %v3669_v12  ;;  %v3725_v12 = vld [vmem:[%s4674_s1 + $0x538] sm:$0xff]   ;;  %v677_v13 = vrot.slane %v655_v8, %v3932_v35  ;;  %v3777_v8 = vld [vmem:[%s4674_s1 + $0x6d0] sm:$0xff]  }
  0x6e   :  { %3368 = vmatprep.subr.bf16.mxu1 %v3671_v14  ;;  %v3726_v14 = vld [vmem:[%s4674_s1 + $0x5b8] sm:$0xff]  }
  0x70   :  { %3347 = vmatpush3.bf16.msra.mxu0 %v3672_v15  ;;  %v656_v15 = vcombine.high %v4364_v11, %v4364_v11 }
  0x71   :  { %3348 = vmatprep.subr.bf16.mxu0 %v3674_v17  ;;  %3369 = vmatpush3.bf16.msra.mxu1 %v3673_v16  ;;  %v685_v16 = vcombine.high %v663_v9, %v663_v9  ;;  %v3727_v17 = vld [vmem:[%s4674_s1 + $0x570] sm:$0xff]  }
  0x72   :  { %3370 = vmatprep.subr.bf16.mxu1 %v3675_v18  ;;  %v687_v18 = vcombine.high %v677_v13, %v677_v13 }
  0x74   :  { %3349 = vmatpush3.bf16.msra.mxu0 %v3676_v19  ;;  %v3728_v19 = vld [vmem:[%s4674_s1 + $0x5f0] sm:$0xff]  }
  0x75   :  { %3350 = vmatprep.subr.bf16.mxu0 %v3678_v21  ;;  %3371 = vmatpush3.bf16.msra.mxu1 %v3677_v20  ;;  %v684_v20 = vrot.slane %v656_v15, %v3932_v35  ;;  %v3729_v21 = vld [vmem:[%s4674_s1 + $0x530] sm:$0xff]   ;;  %v3784_v15 = vld [vmem:[%s4674_s1 + $0x640] sm:$0xff]  }
  0x76   :  { %3372 = vmatprep.subr.bf16.mxu1 %v3679_v22  ;;  %v3730_v22 = vld [vmem:[%s4674_s1 + $0x5b0] sm:$0xff]  }
  0x78   :  { %3351 = vmatpush3.bf16.msra.mxu0 %v3680_v23  ;;  %v688_v23 = vcombine.high %v684_v20, %v684_v20 }
  0x79   :  { %3352 = vmatprep.subr.bf16.mxu0 %v3682_v25  ;;  %3373 = vmatpush3.bf16.msra.mxu1 %v3681_v24  ;;  %v3731_v24 = vld [vmem:[%s4674_s1 + $0x568] sm:$0xff]  }
  0x7a   :  { %3374 = vmatprep.subr.bf16.mxu1 %v3683_v26  ;;  %v3732_v25 = vld [vmem:[%s4674_s1 + $0x5e8] sm:$0xff]  }
  0x7b   :  { %v3733_v26 = vld [vmem:[%s4674_s1 + $0x528] sm:$0xff]  }
  0x7c   :  { %3353 = vmatpush3.bf16.msra.mxu0 %v3684_v27  ;;  %v3734_v27 = vld [vmem:[%s4674_s1 + $0x5a8] sm:$0xff]  }
  0x7d   :  { %3354 = vmatprep.subr.bf16.mxu0 %v3686_v29  ;;  %3375 = vmatpush3.bf16.msra.mxu1 %v3685_v28  ;;  %v3735_v28 = vld [vmem:[%s4674_s1 + $0x560] sm:$0xff]  }
  0x7e   :  { %3376 = vmatprep.subr.bf16.mxu1 %v3687_v30  ;;  %v3736_v29 = vld [vmem:[%s4674_s1 + $0x5e0] sm:$0xff]  }
  0x7f   :  { %v3737_v30 = vld [vmem:[%s4674_s1 + $0x520] sm:$0xff]  }
  0x80   :  { %3355 = vmatpush3.bf16.msra.mxu0 %v3688_v31  ;;  %v3738_v31 = vld [vmem:[%s4674_s1 + $0x5a0] sm:$0xff]  }
  0x81   :  { %3384 = vmatprep.subr.bf16.mxu0 %v3691_v34  ;;  %3377 = vmatpush3.bf16.msra.mxu1 %v3689_v32  ;;  %v3739_v32 = vld [vmem:[%s4674_s1 + $0x558] sm:$0xff]  }
  0x82   :  { %3406 = vmatprep.subr.bf16.mxu1 %v3692_v36  ;;  %v3741_v34 = vld [vmem:[%s4674_s1 + $0x518] sm:$0xff]  }
  0x83   :  { %2579 = vmatmul.mubr.bf16.vlgmr.msra.gmra.mxu0 %v621_v33  ;;  %v3740_v33 = vld [vmem:[%s4674_s1 + $0x5d8] sm:$0xff]  }
  0x84   :  { %3385 = vmatpush3.bf16.msra.mxu0 %v3693_v37  ;;  %2619 = vmatmul.mubr.bf16.vlgmr.msra.gmra.mxu1 %v637_v39  ;;  %v3742_v36 = vld [vmem:[%s4674_s1 + $0x598] sm:$0xff]   ;;  %v3743_v37 = vld [vmem:[%s4674_s1 + $0x550] sm:$0xff]  }
  0x85   :  { %3386 = vmatprep.subr.bf16.mxu0 %v3695_v40  ;;  %3407 = vmatpush3.bf16.msra.mxu1 %v3694_v38  ;;  %v3744_v38 = vld [vmem:[%s4674_s1 + $0x5d0] sm:$0xff]  }
  0x86   :  { %3408 = vmatprep.subr.bf16.mxu1 %v3696_v41  ;;  %2658 = vmatprep.mubr.bf16.mxu0 %v677_v13  ;;  %v3745_v39 = vld [vmem:[%s4674_s1 + $0x510] sm:$0xff]   ;;  %v3747_v41 = vld [vmem:[%s4674_s1 + $0x548] sm:$0xff]  }
  0x87   :  { %2698 = vmatprep.mubr.bf16.mxu1 %v687_v18  ;;  %v3746_v40 = vld [vmem:[%s4674_s1 + $0x590] sm:$0xff]   ;;  %v3782_v13 = vld [vmem:[%s4674_s1 + $0x608] sm:$0xff]   ;;  %v18_v18 = vld [vmem:[%s4675_s0 + $0x18] sm:$0xff] }
  0x88   :  { %3387 = vmatpush3.bf16.msra.mxu0 %v3697_v42  ;;  %v3748_v42 = vld [vmem:[%s4674_s1 + $0x5c8] sm:$0xff]  }
  0x89   :  { %3388 = vmatprep.subr.bf16.mxu0 %v3699_v44  ;;  %3409 = vmatpush3.bf16.msra.mxu1 %v3698_v43  ;;  %v3749_v43 = vld [vmem:[%s4674_s1 + $0x508] sm:$0xff]  }
  0x8a   :  { %3410 = vmatprep.subr.bf16.mxu1 %v3700_v45  ;;  %v3750_v44 = vld [vmem:[%s4674_s1 + $0x588] sm:$0xff]   ;;  %v3751_v45 = vld [vmem:[%s4674_s1 + $0x540] sm:$0xff]  }
  0x8c   :  { %3389 = vmatpush3.bf16.msra.mxu0 %v3701_v46  ;;  %v3752_v46 = vld [vmem:[%s4674_s1 + $0x5c0] sm:$0xff]  }
  0x8d   :  { %3390 = vmatprep.subr.bf16.mxu0 %v3703_v48  ;;  %3411 = vmatpush3.bf16.msra.mxu1 %v3702_v47  ;;  %v3753_v47 = vld [vmem:[%s4674_s1 + $0x500] sm:$0xff]  }
  0x8e   :  { %3412 = vmatprep.subr.bf16.mxu1 %v3704_v49  ;;  %v3754_v48 = vld [vmem:[%s4674_s1 + $0x580] sm:$0xff]   ;;  %v670_v49 = vrot.slane %v4364_v11, %v3932_v35  ;;  %v3780_v11 = vld [vmem:[%s4674_s1 + $0x648] sm:$0xff]  }
  0x90   :  { %3391 = vmatpush3.bf16.msra.mxu0 %v3705_v50  ;;  %v3756_v50 = vld [vmem:[%s4674_s1 + $0x678] sm:$0xff]  }
  0x91   :  { %3392 = vmatprep.subr.bf16.mxu0 %v3707_v52  ;;  %3413 = vmatpush3.bf16.msra.mxu1 %v3706_v51  ;;  %v3757_v51 = vld [vmem:[%s4674_s1 + $0x6f8] sm:$0xff]  }
  0x92   :  { %3414 = vmatprep.subr.bf16.mxu1 %v3708_v53  ;;  %v3758_v52 = vld [vmem:[%s4674_s1 + $0x638] sm:$0xff]  }
  0x93   :  { %v3759_v53 = vld [vmem:[%s4674_s1 + $0x6b8] sm:$0xff]  }
  0x94   :  { %3393 = vmatpush3.bf16.msra.mxu0 %v3709_v54  ;;  %v686_v54 = vcombine.high %v670_v49, %v670_v49 }
  0x95   :  { %3394 = vmatprep.subr.bf16.mxu0 %v3711_v56  ;;  %3415 = vmatpush3.bf16.msra.mxu1 %v3710_v55  ;;  %v3760_v55 = vld [vmem:[%s4674_s1 + $0x670] sm:$0xff]  }
  0x96   :  { %3416 = vmatprep.subr.bf16.mxu1 %v3712_v57  ;;  %v3761_v56 = vld [vmem:[%s4674_s1 + $0x6f0] sm:$0xff]  }
  0x97   :  { %v3762_v57 = vld [vmem:[%s4674_s1 + $0x630] sm:$0xff]  }
  0x98   :  { %3395 = vmatpush3.bf16.msra.mxu0 %v3713_v58  ;;  %v3763_v58 = vld [vmem:[%s4674_s1 + $0x6b0] sm:$0xff]  }
  0x99   :  { %3396 = vmatprep.subr.bf16.mxu0 %v3715_v60  ;;  %3417 = vmatpush3.bf16.msra.mxu1 %v3714_v59  ;;  %v3764_v59 = vld [vmem:[%s4674_s1 + $0x668] sm:$0xff]  }
  0x9a   :  { %3418 = vmatprep.subr.bf16.mxu1 %v3716_v61  ;;  %v3765_v60 = vld [vmem:[%s4674_s1 + $0x6e8] sm:$0xff]  }
  0x9b   :  { %v3766_v61 = vld [vmem:[%s4674_s1 + $0x628] sm:$0xff]  }
  0x9c   :  { %3397 = vmatpush3.bf16.msra.mxu0 %v3717_v62  ;;  %v3767_v62 = vld [vmem:[%s4674_s1 + $0x6a8] sm:$0xff]  }
  0x9d   :  { %3398 = vmatprep.subr.bf16.mxu0 %v3719_v0  ;;  %3419 = vmatpush3.bf16.msra.mxu1 %v3718_v63  ;;  %v3768_v63 = vld [vmem:[%s4674_s1 + $0x660] sm:$0xff]  }
  0x9e   :  { %3420 = vmatprep.subr.bf16.mxu1 %v3720_v1  ;;  %v3769_v0 = vld [vmem:[%s4674_s1 + $0x6e0] sm:$0xff]  }
  0x9f   :  { %v3770_v1 = vld [vmem:[%s4674_s1 + $0x620] sm:$0xff]  }
  0xa0   :  { %3399 = vmatpush3.bf16.msra.mxu0 %v3721_v2  ;;  %v3771_v2 = vld [vmem:[%s4674_s1 + $0x6a0] sm:$0xff]  }
  0xa1   :  { %3428 = vmatprep.subr.bf16.mxu0 %v3723_v7  ;;  %3421 = vmatpush3.bf16.msra.mxu1 %v3722_v4  ;;  %v3773_v4 = vld [vmem:[%s4674_s1 + $0x6d8] sm:$0xff]   ;;  %v3776_v7 = vld [vmem:[%s4674_s1 + $0x650] sm:$0xff]  }
  0xa2   :  { %3450 = vmatprep.subr.bf16.mxu1 %v3724_v10  ;;  %v3779_v10 = vld [vmem:[%s4674_s1 + $0x690] sm:$0xff]  }
  0xa3   :  { %2659 = vmatmul.mubr.bf16.vlgmr.msra.gmra.mxu0 %v663_v9  ;;  %v3778_v9 = vld [vmem:[%s4674_s1 + $0x610] sm:$0xff]  }
  0xa4   :  { %3429 = vmatpush3.bf16.msra.mxu0 %v3725_v12  ;;  %2699 = vmatmul.mubr.bf16.vlgmr.msra.gmra.mxu1 %v685_v16  ;;  %v3781_v12 = vld [vmem:[%s4674_s1 + $0x6c8] sm:$0xff]   ;;  %v3785_v16 = vld [vmem:[%s4674_s1 + $0x6c0] sm:$0xff]  }
  0xa5   :  { %3430 = vmatprep.subr.bf16.mxu0 %v3727_v17  ;;  %3451 = vmatpush3.bf16.msra.mxu1 %v3726_v14  ;;  %v3783_v14 = vld [vmem:[%s4674_s1 + $0x688] sm:$0xff]   ;;  %v3786_v17 = vld [vmem:[%s4674_s1 + $0x600] sm:$0xff]  }
  0xa6   :  { %2738 = vmatprep.mubr.bf16.mxu0 %v684_v20  ;;  %3452 = vmatprep.subr.bf16.mxu1 %v3728_v19  ;;  %v696_v19 = vrot.slane %v18_v18, %v3932_v35  ;;  %v3788_v20 = vld [vmem:[%s4674_s1 + $0x778] sm:$0xff]  }
  0xa7   :  { %2778 = vmatprep.mubr.bf16.mxu1 %v688_v23 }
  0xa8   :  { %3431 = vmatpush3.bf16.msra.mxu0 %v3729_v21  ;;  %v689_v21 = vcombine.high %v18_v18, %v18_v18  ;;  %v704_v23 = vcombine.high %v696_v19, %v696_v19 }
  0xa9   :  { %3432 = vmatprep.subr.bf16.mxu0 %v3731_v24  ;;  %3453 = vmatpush3.bf16.msra.mxu1 %v3730_v22  ;;  %v3787_v22 = vld [vmem:[%s4674_s1 + $0x680] sm:$0xff]   ;;  %v712_v24 = vrot.slane %v696_v19, %v3932_v35 }
  0xaa   :  { %3454 = vmatprep.subr.bf16.mxu1 %v3732_v25  ;;  %v3789_v25 = vld [vmem:[%s4674_s1 + $0x7f8] sm:$0xff]  }
  0xac   :  { %3433 = vmatpush3.bf16.msra.mxu0 %v3733_v26  ;;  %v4570_v26 = vrot.slane %v689_v21, %v3932_v35 }
  0xad   :  { %3434 = vmatprep.subr.bf16.mxu0 %v3735_v28  ;;  %3455 = vmatpush3.bf16.msra.mxu1 %v3734_v27  ;;  %v3790_v27 = vld [vmem:[%s4674_s1 + $0x738] sm:$0xff]   ;;  %v726_v28 = vrot.slane %v704_v23, %v3932_v35 }
  0xae   :  { %3456 = vmatprep.subr.bf16.mxu1 %v3736_v29  ;;  %v3791_v29 = vld [vmem:[%s4674_s1 + $0x7b8] sm:$0xff]  }
  0xb0   :  { %3435 = vmatpush3.bf16.msra.mxu0 %v3737_v30  ;;  %v705_v30 = vcombine.high %v4570_v26, %v4570_v26 }
  0xb1   :  { %3436 = vmatprep.subr.bf16.mxu0 %v3739_v32  ;;  %3457 = vmatpush3.bf16.msra.mxu1 %v3738_v31  ;;  %v734_v31 = vcombine.high %v712_v24, %v712_v24  ;;  %v3792_v32 = vld [vmem:[%s4674_s1 + $0x770] sm:$0xff]  }
  0xb2   :  { %3458 = vmatprep.subr.bf16.mxu1 %v3740_v33  ;;  %v736_v33 = vcombine.high %v726_v28, %v726_v28 }
  0xb4   :  { %3437 = vmatpush3.bf16.msra.mxu0 %v3741_v34 }
  0xb5   :  { %3438 = vmatprep.subr.bf16.mxu0 %v3743_v37  ;;  %3459 = vmatpush3.bf16.msra.mxu1 %v3742_v36  ;;  %v2951_v36 = vld [vmem:[%s4676_s2] ss:$0 sm:$0xff]  ;;  %v733_v37 = vrot.slane %v705_v30, %v3932_v35 }
  0xb6   :  { %3460 = vmatprep.subr.bf16.mxu1 %v3744_v38  ;;  %v3793_v38 = vld [vmem:[%s4674_s1 + $0x7f0] sm:$0xff]  }
  0xb8   :  { %3439 = vmatpush3.bf16.msra.mxu0 %v3745_v39 }
  0xb9   :  { %3440 = vmatprep.subr.bf16.mxu0 %v3747_v41  ;;  %3461 = vmatpush3.bf16.msra.mxu1 %v3746_v40  ;;  %v3794_v41 = vld [vmem:[%s4674_s1 + $0x730] sm:$0xff]  }
  0xba   :  { %3462 = vmatprep.subr.bf16.mxu1 %v3748_v42  ;;  %v737_v42 = vcombine.high %v733_v37, %v733_v37 }
  0xbc   :  { %3441 = vmatpush3.bf16.msra.mxu0 %v3749_v43 }
  0xbd   :  { %3442 = vmatprep.subr.bf16.mxu0 %v3751_v45  ;;  %3463 = vmatpush3.bf16.msra.mxu1 %v3750_v44  ;;  %v3796_v44 = vld [vmem:[%s4674_s1 + $0x768] sm:$0xff]  }
  0xbe   :  { %3464 = vmatprep.subr.bf16.mxu1 %v3752_v46 }
  0xc0   :  { %3443 = vmatpush3.bf16.msra.mxu0 %v3753_v47  ;;  %v3795_v47 = vld [vmem:[%s4674_s1 + $0x7b0] sm:$0xff]  }
  0xc1   :  { %3472 = vmatprep.subr.bf16.mxu0 %v3756_v50  ;;  %3465 = vmatpush3.bf16.msra.mxu1 %v3754_v48  ;;  %v3797_v50 = vld [vmem:[%s4674_s1 + $0x7e8] sm:$0xff]  }
  0xc2   :  { %3494 = vmatprep.subr.bf16.mxu1 %v3757_v51 }
  0xc3   :  { %2739 = vmatmul.mubr.bf16.vlgmr.msra.gmra.mxu0 %v670_v49 }
  0xc4   :  { %3473 = vmatpush3.bf16.msra.mxu0 %v3758_v52  ;;  %2779 = vmatmul.mubr.bf16.vlgmr.msra.gmra.mxu1 %v686_v54 }
  0xc5   :  { %3474 = vmatprep.subr.bf16.mxu0 %v3760_v55  ;;  %3495 = vmatpush3.bf16.msra.mxu1 %v3759_v53  ;;  %v3798_v53 = vld [vmem:[%s4674_s1 + $0x728] sm:$0xff]   ;;  %v3800_v55 = vld [vmem:[%s4674_s1 + $0x760] sm:$0xff]  }
  0xc6   :  { %3496 = vmatprep.subr.bf16.mxu1 %v3761_v56  ;;  %2818 = vmatprep.mubr.bf16.mxu0 %v726_v28 }
  0xc7   :  { %2858 = vmatprep.mubr.bf16.mxu1 %v736_v33 }
  0xc8   :  { %3475 = vmatpush3.bf16.msra.mxu0 %v3762_v57  ;;  %v3799_v57 = vld [vmem:[%s4674_s1 + $0x7a8] sm:$0xff]  }
  0xc9   :  { %3476 = vmatprep.subr.bf16.mxu0 %v3764_v59  ;;  %3497 = vmatpush3.bf16.msra.mxu1 %v3763_v58  ;;  %v3801_v58 = vld [vmem:[%s4674_s1 + $0x7e0] sm:$0xff]  }
  0xca   :  { %3498 = vmatprep.subr.bf16.mxu1 %v3765_v60  ;;  %v3802_v59 = vld [vmem:[%s4674_s1 + $0x720] sm:$0xff]   ;;  %v3804_v60 = vld [vmem:[%s4674_s1 + $0x758] sm:$0xff]  }
  0xcc   :  { %3477 = vmatpush3.bf16.msra.mxu0 %v3766_v61  ;;  %v3803_v61 = vld [vmem:[%s4674_s1 + $0x7a0] sm:$0xff]  }
  0xcd   :  { %3478 = vmatprep.subr.bf16.mxu0 %v3768_v63  ;;  %3499 = vmatpush3.bf16.msra.mxu1 %v3767_v62  ;;  %v3805_v62 = vld [vmem:[%s4674_s1 + $0x7d8] sm:$0xff]  }
  0xce   :  { %3500 = vmatprep.subr.bf16.mxu1 %v3769_v0  ;;  %v3806_v63 = vld [vmem:[%s4674_s1 + $0x718] sm:$0xff]   ;;  %v3808_v0 = vld [vmem:[%s4674_s1 + $0x750] sm:$0xff]  }
  0xd0   :  { %3479 = vmatpush3.bf16.msra.mxu0 %v3770_v1  ;;  %v3807_v1 = vld [vmem:[%s4674_s1 + $0x798] sm:$0xff]  }
  0xd1   :  { %3480 = vmatprep.subr.bf16.mxu0 %v3772_v3  ;;  %3501 = vmatpush3.bf16.msra.mxu1 %v3771_v2  ;;  %v3809_v2 = vld [vmem:[%s4674_s1 + $0x7d0] sm:$0xff]  }
  0xd2   :  { %3502 = vmatprep.subr.bf16.mxu1 %v3773_v4  ;;  %v3810_v3 = vld [vmem:[%s4674_s1 + $0x710] sm:$0xff]   ;;  %v3812_v4 = vld [vmem:[%s4674_s1 + $0x748] sm:$0xff]  }
  0xd4   :  { %3481 = vmatpush3.bf16.msra.mxu0 %v3774_v5  ;;  %v3811_v5 = vld [vmem:[%s4674_s1 + $0x790] sm:$0xff]  }
  0xd5   :  { %3482 = vmatprep.subr.bf16.mxu0 %v3776_v7  ;;  %3503 = vmatpush3.bf16.msra.mxu1 %v3775_v6  ;;  %v3813_v6 = vld [vmem:[%s4674_s1 + $0x7c8] sm:$0xff]  }
  0xd6   :  { %3504 = vmatprep.subr.bf16.mxu1 %v3777_v8  ;;  %v3814_v7 = vld [vmem:[%s4674_s1 + $0x708] sm:$0xff]   ;;  %v3816_v8 = vld [vmem:[%s4674_s1 + $0x740] sm:$0xff]  }
  0xd8   :  { %3483 = vmatpush3.bf16.msra.mxu0 %v3778_v9  ;;  %v3815_v9 = vld [vmem:[%s4674_s1 + $0x788] sm:$0xff]  }
  0xd9   :  { %3484 = vmatprep.subr.bf16.mxu0 %v3780_v11  ;;  %3505 = vmatpush3.bf16.msra.mxu1 %v3779_v10  ;;  %v3817_v10 = vld [vmem:[%s4674_s1 + $0x7c0] sm:$0xff]  }
  0xda   :  { %3506 = vmatprep.subr.bf16.mxu1 %v3781_v12  ;;  %v3818_v11 = vld [vmem:[%s4674_s1 + $0x700] sm:$0xff]   ;;  %v719_v12 = vrot.slane %v4570_v26, %v3932_v35 }
  0xdc   :  { %3485 = vmatpush3.bf16.msra.mxu0 %v3782_v13  ;;  %v3819_v13 = vld [vmem:[%s4674_s1 + $0x780] sm:$0xff]  }
  0xdd   :  { %3486 = vmatprep.subr.bf16.mxu0 %v3784_v15  ;;  %3507 = vmatpush3.bf16.msra.mxu1 %v3783_v14  ;;  %v735_v14 = vcombine.high %v719_v12, %v719_v12 }
  0xde   :  { %3508 = vmatprep.subr.bf16.mxu1 %v3785_v16 }
  0xe0   :  { %3487 = vmatpush3.bf16.msra.mxu0 %v3786_v17 }
  0xe1   :  { %3516 = vmatprep.subr.bf16.mxu0 %v3788_v20  ;;  %3509 = vmatpush3.bf16.msra.mxu1 %v3787_v22 }
  0xe2   :  { %3538 = vmatprep.subr.bf16.mxu1 %v3789_v25 }
  0xe3   :  { %v3224_v34 = vpop.f32.mrf.mxu0  ;;  %2819 = vmatmul.mubr.bf16.vlgmr.msra.gmra.mxu0 %v712_v24 }
  0xe4   :  { %v3246_v39 = vpop.f32.mrf.mxu1  ;;  %3517 = vmatpush3.bf16.msra.mxu0 %v3790_v27  ;;  %2859 = vmatmul.mubr.bf16.vlgmr.msra.gmra.mxu1 %v734_v31 }
  0xe5   :  { %v3225_v40 = vpop.f32.mrf.mxu0  ;;  %3518 = vmatprep.subr.bf16.mxu0 %v3792_v32  ;;  %3539 = vmatpush3.bf16.msra.mxu1 %v3791_v29 }
  0xe6   :  { %v3226_v43 = vadd.f32 %v3225_v40, %v3224_v34  ;;  %v3247_v45 = vpop.f32.mrf.mxu1  ;;  %2898 = vmatprep.mubr.bf16.mxu0 %v733_v37  ;;  %3540 = vmatprep.subr.bf16.mxu1 %v3793_v38 }
  0xe7   :  { %v3227_v46 = vpop.f32.mrf.mxu0  ;;  %v3248_v49 = vadd.f32 %v3247_v45, %v3246_v39  ;;  %2938 = vmatprep.mubr.bf16.mxu1 %v737_v42 }
  0xe8   :  { %v2341_v48 = vadd.f32 %v3226_v43, %v2951_v36  ;;  %v3249_v51 = vpop.f32.mrf.mxu1  ;;  %3519 = vmatpush3.bf16.msra.mxu0 %v3794_v41 }
  0xe9   :  { %v3228_v52 = vpop.f32.mrf.mxu0  ;;  %3520 = vmatprep.subr.bf16.mxu0 %v3796_v44  ;;  %3541 = vmatpush3.bf16.msra.mxu1 %v3795_v47 }
  0xea   :  { %v2381_v54 = vadd.f32 %v3248_v49, %v2341_v48  ;;  %v3250_v56 = vpop.f32.mrf.mxu1  ;;  %3542 = vmatprep.subr.bf16.mxu1 %v3797_v50 }
  0xec   :  { %3521 = vmatpush3.bf16.msra.mxu0 %v3798_v53 }
  0xed   :  { %3522 = vmatprep.subr.bf16.mxu0 %v3800_v55  ;;  %3543 = vmatpush3.bf16.msra.mxu1 %v3799_v57 }
  0xee   :  { %3544 = vmatprep.subr.bf16.mxu1 %v3801_v58 }
  0xf0   :  { %3523 = vmatpush3.bf16.msra.mxu0 %v3802_v59 }
  0xf1   :  { %3524 = vmatprep.subr.bf16.mxu0 %v3804_v60  ;;  %3545 = vmatpush3.bf16.msra.mxu1 %v3803_v61 }
  0xf2   :  { %3546 = vmatprep.subr.bf16.mxu1 %v3805_v62 }
  0xf4   :  { %3525 = vmatpush3.bf16.msra.mxu0 %v3806_v63 }
  0xf5   :  { %3526 = vmatprep.subr.bf16.mxu0 %v3808_v0  ;;  %3547 = vmatpush3.bf16.msra.mxu1 %v3807_v1 }
  0xf6   :  { %3548 = vmatprep.subr.bf16.mxu1 %v3809_v2 }
  0xf8   :  { %3527 = vmatpush3.bf16.msra.mxu0 %v3810_v3 }
  0xf9   :  { %3528 = vmatprep.subr.bf16.mxu0 %v3812_v4  ;;  %3549 = vmatpush3.bf16.msra.mxu1 %v3811_v5 }
  0xfa   :  { %3550 = vmatprep.subr.bf16.mxu1 %v3813_v6 }
  0xfc   :  { %3529 = vmatpush3.bf16.msra.mxu0 %v3814_v7 }
  0xfd   :  { %3530 = vmatprep.subr.bf16.mxu0 %v3816_v8  ;;  %3551 = vmatpush3.bf16.msra.mxu1 %v3815_v9 }
  0xfe   :  { %3552 = vmatprep.subr.bf16.mxu1 %v3817_v10 }
 0x100   :  { %3531 = vmatpush3.bf16.msra.mxu0 %v3818_v11 }
 0x101   :  { %3553 = vmatpush3.bf16.msra.mxu1 %v3819_v13 }
 0x103   :  { %v3268_v15 = vpop.f32.mrf.mxu0  ;;  %2899 = vmatmul.mubr.bf16.vlgmr.msra.gmra.mxu0 %v719_v12 }
 0x104   :  { %v3290_v16 = vpop.f32.mrf.mxu1  ;;  %2939 = vmatmul.mubr.bf16.vlgmr.msra.gmra.mxu1 %v735_v14 }
 0x105   :  { %v3269_v17 = vpop.f32.mrf.mxu0 }
 0x106   :  { %v3270_v18 = vadd.f32 %v3269_v17, %v3268_v15  ;;  %v3291_v19 = vpop.f32.mrf.mxu1 }
 0x107   :  { %v3271_v20 = vpop.f32.mrf.mxu0  ;;  %v3292_v22 = vadd.f32 %v3291_v19, %v3290_v16 }
 0x108   :  { %v2421_v21 = vadd.f32 %v3270_v18, %v2381_v54  ;;  %v3293_v35 = vpop.f32.mrf.mxu1 }
 0x109   :  { %v3272_v23 = vpop.f32.mrf.mxu0 }
 0x10a   :  { %v2461_v24 = vadd.f32 %v3292_v22, %v2421_v21  ;;  %v3294_v25 = vpop.f32.mrf.mxu1 }
 0x123   :  { %v3312_v26 = vpop.f32.mrf.mxu0 }
 0x124   :  { %v3334_v27 = vpop.f32.mrf.mxu1 }
 0x125   :  { %v3313_v28 = vpop.f32.mrf.mxu0 }
 0x126   :  { %v3314_v29 = vadd.f32 %v3313_v28, %v3312_v26  ;;  %v3335_v30 = vpop.f32.mrf.mxu1 }
 0x127   :  { %v3315_v31 = vpop.f32.mrf.mxu0  ;;  %v3336_v33 = vadd.f32 %v3335_v30, %v3334_v27 }
 0x128   :  { %v2501_v32 = vadd.f32 %v3314_v29, %v2461_v24  ;;  %v3337_v34 = vpop.f32.mrf.mxu1 }
 0x129   :  { %v3316_v36 = vpop.f32.mrf.mxu0 }
 0x12a   :  { %v2541_v37 = vadd.f32 %v3336_v33, %v2501_v32  ;;  %v3338_v38 = vpop.f32.mrf.mxu1 }
 0x143   :  { %v3356_v39 = vpop.f32.mrf.mxu0 }
 0x144   :  { %v3378_v40 = vpop.f32.mrf.mxu1 }
 0x145   :  { %v3357_v41 = vpop.f32.mrf.mxu0 }
 0x146   :  { %v3358_v42 = vadd.f32 %v3357_v41, %v3356_v39  ;;  %v3379_v43 = vpop.f32.mrf.mxu1 }
 0x147   :  { %v3359_v44 = vpop.f32.mrf.mxu0  ;;  %v3380_v46 = vadd.f32 %v3379_v43, %v3378_v40 }
 0x148   :  { %v2581_v45 = vadd.f32 %v3358_v42, %v2541_v37  ;;  %v3381_v47 = vpop.f32.mrf.mxu1 }
 0x149   :  { %v3360_v48 = vpop.f32.mrf.mxu0 }
 0x14a   :  { %v2621_v49 = vadd.f32 %v3380_v46, %v2581_v45  ;;  %v3382_v50 = vpop.f32.mrf.mxu1 }
 0x163   :  { %v3400_v51 = vpop.f32.mrf.mxu0 }
 0x164   :  { %v3422_v52 = vpop.f32.mrf.mxu1 }
 0x165   :  { %v3401_v53 = vpop.f32.mrf.mxu0 }
 0x166   :  { %v3402_v54 = vadd.f32 %v3401_v53, %v3400_v51  ;;  %v3423_v55 = vpop.f32.mrf.mxu1 }
 0x167   :  { %v3403_v56 = vpop.f32.mrf.mxu0  ;;  %v3424_v58 = vadd.f32 %v3423_v55, %v3422_v52 }
 0x168   :  { %v2661_v57 = vadd.f32 %v3402_v54, %v2621_v49  ;;  %v3425_v59 = vpop.f32.mrf.mxu1 }
 0x169   :  { %v3404_v60 = vpop.f32.mrf.mxu0 }
 0x16a   :  { %v2701_v61 = vadd.f32 %v3424_v58, %v2661_v57  ;;  %v3426_v62 = vpop.f32.mrf.mxu1 }
 0x183   :  { %v3444_v63 = vpop.f32.mrf.mxu0 }
 0x184   :  { %v3466_v0 = vpop.f32.mrf.mxu1 }
 0x185   :  { %v3445_v1 = vpop.f32.mrf.mxu0 }
 0x186   :  { %v3467_v2 = vpop.f32.mrf.mxu1  ;;  %v3446_v15 = vadd.f32 %v3445_v1, %v3444_v63 }
 0x187   :  { %v3447_v3 = vpop.f32.mrf.mxu0  ;;  %v3468_v17 = vadd.f32 %v3467_v2, %v3466_v0 }
 0x188   :  { %v3469_v4 = vpop.f32.mrf.mxu1  ;;  %v2741_v16 = vadd.f32 %v3446_v15, %v2701_v61 }
 0x189   :  { %v3448_v5 = vpop.f32.mrf.mxu0 }
 0x18a   :  { %v3470_v6 = vpop.f32.mrf.mxu1  ;;  %v2781_v19 = vadd.f32 %v3468_v17, %v2741_v16 }
 0x1a3   :  { %v3488_v7 = vpop.f32.mrf.mxu0 }
 0x1a4   :  { %v3510_v8 = vpop.f32.mrf.mxu1 }
 0x1a5   :  { %v3489_v9 = vpop.f32.mrf.mxu0 }
 0x1a6   :  { %v3511_v10 = vpop.f32.mrf.mxu1  ;;  %v3490_v18 = vadd.f32 %v3489_v9, %v3488_v7 }
 0x1a7   :  { %v3491_v11 = vpop.f32.mrf.mxu0  ;;  %v3512_v21 = vadd.f32 %v3511_v10, %v3510_v8 }
 0x1a8   :  { %v3513_v12 = vpop.f32.mrf.mxu1  ;;  %v2821_v20 = vadd.f32 %v3490_v18, %v2781_v19 }
 0x1a9   :  { %v3492_v13 = vpop.f32.mrf.mxu0 }
 0x1aa   :  { %v3514_v14 = vpop.f32.mrf.mxu1  ;;  %v2861_v24 = vadd.f32 %v3512_v21, %v2821_v20 }
 0x1c3   :  { %v3532_v22 = vpop.f32.mrf.mxu0 }
 0x1c4   :  { %v3554_v35 = vpop.f32.mrf.mxu1 }
 0x1c5   :  { %v3533_v23 = vpop.f32.mrf.mxu0 }
 0x1c6   :  { %v3534_v25 = vadd.f32 %v3533_v23, %v3532_v22  ;;  %v3555_v26 = vpop.f32.mrf.mxu1 }
 0x1c7   :  { %v3535_v27 = vpop.f32.mrf.mxu0  ;;  %v3556_v29 = vadd.f32 %v3555_v26, %v3554_v35 }
 0x1c8   :  { %v2901_v28 = vadd.f32 %v3534_v25, %v2861_v24  ;;  %v3557_v30 = vpop.f32.mrf.mxu1 }
 0x1c9   :  { %v3536_v31 = vpop.f32.mrf.mxu0 }
 0x1ca   :  { %v2941_v32 = vadd.f32 %v3556_v29, %v2901_v28  ;;  %v3558_v33 = vpop.f32.mrf.mxu1 }
 0x1cc   :  { %2946 = vst [vmem:[%s4677_s3] sm:$0x3] %v2941_v32 }

</bundles_post_ra>
